<compile_context>
chip_gen: v7x
topology: tpu7x:2x2x1
jax: 0.10.0
libtpu: 0.0.40
codegen_flags: <defaults>
</compile_context>

<pallas_src>
import jax
import jax.numpy as jnp
from jax.experimental import pallas as pl
from jax.experimental.pallas import tpu as pltpu


# ------------------------------ Pallas kernel -------------------------------

def _make_fused_kernel(*, G, R, S_total, n_out, c_mid, half_w, kh):
    """conv(3x3,s2)+ReLU + fc + running sum/max over slices + lambda mix."""

    def kernel(x_ref, wm_ref, bc_ref, t_ref, wbig_ref, seg_ref, sel_ref,
               bfc_ref, lam_ref, o_ref, sum_scr, max_scr):
        g = pl.program_id(0)

        @pl.when(g == 0)
        def _init():
            sum_scr[...] = jnp.zeros((1, n_out), jnp.float32)
            max_scr[...] = jnp.full((1, n_out), -jnp.inf, jnp.float32)

        # ---- final_conv: all 6 taps as ONE bf16 MXU matmul -----------------
        # x is the pair-row view of G slices: pair-row p packs the channels of
        # two adjacent W positions; conv candidate r = 98*s + (14*oy + ox).
        x = x_ref[0]                                           # (G*98, 1024) bf16
        y_all = jnp.dot(x, wm_ref[...],
                        preferred_element_type=jnp.float32)    # (G*98, 2*kh*c_mid)
        acc = jnp.zeros((R, c_mid), jnp.float32)
        for ky in range(kh):                                   # 6 shifted adds
            sa = half_w * ky                                   # pair-row shift
            acc = acc + y_all[sa:sa + R, c_mid * ky:c_mid * (ky + 1)]
            acc = acc + y_all[sa + 1:sa + 1 + R,
                              c_mid * (kh + ky):c_mid * (kh + ky + 1)]
        a = jnp.maximum(acc + bc_ref[...], 0.0)                # bias + ReLU, f32

        # ---- fc (6x6 dense) entirely on the MXU ----------------------------
        # a_tiled[r, o*c_mid + c] = a[r, c]  (lane replication via 0/1 matmul)
        a_tiled = jnp.dot(a, t_ref[...], preferred_element_type=jnp.float32)
        prod = a_tiled * wbig_ref[...]                         # (R, n_out*c_mid)
        # per-slice row sums (0/1 segment matmul), then collapse each c_mid
        # lane group to one output (0/1 select matmul)  ->  per-slice logits.
        r1 = jnp.dot(seg_ref[...], prod,
                     preferred_element_type=jnp.float32)       # (G, n_out*c_mid)
        logits = jnp.dot(r1, sel_ref[...],
                         preferred_element_type=jnp.float32)   # (G, n_out)

        sum_scr[...] = sum_scr[...] + jnp.sum(logits, axis=0, keepdims=True)
        max_scr[...] = jnp.maximum(max_scr[...],
                                   jnp.max(logits, axis=0, keepdims=True))

        @pl.when(g == pl.num_programs(0) - 1)
        def _finalize():
            lam = lam_ref[...]
            avg = sum_scr[...] * (1.0 / S_total) + bfc_ref[...]
            mx = max_scr[...] + bfc_ref[...]                   # bias slice-invariant
            o_ref[...] = lam * avg + (1.0 - lam) * mx

    return kernel


# -------------------------- one-time weight packing --------------------------

def pack_params(params, *, H=14, W=14, G=5):
    """Model-load-time repacking (hoisted out of the per-call jit path).

    Expected layouts: w_conv (3,3,512,16) HWIO; w_fc (576, n_out) flattened in
    (h, w, c) order; b_conv (1,16); b_fc / lambda_for_avg (1, n_out)."""
    w_conv = jnp.asarray(params["w_conv"], jnp.float32)
    w_fc = jnp.asarray(params["w_fc"], jnp.float32)
    kh, kw, c_in, c_mid = w_conv.shape
    n_out = w_fc.shape[1]
    assert (kh, kw) == (3, 3) and W % 2 == 0
    oh, ow = (H - kh) // 2 + 1, (W - kw) // 2 + 1          # 6, 6
    half_w = W // 2                                        # 7 pair-rows per H row
    rows_per_slice = H * half_w                            # 98
    m_rows = 2 * half_w * (oh - 1) + ow                    # 76 candidates / slice
    R = -(-(rows_per_slice * (G - 1) + m_rows) // 8) * 8   # 472 (multiple of 8)
    assert R + 2 * half_w + 1 <= G * rows_per_slice

    # Merged conv weight (2*c_in, 2*kh*c_mid):
    #   cols [c_mid*ky      : ...] = kx=0,1 channel-stacked taps   (K = 1024)
    #   cols [c_mid*(kh+ky) : ...] = kx=2 taps, zero-padded to K = 1024
    wa = jnp.transpose(w_conv[:, 0:2, :, :].reshape(kh, 2 * c_in, c_mid),
                       (1, 0, 2)).reshape(2 * c_in, kh * c_mid)
    wb = jnp.concatenate(
        [w_conv[:, 2, :, :], jnp.zeros((kh, c_in, c_mid), jnp.float32)], axis=1)
    wb = jnp.transpose(wb, (1, 0, 2)).reshape(2 * c_in, kh * c_mid)
    w_merged = jnp.concatenate([wa, wb], axis=1).astype(jnp.bfloat16)

    # fc weight scattered onto candidate rows m = 14*oy + ox, laid out
    # lane-dense: w_big[98*s + m, o*c_mid + c] = Wfc[oy, ox, c, o]; rows with
    # invalid m are zero so garbage conv rows contribute nothing.
    w4 = w_fc.reshape(oh, ow, c_mid, n_out)
    m_idx = (2 * half_w * jnp.arange(oh)[:, None]
             + jnp.arange(ow)[None, :]).reshape(-1)        # (36,)
    w_sc = jnp.zeros((rows_per_slice, c_mid, n_out), jnp.float32)
    w_sc = w_sc.at[m_idx].set(w4.reshape(oh * ow, c_mid, n_out))
    w_slice = jnp.transpose(w_sc, (0, 2, 1)).reshape(rows_per_slice,
                                                     n_out * c_mid)
    w_big = jnp.tile(w_slice, (G, 1))[:R]                  # (R, n_out*c_mid)

    # Constant 0/1 matmul helpers: lane replication, per-slice segment sum,
    # 16-lane group collapse.  All tiny.
    t_mat = jnp.tile(jnp.eye(c_mid, dtype=jnp.float32), (1, n_out))
    seg = (jnp.arange(R)[None, :] // rows_per_slice
           == jnp.arange(G)[:, None]).astype(jnp.float32)
    sel = jnp.repeat(jnp.eye(n_out, dtype=jnp.float32), c_mid, axis=0)

    return {
        "w_merged": w_merged,
        "b_conv": jnp.asarray(params["b_conv"], jnp.float32).reshape(1, c_mid),
        "t_mat": t_mat,
        "w_big": w_big,
        "seg": seg,
        "sel": sel,
        "b_fc": jnp.asarray(params["b_fc"], jnp.float32).reshape(1, n_out),
        "lambda_for_avg": jnp.asarray(params["lambda_for_avg"],
                                      jnp.float32).reshape(1, n_out),
    }


# -------------------------------- wrapper -----------------------------------

@jax.jit
def body_avg_max_forward(x_feat, packed):
    """x_feat: [S, 14, 14, 512] float (NHWC)  ->  [1, n_outputs] float32."""
    S, H, W, c_in = x_feat.shape
    G, R = packed["seg"].shape
    c_mid = packed["b_conv"].shape[1]
    n_out = packed["b_fc"].shape[1]
    kh = packed["w_merged"].shape[1] // (2 * c_mid)
    half_w = W // 2
    rows_per_slice = H * half_w
    group_rows = G * rows_per_slice
    assert S % G == 0 and packed["w_merged"].shape[0] == 2 * c_in

    # Pair-row view (pure contiguous reshape, no copy) + bf16 cast: the kernel
    # only reads half the HBM bytes per group.
    xp = x_feat.reshape(S // G, group_rows, 2 * c_in).astype(jnp.bfloat16)

    kernel = _make_fused_kernel(G=G, R=R, S_total=S, n_out=n_out,
                                c_mid=c_mid, half_w=half_w, kh=kh)

    return pl.pallas_call(
        kernel,
        out_shape=jax.ShapeDtypeStruct((1, n_out), jnp.float32),
        grid_spec=pltpu.PrefetchScalarGridSpec(
            num_scalar_prefetch=0,
            grid=(S // G,),
            in_specs=[
                pl.BlockSpec((1, group_rows, 2 * c_in), lambda g: (g, 0, 0)),
                pl.BlockSpec((2 * c_in, 2 * kh * c_mid), lambda g: (0, 0)),
                pl.BlockSpec((1, c_mid), lambda g: (0, 0)),
                pl.BlockSpec((c_mid, n_out * c_mid), lambda g: (0, 0)),
                pl.BlockSpec((R, n_out * c_mid), lambda g: (0, 0)),
                pl.BlockSpec((G, R), lambda g: (0, 0)),
                pl.BlockSpec((n_out * c_mid, n_out), lambda g: (0, 0)),
                pl.BlockSpec((1, n_out), lambda g: (0, 0)),
                pl.BlockSpec((1, n_out), lambda g: (0, 0)),
            ],
            out_specs=pl.BlockSpec((1, n_out), lambda g: (0, 0)),
            scratch_shapes=[
                pltpu.VMEM((1, n_out), jnp.float32),   # running sum
                pltpu.VMEM((1, n_out), jnp.float32),   # running max
            ],
        ),
        compiler_params=pltpu.CompilerParams(
            dimension_semantics=("arbitrary",),
            vmem_limit_bytes=32 * 1024 * 1024,
        ),
    )(xp, packed["w_merged"], packed["b_conv"], packed["t_mat"],
      packed["w_big"], packed["seg"], packed["sel"],
      packed["b_fc"], packed["lambda_for_avg"])


def reference_forward(x_feat, params):
    """Pure-JAX f32 reference with identical semantics (sanity check)."""
    y = jax.lax.conv_general_dilated(
        x_feat, params["w_conv"], window_strides=(2, 2), padding="VALID",
        dimension_numbers=("NHWC", "HWIO", "NHWC"))
    y = jnp.maximum(y + params["b_conv"].reshape(1, 1, 1, -1), 0.0)  # [S,6,6,16]
    S = y.shape[0]
    logits = y.reshape(S, -1) @ params["w_fc"] + params["b_fc"]      # [S, n_out]
    x_avg = jnp.mean(logits, axis=0, keepdims=True)
    x_max = jnp.max(logits, axis=0, keepdims=True)
    lam = params["lambda_for_avg"]
    return lam * x_avg + (1 - lam) * x_max


# ---------------------------------- main -------------------------------------

if __name__ == "__main__":
    S = 15            # self.slices
    n_outputs = 8     # small n_outputs
    C_IN, H, W = 512, 14, 14
    C_MID = 16

    key = jax.random.PRNGKey(0)
    k1, k2, k3, k4, k5 = jax.random.split(key, 5)

    params = {
        "w_conv": jax.random.normal(k1, (3, 3, C_IN, C_MID), jnp.float32) * 0.02,
        "b_conv": jax.random.normal(k2, (1, C_MID), jnp.float32) * 0.02,
        "w_fc": jax.random.normal(k3, (6 * 6 * C_MID, n_outputs), jnp.float32) * 0.05,
        "b_fc": jax.random.normal(k4, (1, n_outputs), jnp.float32) * 0.05,
        # matches PyTorch init: 0.5 * torch.ones((1, n_outputs))
        "lambda_for_avg": jnp.full((1, n_outputs), 0.5, dtype=jnp.float32),
    }

    # ResNet18 feature-map input: NCHW [S,512,14,14] given here as NHWC.
    x_feat = jax.random.normal(k5, (S, H, W, C_IN), jnp.float32)

    packed = pack_params(params, H=H, W=W, G=5)   # one-time, model-load path

    out = jax.block_until_ready(body_avg_max_forward(x_feat, packed))
    ref = jax.block_until_ready(reference_forward(x_feat, params))

    assert out.shape == (1, n_outputs), out.shape
    # bf16 conv matmul => slightly looser tolerance than the pure-f32 version.
    assert jnp.allclose(out, ref, rtol=2e-2, atol=2e-2), (out, ref)

    print("KERNEL_OK")
</pallas_src>

<mosaic_0001>
module attributes {stable_mosaic.version = 11 : i64} {
  func.func @kernel(%arg0: i32, %arg1: memref<1x490x1024xbf16, #tpu.memory_space<vmem>>, %arg2: memref<1024x96xbf16, #tpu.memory_space<vmem>>, %arg3: memref<1x16xf32, #tpu.memory_space<vmem>>, %arg4: memref<16x128xf32, #tpu.memory_space<vmem>>, %arg5: memref<472x128xf32, #tpu.memory_space<vmem>>, %arg6: memref<5x472xf32, #tpu.memory_space<vmem>>, %arg7: memref<128x8xf32, #tpu.memory_space<vmem>>, %arg8: memref<1x8xf32, #tpu.memory_space<vmem>>, %arg9: memref<1x8xf32, #tpu.memory_space<vmem>>, %arg10: memref<1x8xf32, #tpu.memory_space<vmem>>, %arg11: memref<1x8xf32, #tpu.memory_space<vmem>>, %arg12: memref<1x8xf32, #tpu.memory_space<vmem>>) attributes {dimension_semantics = [#tpu.dimension_semantics<arbitrary>], iteration_bounds = array<i64: 3>, scalar_prefetch = 0 : i64, scratch_operands = 2 : i64, tpu.core_type = #tpu.core_type<tc>, window_params = [{transform_indices = @transform_0, window_bounds = array<i64: 1, 490, 1024>}, {pipeline_mode = #tpu.pipeline_mode<synchronous>, transform_indices = @transform_1, window_bounds = array<i64: 1024, 96>}, {pipeline_mode = #tpu.pipeline_mode<synchronous>, transform_indices = @transform_2, window_bounds = array<i64: 1, 16>}, {pipeline_mode = #tpu.pipeline_mode<synchronous>, transform_indices = @transform_3, window_bounds = array<i64: 16, 128>}, {pipeline_mode = #tpu.pipeline_mode<synchronous>, transform_indices = @transform_4, window_bounds = array<i64: 472, 128>}, {pipeline_mode = #tpu.pipeline_mode<synchronous>, transform_indices = @transform_5, window_bounds = array<i64: 5, 472>}, {pipeline_mode = #tpu.pipeline_mode<synchronous>, transform_indices = @transform_6, window_bounds = array<i64: 128, 8>}, {pipeline_mode = #tpu.pipeline_mode<synchronous>, transform_indices = @transform_7, window_bounds = array<i64: 1, 8>}, {pipeline_mode = #tpu.pipeline_mode<synchronous>, transform_indices = @transform_8, window_bounds = array<i64: 1, 8>}, {pipeline_mode = #tpu.pipeline_mode<synchronous>, transform_indices = @transform_9, window_bounds = array<i64: 1, 8>}]} {
    %c0_i32 = arith.constant 0 : i32
    %0 = arith.cmpi eq, %arg0, %c0_i32 : i32
    %1 = arith.extui %0 : i1 to i32
    %c0_i32_0 = arith.constant 0 : i32
    %2 = arith.cmpi ne, %1, %c0_i32_0 : i32
    scf.if %2 {
      %cst_31 = arith.constant 0.000000e+00 : f32
      %46 = vector.broadcast %cst_31 : f32 to vector<1x8xf32>
      %c0_32 = arith.constant 0 : index
      %c0_33 = arith.constant 0 : index
      %47 = vector.load %arg11[%c0_32, %c0_33] : memref<1x8xf32, #tpu.memory_space<vmem>>, vector<1x8xf32>
      tpu.vector_store %arg11[%c0_32, %c0_33], %46 {strides = array<i32>} : memref<1x8xf32, #tpu.memory_space<vmem>>, vector<1x8xf32>,
      %cst_34 = arith.constant 0xFF800000 : f32
      %48 = vector.broadcast %cst_34 : f32 to vector<1x8xf32>
      %c0_35 = arith.constant 0 : index
      %c0_36 = arith.constant 0 : index
      %49 = vector.load %arg12[%c0_35, %c0_36] : memref<1x8xf32, #tpu.memory_space<vmem>>, vector<1x8xf32>
      tpu.vector_store %arg12[%c0_35, %c0_36], %48 {strides = array<i32>} : memref<1x8xf32, #tpu.memory_space<vmem>>, vector<1x8xf32>,
    } else {
    }
    %c0 = arith.constant 0 : index
    %c0_1 = arith.constant 0 : index
    %c0_2 = arith.constant 0 : index
    %3 = vector.load %arg1[%c0, %c0_1, %c0_2] : memref<1x490x1024xbf16, #tpu.memory_space<vmem>>, vector<1x490x1024xbf16>
    %4 = vector.shape_cast %3 : vector<1x490x1024xbf16> to vector<490x1024xbf16>
    %c0_3 = arith.constant 0 : index
    %c0_4 = arith.constant 0 : index
    %5 = vector.load %arg2[%c0_3, %c0_4] : memref<1024x96xbf16, #tpu.memory_space<vmem>>, vector<1024x96xbf16>
    %cst = arith.constant dense<0.000000e+00> : vector<490x96xf32>
    %6 = tpu.matmul %4, %5, %cst {dimension_numbers = #tpu.dot_dimension_numbers<[1], [0], [0], [1], [0, 0, 1, 1], [], []>} : vector<490x1024xbf16>, vector<1024x96xbf16>, vector<490x96xf32> -> vector<490x96xf32>
    %cst_5 = arith.constant 0.000000e+00 : f32
    %7 = vector.broadcast %cst_5 : f32 to vector<472x16xf32>
    %8 = vector.extract_strided_slice %6 {offsets = [0, 0], sizes = [472, 16], strides = [1, 1]} : vector<490x96xf32> to vector<472x16xf32>
    %9 = arith.addf %7, %8 : vector<472x16xf32>
    %10 = vector.extract_strided_slice %6 {offsets = [1, 48], sizes = [472, 16], strides = [1, 1]} : vector<490x96xf32> to vector<472x16xf32>
    %11 = arith.addf %9, %10 : vector<472x16xf32>
    %12 = vector.extract_strided_slice %6 {offsets = [7, 16], sizes = [472, 16], strides = [1, 1]} : vector<490x96xf32> to vector<472x16xf32>
    %13 = arith.addf %11, %12 : vector<472x16xf32>
    %14 = vector.extract_strided_slice %6 {offsets = [8, 64], sizes = [472, 16], strides = [1, 1]} : vector<490x96xf32> to vector<472x16xf32>
    %15 = arith.addf %13, %14 : vector<472x16xf32>
    %16 = vector.extract_strided_slice %6 {offsets = [14, 32], sizes = [472, 16], strides = [1, 1]} : vector<490x96xf32> to vector<472x16xf32>
    %17 = arith.addf %15, %16 : vector<472x16xf32>
    %18 = vector.extract_strided_slice %6 {offsets = [15, 80], sizes = [472, 16], strides = [1, 1]} : vector<490x96xf32> to vector<472x16xf32>
    %19 = arith.addf %17, %18 : vector<472x16xf32>
    %c0_6 = arith.constant 0 : index
    %c0_7 = arith.constant 0 : index
    %20 = vector.load %arg3[%c0_6, %c0_7] : memref<1x16xf32, #tpu.memory_space<vmem>>, vector<1x16xf32>
    %21 = vector.broadcast %20 : vector<1x16xf32> to vector<472x16xf32>
    %22 = arith.addf %19, %21 : vector<472x16xf32>
    %cst_8 = arith.constant 0.000000e+00 : f32
    %23 = vector.broadcast %cst_8 : f32 to vector<472x16xf32>
    %24 = arith.maximumf %22, %23 : vector<472x16xf32>
    %c0_9 = arith.constant 0 : index
    %c0_10 = arith.constant 0 : index
    %25 = vector.load %arg4[%c0_9, %c0_10] : memref<16x128xf32, #tpu.memory_space<vmem>>, vector<16x128xf32>
    %cst_11 = arith.constant dense<0.000000e+00> : vector<472x128xf32>
    %26 = tpu.matmul %24, %25, %cst_11 {dimension_numbers = #tpu.dot_dimension_numbers<[1], [0], [0], [1], [0, 0, 1, 1], [], []>} : vector<472x16xf32>, vector<16x128xf32>, vector<472x128xf32> -> vector<472x128xf32>
    %c0_12 = arith.constant 0 : index
    %c0_13 = arith.constant 0 : index
    %27 = vector.load %arg5[%c0_12, %c0_13] : memref<472x128xf32, #tpu.memory_space<vmem>>, vector<472x128xf32>
    %28 = arith.mulf %26, %27 : vector<472x128xf32>
    %c0_14 = arith.constant 0 : index
    %c0_15 = arith.constant 0 : index
    %29 = vector.load %arg6[%c0_14, %c0_15] : memref<5x472xf32, #tpu.memory_space<vmem>>, vector<5x472xf32>
    %cst_16 = arith.constant dense<0.000000e+00> : vector<5x128xf32>
    %30 = tpu.matmul %29, %28, %cst_16 {dimension_numbers = #tpu.dot_dimension_numbers<[1], [0], [0], [1], [0, 0, 1, 1], [], []>} : vector<5x472xf32>, vector<472x128xf32>, vector<5x128xf32> -> vector<5x128xf32>
    %c0_17 = arith.constant 0 : index
    %c0_18 = arith.constant 0 : index
    %31 = vector.load %arg7[%c0_17, %c0_18] : memref<128x8xf32, #tpu.memory_space<vmem>>, vector<128x8xf32>
    %cst_19 = arith.constant dense<0.000000e+00> : vector<5x8xf32>
    %32 = tpu.matmul %30, %31, %cst_19 {dimension_numbers = #tpu.dot_dimension_numbers<[1], [0], [0], [1], [0, 0, 1, 1], [], []>} : vector<5x128xf32>, vector<128x8xf32>, vector<5x8xf32> -> vector<5x8xf32>
    %c0_20 = arith.constant 0 : index
    %c0_21 = arith.constant 0 : index
    %33 = vector.load %arg11[%c0_20, %c0_21] : memref<1x8xf32, #tpu.memory_space<vmem>>, vector<1x8xf32>
    %cst_22 = arith.constant dense<0.000000e+00> : vector<8xf32>
    %34 = vector.multi_reduction <add>, %32, %cst_22 [0] : vector<5x8xf32> to vector<8xf32>
    %35 = vector.shape_cast %34 : vector<8xf32> to vector<1x8xf32>
    %36 = arith.addf %33, %35 : vector<1x8xf32>
    %c0_23 = arith.constant 0 : index
    %c0_24 = arith.constant 0 : index
    %37 = vector.load %arg11[%c0_23, %c0_24] : memref<1x8xf32, #tpu.memory_space<vmem>>, vector<1x8xf32>
    tpu.vector_store %arg11[%c0_23, %c0_24], %36 {strides = array<i32>} : memref<1x8xf32, #tpu.memory_space<vmem>>, vector<1x8xf32>,
    %c0_25 = arith.constant 0 : index
    %c0_26 = arith.constant 0 : index
    %38 = vector.load %arg12[%c0_25, %c0_26] : memref<1x8xf32, #tpu.memory_space<vmem>>, vector<1x8xf32>
    %cst_27 = arith.constant dense<0xFF800000> : vector<8xf32>
    %39 = vector.multi_reduction <maximumf>, %32, %cst_27 [0] : vector<5x8xf32> to vector<8xf32>
    %40 = vector.shape_cast %39 : vector<8xf32> to vector<1x8xf32>
    %41 = arith.maximumf %38, %40 : vector<1x8xf32>
    %c0_28 = arith.constant 0 : index
    %c0_29 = arith.constant 0 : index
    %42 = vector.load %arg12[%c0_28, %c0_29] : memref<1x8xf32, #tpu.memory_space<vmem>>, vector<1x8xf32>
    tpu.vector_store %arg12[%c0_28, %c0_29], %41 {strides = array<i32>} : memref<1x8xf32, #tpu.memory_space<vmem>>, vector<1x8xf32>,
    %c2_i32 = arith.constant 2 : i32
    %43 = arith.cmpi eq, %arg0, %c2_i32 : i32
    %44 = arith.extui %43 : i1 to i32
    %c0_i32_30 = arith.constant 0 : i32
    %45 = arith.cmpi ne, %44, %c0_i32_30 : i32
    scf.if %45 {
      %c0_31 = arith.constant 0 : index
      %c0_32 = arith.constant 0 : index
      %46 = vector.load %arg9[%c0_31, %c0_32] : memref<1x8xf32, #tpu.memory_space<vmem>>, vector<1x8xf32>
      %c0_33 = arith.constant 0 : index
      %c0_34 = arith.constant 0 : index
      %47 = vector.load %arg11[%c0_33, %c0_34] : memref<1x8xf32, #tpu.memory_space<vmem>>, vector<1x8xf32>
      %cst_35 = arith.constant 0.0666666701 : f32
      %48 = vector.broadcast %cst_35 : f32 to vector<1x8xf32>
      %49 = arith.mulf %47, %48 : vector<1x8xf32>
      %c0_36 = arith.constant 0 : index
      %c0_37 = arith.constant 0 : index
      %50 = vector.load %arg8[%c0_36, %c0_37] : memref<1x8xf32, #tpu.memory_space<vmem>>, vector<1x8xf32>
      %51 = arith.addf %49, %50 : vector<1x8xf32>
      %c0_38 = arith.constant 0 : index
      %c0_39 = arith.constant 0 : index
      %52 = vector.load %arg12[%c0_38, %c0_39] : memref<1x8xf32, #tpu.memory_space<vmem>>, vector<1x8xf32>
      %c0_40 = arith.constant 0 : index
      %c0_41 = arith.constant 0 : index
      %53 = vector.load %arg8[%c0_40, %c0_41] : memref<1x8xf32, #tpu.memory_space<vmem>>, vector<1x8xf32>
      %54 = arith.addf %52, %53 : vector<1x8xf32>
      %55 = arith.mulf %46, %51 : vector<1x8xf32>
      %cst_42 = arith.constant 1.000000e+00 : f32
      %56 = vector.broadcast %cst_42 : f32 to vector<1x8xf32>
      %57 = arith.subf %56, %46 : vector<1x8xf32>
      %58 = arith.mulf %57, %54 : vector<1x8xf32>
      %59 = arith.addf %55, %58 : vector<1x8xf32>
      %c0_43 = arith.constant 0 : index
      %c0_44 = arith.constant 0 : index
      %60 = vector.load %arg10[%c0_43, %c0_44] : memref<1x8xf32, #tpu.memory_space<vmem>>, vector<1x8xf32>
      tpu.vector_store %arg10[%c0_43, %c0_44], %59 {strides = array<i32>} : memref<1x8xf32, #tpu.memory_space<vmem>>, vector<1x8xf32>,
    } else {
    }
    return
  }
  func.func @transform_0(%arg0: i32) -> (i32, i32, i32) {
    %c0_i32 = arith.constant 0 : i32
    %c0_i32_0 = arith.constant 0 : i32
    %c0_i32_1 = arith.constant 0 : i32
    return %arg0, %c0_i32, %c0_i32_0 : i32, i32, i32
  }
  func.func @transform_1(%arg0: i32) -> (i32, i32) {
    %c0_i32 = arith.constant 0 : i32
    %c0_i32_0 = arith.constant 0 : i32
    %c0_i32_1 = arith.constant 0 : i32
    return %c0_i32, %c0_i32_0 : i32, i32
  }
  func.func @transform_2(%arg0: i32) -> (i32, i32) {
    %c0_i32 = arith.constant 0 : i32
    %c0_i32_0 = arith.constant 0 : i32
    %c0_i32_1 = arith.constant 0 : i32
    return %c0_i32, %c0_i32_0 : i32, i32
  }
  func.func @transform_3(%arg0: i32) -> (i32, i32) {
    %c0_i32 = arith.constant 0 : i32
    %c0_i32_0 = arith.constant 0 : i32
    %c0_i32_1 = arith.constant 0 : i32
    return %c0_i32, %c0_i32_0 : i32, i32
  }
  func.func @transform_4(%arg0: i32) -> (i32, i32) {
    %c0_i32 = arith.constant 0 : i32
    %c0_i32_0 = arith.constant 0 : i32
    %c0_i32_1 = arith.constant 0 : i32
    return %c0_i32, %c0_i32_0 : i32, i32
  }
  func.func @transform_5(%arg0: i32) -> (i32, i32) {
    %c0_i32 = arith.constant 0 : i32
    %c0_i32_0 = arith.constant 0 : i32
    %c0_i32_1 = arith.constant 0 : i32
    return %c0_i32, %c0_i32_0 : i32, i32
  }
  func.func @transform_6(%arg0: i32) -> (i32, i32) {
    %c0_i32 = arith.constant 0 : i32
    %c0_i32_0 = arith.constant 0 : i32
    %c0_i32_1 = arith.constant 0 : i32
    return %c0_i32, %c0_i32_0 : i32, i32
  }
  func.func @transform_7(%arg0: i32) -> (i32, i32) {
    %c0_i32 = arith.constant 0 : i32
    %c0_i32_0 = arith.constant 0 : i32
    %c0_i32_1 = arith.constant 0 : i32
    return %c0_i32, %c0_i32_0 : i32, i32
  }
  func.func @transform_8(%arg0: i32) -> (i32, i32) {
    %c0_i32 = arith.constant 0 : i32
    %c0_i32_0 = arith.constant 0 : i32
    %c0_i32_1 = arith.constant 0 : i32
    return %c0_i32, %c0_i32_0 : i32, i32
  }
  func.func @transform_9(%arg0: i32) -> (i32, i32) {
    %c0_i32 = arith.constant 0 : i32
    %c0_i32_0 = arith.constant 0 : i32
    %c0_i32_1 = arith.constant 0 : i32
    return %c0_i32, %c0_i32_0 : i32, i32
  }
}

</mosaic_0001>

<bundles_post_ra>
// kernel: body_avg_max_forward.1
= control target key start
LH: loop header
LB: loop body
LE: loop exit
PB: predicated region body
PF: predicated region fallthrough
CT: control target
= control target key end

     0   :  { %14 = vsyncpa [#allocation5], 0  ;;  %s7556_s30 = smov 0   ;;  %s10012_s0 = inlined_call_operand.vmem [shape: bf16[3,490,1024], index: 0, kind: input, shape index: {}]   ;;  %s10013_s1 = inlined_call_operand.vmem [shape: bf16[1024,96], index: 1, kind: input, shape index: {}]   ;;  %s10014_s2 = inlined_call_operand.vmem [shape: f32[1,16], index: 2, kind: input, shape index: {}]   ;;  %s10015_s3 = inlined_call_operand.vmem [shape: f32[16,128], index: 3, kind: input, shape index: {}]   ;;  %s10016_s4 = inlined_call_operand.vmem [shape: f32[472,128], index: 4, kind: input, shape index: {}]   ;;  %s10017_s5 = inlined_call_operand.vmem [shape: f32[5,472], index: 5, kind: input, shape index: {}]   ;;  %s10018_s6 = inlined_call_operand.vmem [shape: f32[128,8], index: 6, kind: input, shape index: {}]   ;;  %s10019_s7 = inlined_call_operand.vmem [shape: f32[1,8], index: 7, kind: input, shape index: {}]   ;;  %s10020_s8 = inlined_call_operand.vmem [shape: f32[1,8], index: 8, kind: input, shape index: {}]   ;;  %s10021_s9 = inlined_call_operand.hbm [shape: f32[1,8], index: 9, kind: output, shape index: {}]  }
   0x1 LB: > { %s7562_s10 = sadd.s32 4294967295, %s7492_s30   ;;  %p6213_p0 = scmp.ge.s32.totalorder %s7492_s30, 1  ;;  %s7492_s30 = sphi %s7556_s30, %s20_s30  }
   0x2   : > { %p283_p1 = scmp.lt.s32.totalorder %s7492_s30, 4 }
   0x4   : > { %p284_p2 = pnand %p6213_p0, %p283_p1 }
   0x6   : > { %287 = sbr.rel (%p284_p2) target bundleno = 2130 (0x852), region = 56 }
   0xd   : > { %p314_p3 = scmp.lt.s32.totalorder %s7562_s10, 2  ;;  %p6215_p4 = scmp.ne.s32.totalorder %s7562_s10, 0 }
   0xe   : > { %vm324_vm0 = vcmask (!%p6215_p4), 57344   ;;  %v7494_v0 = vmov (!%p6215_p4), 0.0   ;;  %v7495_v1 = vmov (!%p6215_p4), -inf  }
   0xf   : > { %s315_s11 = scalar_select %p314_p3, %s7562_s10, 2 }
  0x10   : > { %323 = sbr.rel (%p6215_p4) target bundleno = 23 (0x17), region = 60  ;;  %325 = vst.msk [vmem:[#allocation2] sm:$0x1] (!%p6215_p4), %vm324_vm0, %v7494_v0  ;;  %326 = vst.msk [vmem:[#allocation3] sm:$0x1] (!%p6215_p4), %vm324_vm0, %v7495_v1 }
  0x11   : > { %s7362_s12 = smul.u32 1984, %s315_s11 }
  0x13   : > { %s7571_s15 = scalar_lea.vmem %s10012_s0, %s7362_s12 }
  0x17 PF: > { %v7577_v2 = vld [vmem:[%s10013_s1 + $0x80] sm:$0xff]   ;;  %v7496_v3 = vmov 0   ;;  %v7585_v4 = vld [vmem:[%s10013_s1 + $0x88] sm:$0xff]   ;;  %v7592_v5 = vld [vmem:[%s10013_s1 + $0x90] sm:$0xff]   ;;  %vm3566_vm1 = vcmask 1046528   ;;  %s7497_s18 = smov 64  }
  0x18   : > { %2607 = vmatprep.subr.bf16.mxu0 %v7496_v3  ;;  %2327 = vmatprep.subr.bf16.mxu1 %v7496_v3  ;;  %v7599_v6 = vld [vmem:[%s10013_s1 + $0x98] sm:$0xff]   ;;  %v7606_v7 = vld [vmem:[%s10013_s1 + $0xa0] sm:$0xff]   ;;  %v328_v8 = vld [vmem:[%s7571_s15 + $0x8] sm:$0xff]  ;;  %s7498_s19 = smov 80   ;;  %vm3922_vm2 = vcmask 1040384   ;;  %s7499_s20 = smov 112  }
  0x19   : > { %2608 = vmatpush1.bf16.msra.mxu0 %v7577_v2  ;;  %v332_v9 = vld [vmem:[%s7571_s15 + $0x28] sm:$0xff]  ;;  %v7622_v12 = vld [vmem:[%s10013_s1 + $0xb0] sm:$0xff]   ;;  %v7629_v13 = vld [vmem:[%s10013_s1 + $0xb8] sm:$0xff]   ;;  %vm4515_vm3 = vcmask 1041408   ;;  %vm7501_vm4 = vmmov 0   ;;  %s7504_s25 = smov 48  }
  0x1a   : > { %2609 = vmatprep.subr.bf16.mxu0 %v7496_v3  ;;  %v6219_v10 = vcombine.high %v328_v8, %v332_v9  ;;  %v7615_v11 = vld [vmem:[%s10013_s1 + $0xa8] sm:$0xff]   ;;  %v7636_v14 = vld [vmem:[%s10013_s1 + $0xc0] sm:$0xff]   ;;  %v7649_v16 = vld [vmem:[%s10013_s1 + $0xd0] sm:$0xff]   ;;  %v6218_v25 = vcombine.low %v328_v8, %v332_v9  ;;  %vm5236_vm5 = vcmask 130048   ;;  %vm5896_vm6 = vcmask 719872   ;;  %p6589_p5 = scmp.ne.s32.totalorder %s7562_s10, 2 }
  0x1b   : > { %v7643_v15 = vld [vmem:[%s10013_s1 + $0xc8] sm:$0xff]   ;;  %v7656_v17 = vld [vmem:[%s10013_s1 + $0xd8] sm:$0xff]   ;;  %v7663_v18 = vld [vmem:[%s10013_s1 + $0xe0] sm:$0xff]   ;;  %vm6127_vm7 = vcmask 61440   ;;  %vm6136_vm8 = vcmask 57344  }
  0x1c   : > { %2639 = vmatprep.mubr.bf16.mxu0 %v6219_v10  ;;  %v7670_v19 = vld [vmem:[%s10013_s1 + $0xe8] sm:$0xff]   ;;  %v7677_v20 = vld [vmem:[%s10013_s1 + $0xf0] sm:$0xff]   ;;  %v7684_v21 = vld [vmem:[%s10013_s1 + $0xf8] sm:$0xff]  }
  0x1d   : > { %2610 = vmatpush1.bf16.msra.mxu0 %v7585_v4  ;;  %v336_v22 = vld [vmem:[%s7571_s15 + $0x48] sm:$0xff]  ;;  %v7405_v24 = vld [vmem:[%s10013_s1 + $0x100] sm:$0xff]   ;;  %v7407_v32 = vld [vmem:[%s10013_s1 + $0x110] sm:$0xff]  }
  0x1e   : > { %2611 = vmatprep.subr.bf16.mxu0 %v7496_v3  ;;  %v340_v23 = vld [vmem:[%s7571_s15 + $0x68] sm:$0xff]  ;;  %v7408_v33 = vld [vmem:[%s10013_s1 + $0x118] sm:$0xff]   ;;  %v7409_v38 = vld [vmem:[%s10013_s1 + $0x120] sm:$0xff]  }
  0x1f   : > { %v6227_v26 = vcombine.high %v336_v22, %v340_v23  ;;  %v7406_v27 = vld [vmem:[%s10013_s1 + $0x108] sm:$0xff]   ;;  %v6226_v30 = vcombine.low %v336_v22, %v340_v23  ;;  %v7411_v44 = vld [vmem:[%s10013_s1 + $0x130] sm:$0xff]   ;;  %v7412_v45 = vld [vmem:[%s10013_s1 + $0x138] sm:$0xff]  }
  0x20   : > { %v344_v28 = vld [vmem:[%s7571_s15 + $0x88] sm:$0xff]  ;;  %v7413_v50 = vld [vmem:[%s10013_s1 + $0x140] sm:$0xff]   ;;  %v7415_v56 = vld [vmem:[%s10013_s1 + $0x150] sm:$0xff]  }
  0x21   : > { %2612 = vmatpush1.bf16.msra.mxu0 %v7592_v5  ;;  %v348_v29 = vld [vmem:[%s7571_s15 + $0xa8] sm:$0xff]  ;;  %v7416_v57 = vld [vmem:[%s10013_s1 + $0x158] sm:$0xff]   ;;  %v7417_v62 = vld [vmem:[%s10013_s1 + $0x160] sm:$0xff]  }
  0x22   : > { %2613 = vmatprep.subr.bf16.mxu0 %v7496_v3  ;;  %v6235_v31 = vcombine.high %v344_v28, %v348_v29  ;;  %v352_v34 = vld [vmem:[%s7571_s15 + $0xc8] sm:$0xff]  ;;  %v6234_v36 = vcombine.low %v344_v28, %v348_v29  ;;  %v7419_v10 = vld [vmem:[%s10013_s1 + $0x170] sm:$0xff]   ;;  %v7420_v22 = vld [vmem:[%s10013_s1 + $0x178] sm:$0xff]  }
  0x23   : > { %v356_v35 = vld [vmem:[%s7571_s15 + $0xe8] sm:$0xff] }
  0x24   : > { %v6243_v37 = vcombine.high %v352_v34, %v356_v35  ;;  %v7410_v39 = vld [vmem:[%s10013_s1 + $0x128] sm:$0xff]   ;;  %v6242_v42 = vcombine.low %v352_v34, %v356_v35 }
  0x25   : > { %2614 = vmatpush1.bf16.msra.mxu0 %v7599_v6  ;;  %v360_v40 = vld [vmem:[%s7571_s15 + $0x108] sm:$0xff] }
  0x26   : > { %2615 = vmatprep.subr.bf16.mxu0 %v7496_v3  ;;  %v364_v41 = vld [vmem:[%s7571_s15 + $0x128] sm:$0xff] }
  0x27   : > { %v6251_v43 = vcombine.high %v360_v40, %v364_v41  ;;  %v368_v46 = vld [vmem:[%s7571_s15 + $0x148] sm:$0xff]  ;;  %v6250_v48 = vcombine.low %v360_v40, %v364_v41 }
  0x28   : > { %v372_v47 = vld [vmem:[%s7571_s15 + $0x168] sm:$0xff] }
  0x29   : > { %2616 = vmatpush1.bf16.msra.mxu0 %v7606_v7  ;;  %v6259_v49 = vcombine.high %v368_v46, %v372_v47  ;;  %v7414_v51 = vld [vmem:[%s10013_s1 + $0x148] sm:$0xff]   ;;  %v6258_v54 = vcombine.low %v368_v46, %v372_v47 }
  0x2a   : > { %2617 = vmatprep.subr.bf16.mxu0 %v7496_v3  ;;  %v376_v52 = vld [vmem:[%s7571_s15 + $0x188] sm:$0xff] }
  0x2b   : > { %v380_v53 = vld [vmem:[%s7571_s15 + $0x1a8] sm:$0xff] }
  0x2c   : > { %v6267_v55 = vcombine.high %v376_v52, %v380_v53  ;;  %v384_v58 = vld [vmem:[%s7571_s15 + $0x1c8] sm:$0xff]  ;;  %v6266_v60 = vcombine.low %v376_v52, %v380_v53 }
  0x2d   : > { %2618 = vmatpush1.bf16.msra.mxu0 %v7615_v11  ;;  %v388_v59 = vld [vmem:[%s7571_s15 + $0x1e8] sm:$0xff] }
  0x2e   : > { %2619 = vmatprep.subr.bf16.mxu0 %v7496_v3  ;;  %v6275_v61 = vcombine.high %v384_v58, %v388_v59  ;;  %v7418_v63 = vld [vmem:[%s10013_s1 + $0x168] sm:$0xff]   ;;  %v6274_v8 = vcombine.low %v384_v58, %v388_v59 }
  0x2f   : > { %v392_v0 = vld [vmem:[%s7571_s15 + $0x208] sm:$0xff] }
  0x30   : > { %v396_v1 = vld [vmem:[%s7571_s15 + $0x228] sm:$0xff] }
  0x31   : > { %2620 = vmatpush1.bf16.msra.mxu0 %v7622_v12  ;;  %v6283_v9 = vcombine.high %v392_v0, %v396_v1  ;;  %v400_v23 = vld [vmem:[%s7571_s15 + $0x248] sm:$0xff] }
  0x32   : > { %2621 = vmatprep.subr.bf16.mxu0 %v7496_v3  ;;  %v412_v28 = vld [vmem:[%s7571_s15 + $0x2a8] sm:$0xff] }
  0x33   : > { %v424_v35 = vld [vmem:[%s7571_s15 + $0x308] sm:$0xff] }
  0x34   : > { %v436_v40 = vld [vmem:[%s7571_s15 + $0x368] sm:$0xff] }
  0x35   : > { %2622 = vmatpush1.bf16.msra.mxu0 %v7629_v13  ;;  %v448_v47 = vld [vmem:[%s7571_s15 + $0x3c8] sm:$0xff] }
  0x36   : > { %2623 = vmatprep.subr.bf16.mxu0 %v7496_v3  ;;  %v460_v52 = vld [vmem:[%s7571_s15 + $0x428] sm:$0xff] }
  0x37   : > { %v472_v59 = vld [vmem:[%s7571_s15 + $0x488] sm:$0xff] }
  0x39   : > { %2624 = vmatpush1.bf16.msra.mxu0 %v7636_v14 }
  0x3a   : > { %2625 = vmatprep.subr.bf16.mxu0 %v7496_v3 }
  0x3d   : > { %2626 = vmatpush1.bf16.msra.mxu0 %v7643_v15 }
  0x3e   : > { %2627 = vmatprep.subr.bf16.mxu0 %v7496_v3 }
  0x41   : > { %2628 = vmatpush1.bf16.msra.mxu0 %v7649_v16 }
  0x42   : > { %2629 = vmatprep.subr.bf16.mxu0 %v7496_v3 }
  0x45   : > { %2630 = vmatpush1.bf16.msra.mxu0 %v7656_v17 }
  0x46   : > { %2631 = vmatprep.subr.bf16.mxu0 %v7496_v3 }
  0x49   : > { %2632 = vmatpush1.bf16.msra.mxu0 %v7663_v18 }
  0x4a   : > { %2633 = vmatprep.subr.bf16.mxu0 %v7496_v3 }
  0x4d   : > { %2634 = vmatpush1.bf16.msra.mxu0 %v7670_v19 }
  0x4e   : > { %2635 = vmatprep.subr.bf16.mxu0 %v7496_v3 }
  0x51   : > { %2636 = vmatpush1.bf16.msra.mxu0 %v7677_v20 }
  0x52   : > { %2637 = vmatprep.subr.bf16.mxu0 %v7496_v3 }
  0x55   : > { %2638 = vmatpush1.bf16.msra.mxu0 %v7684_v21 }
  0x56   : > { %2887 = vmatprep.subr.bf16.mxu0 %v7496_v3 }
  0x58   : > { %2640 = vmatmul.mubr.bf16.vlgmr.msra.gmra.mrb[0].mxu0 %v6218_v25  ;;  %v6282_v25 = vcombine.low %v392_v0, %v396_v1  ;;  %v484_v0 = vld [vmem:[%s7571_s15 + $0x4e8] sm:$0xff] }
  0x59   : > { %2888 = vmatpush1.bf16.msra.mxu0 %v7405_v24  ;;  %2647 = vmatprep.mubr.bf16.mxu0 %v6227_v26  ;;  %v404_v24 = vld [vmem:[%s7571_s15 + $0x268] sm:$0xff] }
  0x5a   : > { %2889 = vmatprep.subr.bf16.mxu0 %v7496_v3  ;;  %v6291_v26 = vcombine.high %v400_v23, %v404_v24  ;;  %v6290_v29 = vcombine.low %v400_v23, %v404_v24  ;;  %v492_v23 = vld [vmem:[%s7571_s15 + $0x528] sm:$0xff] }
  0x5d   : > { %2890 = vmatpush1.bf16.msra.mxu0 %v7406_v27  ;;  %v408_v27 = vld [vmem:[%s7571_s15 + $0x288] sm:$0xff] }
  0x5e   : > { %2891 = vmatprep.subr.bf16.mxu0 %v7496_v3 }
  0x60   : > { %2648 = vmatmul.mubr.bf16.gmra.mrb[4].mxu0 %v6226_v30  ;;  %v6299_v30 = vcombine.high %v408_v27, %v412_v28 }
  0x61   : > { %2655 = vmatprep.mubr.bf16.mxu0 %v6235_v31  ;;  %2892 = vmatpush1.bf16.msra.mxu0 %v7407_v32  ;;  %v416_v31 = vld [vmem:[%s7571_s15 + $0x2c8] sm:$0xff] }
  0x62   : > { %2893 = vmatprep.subr.bf16.mxu0 %v7496_v3  ;;  %v420_v32 = vld [vmem:[%s7571_s15 + $0x2e8] sm:$0xff] }
  0x63   : > { %v6307_v34 = vcombine.high %v416_v31, %v420_v32 }
  0x65   : > { %2894 = vmatpush1.bf16.msra.mxu0 %v7408_v33  ;;  %v6298_v33 = vcombine.low %v408_v27, %v412_v28  ;;  %v7432_v27 = vld [vmem:[%s10013_s1 + $0x18] sm:$0xff]   ;;  %v329_v28 = vld [vmem:[%s7571_s15 + $0x10] sm:$0xff] }
  0x66   : > { %2895 = vmatprep.subr.bf16.mxu0 %v7496_v3 }
  0x68   : > { %2656 = vmatmul.mubr.bf16.gmra.mrb[8].mxu0 %v6234_v36  ;;  %v428_v36 = vld [vmem:[%s7571_s15 + $0x328] sm:$0xff] }
  0x69   : > { %2663 = vmatprep.mubr.bf16.mxu0 %v6243_v37  ;;  %2896 = vmatpush1.bf16.msra.mxu0 %v7409_v38  ;;  %v6306_v37 = vcombine.low %v416_v31, %v420_v32  ;;  %v6315_v38 = vcombine.high %v424_v35, %v428_v36  ;;  %v6314_v41 = vcombine.low %v424_v35, %v428_v36  ;;  %v7433_v32 = vld [vmem:[%s10013_s1 + $0x20] sm:$0xff]   ;;  %v341_v35 = vld [vmem:[%s7571_s15 + $0x70] sm:$0xff] }
  0x6a   : > { %2897 = vmatprep.subr.bf16.mxu0 %v7496_v3 }
  0x6d   : > { %2898 = vmatpush1.bf16.msra.mxu0 %v7410_v39  ;;  %v432_v39 = vld [vmem:[%s7571_s15 + $0x348] sm:$0xff] }
  0x6e   : > { %2899 = vmatprep.subr.bf16.mxu0 %v7496_v3 }
  0x70   : > { %2664 = vmatmul.mubr.bf16.gmra.mrb[12].mxu0 %v6242_v42  ;;  %v6323_v42 = vcombine.high %v432_v39, %v436_v40 }
  0x71   : > { %2671 = vmatprep.mubr.bf16.mxu0 %v6251_v43  ;;  %2900 = vmatpush1.bf16.msra.mxu0 %v7411_v44  ;;  %v440_v43 = vld [vmem:[%s7571_s15 + $0x388] sm:$0xff] }
  0x72   : > { %2901 = vmatprep.subr.bf16.mxu0 %v7496_v3  ;;  %v444_v44 = vld [vmem:[%s7571_s15 + $0x3a8] sm:$0xff] }
  0x73   : > { %v6331_v46 = vcombine.high %v440_v43, %v444_v44 }
  0x75   : > { %2902 = vmatpush1.bf16.msra.mxu0 %v7412_v45  ;;  %v6322_v45 = vcombine.low %v432_v39, %v436_v40  ;;  %v7436_v39 = vld [vmem:[%s10013_s1 + $0x30] sm:$0xff]   ;;  %v7422_v40 = vld [vmem:[%s10013_s1 + $0x188] sm:$0xff]  }
  0x76   : > { %2903 = vmatprep.subr.bf16.mxu0 %v7496_v3 }
  0x78   : > { %2672 = vmatmul.mubr.bf16.gmra.mrb[16].mxu0 %v6250_v48  ;;  %v452_v48 = vld [vmem:[%s7571_s15 + $0x3e8] sm:$0xff] }
  0x79   : > { %2679 = vmatprep.mubr.bf16.mxu0 %v6259_v49  ;;  %2904 = vmatpush1.bf16.msra.mxu0 %v7413_v50  ;;  %v6330_v49 = vcombine.low %v440_v43, %v444_v44  ;;  %v6339_v50 = vcombine.high %v448_v47, %v452_v48  ;;  %v6338_v53 = vcombine.low %v448_v47, %v452_v48  ;;  %v7437_v43 = vld [vmem:[%s10013_s1 + $0x38] sm:$0xff]   ;;  %v7438_v47 = vld [vmem:[%s10013_s1 + $0x40] sm:$0xff]  }
  0x7a   : > { %2905 = vmatprep.subr.bf16.mxu0 %v7496_v3  ;;  %v7424_v48 = vld [vmem:[%s10013_s1 + $0x198] sm:$0xff]  }
  0x7d   : > { %2906 = vmatpush1.bf16.msra.mxu0 %v7414_v51  ;;  %v456_v51 = vld [vmem:[%s7571_s15 + $0x408] sm:$0xff] }
  0x7e   : > { %2907 = vmatprep.subr.bf16.mxu0 %v7496_v3 }
  0x80   : > { %2680 = vmatmul.mubr.bf16.gmra.mrb[20].mxu0 %v6258_v54  ;;  %v6347_v54 = vcombine.high %v456_v51, %v460_v52 }
  0x81   : > { %2687 = vmatprep.mubr.bf16.mxu0 %v6267_v55  ;;  %2908 = vmatpush1.bf16.msra.mxu0 %v7415_v56  ;;  %v464_v55 = vld [vmem:[%s7571_s15 + $0x448] sm:$0xff] }
  0x82   : > { %2909 = vmatprep.subr.bf16.mxu0 %v7496_v3  ;;  %v468_v56 = vld [vmem:[%s7571_s15 + $0x468] sm:$0xff] }
  0x83   : > { %v6355_v58 = vcombine.high %v464_v55, %v468_v56 }
  0x85   : > { %2910 = vmatpush1.bf16.msra.mxu0 %v7416_v57  ;;  %v6346_v57 = vcombine.low %v456_v51, %v460_v52  ;;  %v7439_v51 = vld [vmem:[%s10013_s1 + $0x48] sm:$0xff]  }
  0x86   : > { %2911 = vmatprep.subr.bf16.mxu0 %v7496_v3 }
  0x88   : > { %2688 = vmatmul.mubr.bf16.gmra.mrb[24].mxu0 %v6266_v60  ;;  %v476_v60 = vld [vmem:[%s7571_s15 + $0x4a8] sm:$0xff] }
  0x89   : > { %2695 = vmatprep.mubr.bf16.mxu0 %v6275_v61  ;;  %2912 = vmatpush1.bf16.msra.mxu0 %v7417_v62  ;;  %v6354_v61 = vcombine.low %v464_v55, %v468_v56  ;;  %v6363_v62 = vcombine.high %v472_v59, %v476_v60  ;;  %v6362_v1 = vcombine.low %v472_v59, %v476_v60  ;;  %v7441_v55 = vld [vmem:[%s10013_s1 + $0x50] sm:$0xff]   ;;  %v7426_v56 = vld [vmem:[%s10013_s1 + $0x1a8] sm:$0xff]   ;;  %v7442_v59 = vld [vmem:[%s10013_s1 + $0x58] sm:$0xff]  }
  0x8a   : > { %2913 = vmatprep.subr.bf16.mxu0 %v7496_v3 }
  0x8d   : > { %2914 = vmatpush1.bf16.msra.mxu0 %v7418_v63  ;;  %v480_v63 = vld [vmem:[%s7571_s15 + $0x4c8] sm:$0xff] }
  0x8e   : > { %2915 = vmatprep.subr.bf16.mxu0 %v7496_v3  ;;  %v6370_v24 = vcombine.low %v480_v63, %v484_v0 }
  0x90   : > { %2696 = vmatmul.mubr.bf16.gmra.mrb[28].mxu0 %v6274_v8  ;;  %v6371_v8 = vcombine.high %v480_v63, %v484_v0  ;;  %v7443_v63 = vld [vmem:[%s10013_s1 + $0x60] sm:$0xff]   ;;  %v7430_v0 = vld [vmem:[%s10013_s1 + $0x1b8] sm:$0xff]  }
  0x91   : > { %2703 = vmatprep.mubr.bf16.mxu0 %v6283_v9  ;;  %2916 = vmatpush1.bf16.msra.mxu0 %v7419_v10  ;;  %v7428_v9 = vld [vmem:[%s10013_s1] sm:$0xff]   ;;  %v7429_v10 = vld [vmem:[%s10013_s1 + $0x8] sm:$0xff]  }
  0x92   : > { %2917 = vmatprep.subr.bf16.mxu0 %v7496_v3  ;;  %2328 = vmatpush1.bf16.msra.mxu1 %v7428_v9  ;;  %v7445_v9 = vld [vmem:[%s10013_s1 + $0x68] sm:$0xff]  }
  0x93   : > { %2329 = vmatprep.subr.bf16.mxu1 %v7496_v3 }
  0x95   : > { %2918 = vmatpush1.bf16.msra.mxu0 %v7420_v22  ;;  %v488_v22 = vld [vmem:[%s7571_s15 + $0x508] sm:$0xff] }
  0x96   : > { %3167 = vmatprep.subr.bf16.mxu0 %v7496_v3  ;;  %2330 = vmatpush1.bf16.msra.mxu1 %v7429_v10 }
  0x97   : > { %2331 = vmatprep.subr.bf16.mxu1 %v7496_v3 }
  0x98   : > { %2704 = vmatmul.mubr.bf16.gmra.mrb[32].mxu0 %v6282_v25  ;;  %v6379_v25 = vcombine.high %v488_v22, %v492_v23 }
  0x99   : > { %2711 = vmatprep.mubr.bf16.mxu0 %v6291_v26  ;;  %v7431_v26 = vld [vmem:[%s10013_s1 + $0x10] sm:$0xff]  }
  0x9a   : > { %2332 = vmatpush1.bf16.msra.mxu1 %v7431_v26  ;;  %v331_v26 = vld [vmem:[%s7571_s15 + $0x20] sm:$0xff] }
  0x9b   : > { %2333 = vmatprep.subr.bf16.mxu1 %v7496_v3 }
  0x9e   : > { %2334 = vmatpush1.bf16.msra.mxu1 %v7432_v27  ;;  %v7440_v27 = vld [vmem:[%s10013_s1 + $0x1c8] sm:$0xff]  }
  0x9f   : > { %2335 = vmatprep.subr.bf16.mxu1 %v7496_v3 }
  0xa0   : > { %2712 = vmatmul.mubr.bf16.gmra.mrb[36].mxu0 %v6290_v29  ;;  %v333_v29 = vld [vmem:[%s7571_s15 + $0x30] sm:$0xff] }
  0xa1   : > { %2719 = vmatprep.mubr.bf16.mxu0 %v6299_v30  ;;  %v6378_v30 = vcombine.low %v488_v22, %v492_v23  ;;  %v6221_v31 = vcombine.high %v329_v28, %v333_v29  ;;  %v6220_v36 = vcombine.low %v329_v28, %v333_v29  ;;  %v7435_v23 = vld [vmem:[%s10013_s1 + $0x1c0] sm:$0xff]   ;;  %v377_v29 = vld [vmem:[%s7571_s15 + $0x190] sm:$0xff] }
  0xa2   : > { %2336 = vmatpush1.bf16.msra.mxu1 %v7433_v32 }
  0xa3   : > { %2337 = vmatprep.subr.bf16.mxu1 %v7496_v3 }
  0xa8   : > { %2720 = vmatmul.mubr.bf16.gmra.mrb[40].mxu0 %v6298_v33  ;;  %v7434_v33 = vld [vmem:[%s10013_s1 + $0x28] sm:$0xff]  }
  0xa9   : > { %2727 = vmatprep.mubr.bf16.mxu0 %v6307_v34  ;;  %v337_v34 = vld [vmem:[%s7571_s15 + $0x50] sm:$0xff]  ;;  %2338 = vmatpush1.bf16.msra.mxu1 %v7434_v33 }
  0xaa   : > { %2339 = vmatprep.subr.bf16.mxu1 %v7496_v3  ;;  %v6228_v44 = vcombine.low %v337_v34, %v341_v35 }
  0xad   : > { %2340 = vmatpush1.bf16.msra.mxu1 %v7436_v39 }
  0xae   : > { %2341 = vmatprep.subr.bf16.mxu1 %v7496_v3 }
  0xb0   : > { %2728 = vmatmul.mubr.bf16.gmra.mrb[44].mxu0 %v6306_v37  ;;  %v7421_v37 = vld [vmem:[%s10013_s1 + $0x180] sm:$0xff]  }
  0xb1   : > { %2735 = vmatprep.mubr.bf16.mxu0 %v6315_v38  ;;  %v6229_v38 = vcombine.high %v337_v34, %v341_v35  ;;  %2342 = vmatpush1.bf16.msra.mxu1 %v7437_v43  ;;  %v7444_v34 = vld [vmem:[%s10013_s1 + $0x1d0] sm:$0xff]  }
  0xb2   : > { %2343 = vmatprep.subr.bf16.mxu1 %v7496_v3 }
  0xb5   : > { %2344 = vmatpush1.bf16.msra.mxu1 %v7438_v47 }
  0xb6   : > { %2345 = vmatprep.subr.bf16.mxu1 %v7496_v3 }
  0xb8   : > { %2736 = vmatmul.mubr.bf16.gmra.mrb[48].mxu0 %v6314_v41  ;;  %v345_v41 = vld [vmem:[%s7571_s15 + $0x90] sm:$0xff] }
  0xb9   : > { %2743 = vmatprep.mubr.bf16.mxu0 %v6323_v42  ;;  %v349_v42 = vld [vmem:[%s7571_s15 + $0xb0] sm:$0xff]  ;;  %2346 = vmatpush1.bf16.msra.mxu1 %v7439_v51  ;;  %v7449_v51 = vld [vmem:[%s10013_s1 + $0x1e0] sm:$0xff]  }
  0xba   : > { %v6236_v52 = vcombine.low %v345_v41, %v349_v42  ;;  %2347 = vmatprep.subr.bf16.mxu1 %v7496_v3 }
  0xbd   : > { %2348 = vmatpush1.bf16.msra.mxu1 %v7441_v55  ;;  %v405_v55 = vld [vmem:[%s7571_s15 + $0x270] sm:$0xff] }
  0xbe   : > { %2349 = vmatprep.subr.bf16.mxu1 %v7496_v3 }
  0xc0   : > { %2744 = vmatmul.mubr.bf16.gmra.mrb[52].mxu0 %v6322_v45  ;;  %v6237_v45 = vcombine.high %v345_v41, %v349_v42  ;;  %v389_v41 = vld [vmem:[%s7571_s15 + $0x1f0] sm:$0xff] }
  0xc1   : > { %2751 = vmatprep.mubr.bf16.mxu0 %v6331_v46  ;;  %v7423_v46 = vld [vmem:[%s10013_s1 + $0x190] sm:$0xff]   ;;  %2350 = vmatpush1.bf16.msra.mxu1 %v7442_v59  ;;  %v363_v59 = vld [vmem:[%s7571_s15 + $0x120] sm:$0xff] }
  0xc2   : > { %2351 = vmatprep.subr.bf16.mxu1 %v7496_v3 }
  0xc5   : > { %2352 = vmatpush1.bf16.msra.mxu1 %v7443_v63 }
  0xc6   : > { %2353 = vmatprep.subr.bf16.mxu1 %v7496_v3 }
  0xc8   : > { %2752 = vmatmul.mubr.bf16.gmra.mrb[56].mxu0 %v6330_v49  ;;  %v353_v49 = vld [vmem:[%s7571_s15 + $0xd0] sm:$0xff] }
  0xc9   : > { %2759 = vmatprep.mubr.bf16.mxu0 %v6339_v50  ;;  %v357_v50 = vld [vmem:[%s7571_s15 + $0xf0] sm:$0xff]  ;;  %2354 = vmatpush1.bf16.msra.mxu1 %v7445_v9 }
  0xca   : > { %v6244_v60 = vcombine.low %v353_v49, %v357_v50  ;;  %2355 = vmatprep.subr.bf16.mxu1 %v7496_v3 }
  0xd0   : > { %2760 = vmatmul.mubr.bf16.gmra.mrb[60].mxu0 %v6338_v53  ;;  %v6245_v53 = vcombine.high %v353_v49, %v357_v50 }
  0xd1   : > { %2767 = vmatprep.mubr.bf16.mxu0 %v6347_v54  ;;  %v7425_v54 = vld [vmem:[%s10013_s1 + $0x1a0] sm:$0xff]  }
  0xd8   : > { %2768 = vmatmul.mubr.bf16.gmra.mrb[64].mxu0 %v6346_v57  ;;  %v361_v57 = vld [vmem:[%s7571_s15 + $0x110] sm:$0xff] }
  0xd9   : > { %2775 = vmatprep.mubr.bf16.mxu0 %v6355_v58  ;;  %v365_v58 = vld [vmem:[%s7571_s15 + $0x130] sm:$0xff] }
  0xda   : > { %v6252_v10 = vcombine.low %v361_v57, %v365_v58 }
  0xe0   : > { %2776 = vmatmul.mubr.bf16.gmra.mrb[68].mxu0 %v6354_v61  ;;  %v6253_v61 = vcombine.high %v361_v57, %v365_v58  ;;  %v359_v58 = vld [vmem:[%s7571_s15 + $0x100] sm:$0xff] }
  0xe1   : > { %2783 = vmatprep.mubr.bf16.mxu0 %v6363_v62  ;;  %v7427_v62 = vld [vmem:[%s10013_s1 + $0x1b0] sm:$0xff]  }
  0xe8   : > { %2784 = vmatmul.mubr.bf16.gmra.mrb[72].mxu0 %v6362_v1  ;;  %v369_v1 = vld [vmem:[%s7571_s15 + $0x150] sm:$0xff] }
  0xe9   : > { %2791 = vmatprep.mubr.bf16.mxu0 %v6371_v8  ;;  %v373_v8 = vld [vmem:[%s7571_s15 + $0x170] sm:$0xff] }
  0xea   : > { %v6261_v22 = vcombine.high %v369_v1, %v373_v8  ;;  %v6260_v32 = vcombine.low %v369_v1, %v373_v8  ;;  %v367_v1 = vld [vmem:[%s7571_s15 + $0x140] sm:$0xff] }
  0xeb   : > { %v371_v8 = vld [vmem:[%s7571_s15 + $0x160] sm:$0xff] }
  0xec   : > { %v6257_v9 = vcombine.high %v367_v1, %v371_v8 }
  0xf0   : > { %2792 = vmatmul.mubr.bf16.gmra.mrb[76].mxu0 %v6370_v24  ;;  %v7446_v24 = vld [vmem:[%s10013_s1 + $0x70] sm:$0xff]  }
  0xf1   : > { %2799 = vmatprep.mubr.bf16.mxu0 %v6379_v25  ;;  %v327_v25 = vld [vmem:[%s7571_s15] sm:$0xff]  ;;  %2356 = vmatpush1.bf16.msra.mxu1 %v7446_v24 }
  0xf2   : > { %v6217_v28 = vcombine.high %v327_v25, %v331_v26  ;;  %2357 = vmatprep.subr.bf16.mxu1 %v7496_v3  ;;  %v6216_v35 = vcombine.low %v327_v25, %v331_v26  ;;  %v375_v24 = vld [vmem:[%s7571_s15 + $0x180] sm:$0xff] }
  0xf3   : > { %v379_v25 = vld [vmem:[%s7571_s15 + $0x1a0] sm:$0xff] }
  0xf4   : > { %2359 = vmatprep.mubr.bf16.mxu1 %v6217_v28  ;;  %v6265_v26 = vcombine.high %v375_v24, %v379_v25  ;;  %v429_v28 = vld [vmem:[%s7571_s15 + $0x330] sm:$0xff] }
  0xf8   : > { %2800 = vmatmul.mubr.bf16.gmra.mrb[80].mxu0 %v6378_v30  ;;  %v381_v30 = vld [vmem:[%s7571_s15 + $0x1b0] sm:$0xff] }
  0xf9   : > { %2919 = vmatprep.mubr.bf16.mxu0 %v6221_v31  ;;  %v7447_v31 = vld [vmem:[%s10013_s1 + $0x78] sm:$0xff]   ;;  %v6269_v33 = vcombine.high %v377_v29, %v381_v30  ;;  %v6268_v42 = vcombine.low %v377_v29, %v381_v30  ;;  %v6264_v30 = vcombine.low %v375_v24, %v379_v25 }
  0xfa   : > { %2358 = vmatpush1.bf16.msra.mxu1 %v7447_v31  ;;  %v383_v31 = vld [vmem:[%s7571_s15 + $0x1c0] sm:$0xff] }
  0xfb   : > { %7021 = vmatprep.subr.bf16.mxu1 %v7496_v3 }
  0xfd   : > { %2360 = vmatmul.mubr.bf16.vlgmr.msra.gmra.mrb[0].mxu1 %v6216_v35 }
  0xfe   : > { %7037 = vmatpush1.bf16.msra.mxu1 %v7577_v2  ;;  %v393_v2 = vld [vmem:[%s7571_s15 + $0x210] sm:$0xff] }
  0xff   : > { %7022 = vmatprep.subr.bf16.mxu1 %v7496_v3 }
 0x100   : > { %2920 = vmatmul.mubr.bf16.vlgmr.msra.gmra.mrb[0].mxu0 %v6220_v36  ;;  %v335_v36 = vld [vmem:[%s7571_s15 + $0x40] sm:$0xff] }
 0x101   : > { %3168 = vmatpush1.bf16.msra.mxu0 %v7421_v37  ;;  %2927 = vmatprep.mubr.bf16.mxu0 %v6229_v38  ;;  %v339_v37 = vld [vmem:[%s7571_s15 + $0x60] sm:$0xff]  ;;  %v7448_v38 = vld [vmem:[%s10013_s1 + $0x1d8] sm:$0xff]  }
 0x102   : > { %3169 = vmatprep.subr.bf16.mxu0 %v7496_v3  ;;  %v6225_v39 = vcombine.high %v335_v36, %v339_v37  ;;  %7038 = vmatpush1.bf16.msra.mxu1 %v7585_v4 }
 0x103   : > { %7023 = vmatprep.subr.bf16.mxu1 %v7496_v3 }
 0x104   : > { %2367 = vmatprep.mubr.bf16.mxu1 %v6225_v39 }
 0x105   : > { %3170 = vmatpush1.bf16.msra.mxu0 %v7422_v40  ;;  %v385_v40 = vld [vmem:[%s7571_s15 + $0x1d0] sm:$0xff] }
 0x106   : > { %3171 = vmatprep.subr.bf16.mxu0 %v7496_v3  ;;  %v6277_v43 = vcombine.high %v385_v40, %v389_v41  ;;  %7039 = vmatpush1.bf16.msra.mxu1 %v7592_v5  ;;  %v6276_v49 = vcombine.low %v385_v40, %v389_v41  ;;  %v441_v40 = vld [vmem:[%s7571_s15 + $0x390] sm:$0xff] }
 0x107   : > { %7024 = vmatprep.subr.bf16.mxu1 %v7496_v3  ;;  %v445_v41 = vld [vmem:[%s7571_s15 + $0x3b0] sm:$0xff] }
 0x108   : > { %2928 = vmatmul.mubr.bf16.gmra.mrb[4].mxu0 %v6228_v44  ;;  %v6224_v44 = vcombine.low %v335_v36, %v339_v37  ;;  %v391_v37 = vld [vmem:[%s7571_s15 + $0x200] sm:$0xff] }
 0x109   : > { %2935 = vmatprep.mubr.bf16.mxu0 %v6237_v45  ;;  %3172 = vmatpush1.bf16.msra.mxu0 %v7423_v46  ;;  %v343_v45 = vld [vmem:[%s7571_s15 + $0x80] sm:$0xff] }
 0x10a   : > { %3173 = vmatprep.subr.bf16.mxu0 %v7496_v3  ;;  %v347_v46 = vld [vmem:[%s7571_s15 + $0xa0] sm:$0xff]  ;;  %2368 = vmatmul.mubr.bf16.gmra.mrb[4].mxu1 %v6224_v44 }
 0x10b   : > { %v6233_v47 = vcombine.high %v343_v45, %v347_v46  ;;  %v6232_v50 = vcombine.low %v343_v45, %v347_v46  ;;  %7040 = vmatpush1.bf16.msra.mxu1 %v7599_v6  ;;  %v399_v44 = vld [vmem:[%s7571_s15 + $0x240] sm:$0xff] }
 0x10c   : > { %7025 = vmatprep.subr.bf16.mxu1 %v7496_v3  ;;  %v403_v45 = vld [vmem:[%s7571_s15 + $0x260] sm:$0xff] }
 0x10d   : > { %3174 = vmatpush1.bf16.msra.mxu0 %v7424_v48  ;;  %v397_v48 = vld [vmem:[%s7571_s15 + $0x230] sm:$0xff]  ;;  %2375 = vmatprep.mubr.bf16.mxu1 %v6233_v47  ;;  %v6289_v46 = vcombine.high %v399_v44, %v403_v45 }
 0x10e   : > { %3175 = vmatprep.subr.bf16.mxu0 %v7496_v3  ;;  %v6285_v4 = vcombine.high %v393_v2, %v397_v48  ;;  %v6284_v6 = vcombine.low %v393_v2, %v397_v48  ;;  %v453_v47 = vld [vmem:[%s7571_s15 + $0x3f0] sm:$0xff]  ;;  %v6288_v48 = vcombine.low %v399_v44, %v403_v45  ;;  %v463_v44 = vld [vmem:[%s7571_s15 + $0x440] sm:$0xff] }
 0x10f   : > { %7041 = vmatpush1.bf16.msra.mxu1 %v7606_v7  ;;  %v467_v45 = vld [vmem:[%s7571_s15 + $0x460] sm:$0xff] }
 0x110   : > { %2936 = vmatmul.mubr.bf16.gmra.mrb[8].mxu0 %v6236_v52  ;;  %v351_v52 = vld [vmem:[%s7571_s15 + $0xc0] sm:$0xff]  ;;  %7026 = vmatprep.subr.bf16.mxu1 %v7496_v3 }
 0x111   : > { %2943 = vmatprep.mubr.bf16.mxu0 %v6245_v53  ;;  %3176 = vmatpush1.bf16.msra.mxu0 %v7425_v54  ;;  %v355_v53 = vld [vmem:[%s7571_s15 + $0xe0] sm:$0xff]  ;;  %v401_v54 = vld [vmem:[%s7571_s15 + $0x250] sm:$0xff] }
 0x112   : > { %3177 = vmatprep.subr.bf16.mxu0 %v7496_v3  ;;  %v6241_v5 = vcombine.high %v351_v52, %v355_v53  ;;  %2376 = vmatmul.mubr.bf16.gmra.mrb[8].mxu1 %v6232_v50  ;;  %v6240_v57 = vcombine.low %v351_v52, %v355_v53  ;;  %v6292_v7 = vcombine.low %v401_v54, %v405_v55  ;;  %v457_v50 = vld [vmem:[%s7571_s15 + $0x410] sm:$0xff] }
 0x113   : > { %7042 = vmatpush1.bf16.msra.mxu1 %v7615_v11  ;;  %v7450_v11 = vld [vmem:[%s10013_s1 + $0x1e8] sm:$0xff]  }
 0x114   : > { %2383 = vmatprep.mubr.bf16.mxu1 %v6241_v5  ;;  %7027 = vmatprep.subr.bf16.mxu1 %v7496_v3 }
 0x115   : > { %3178 = vmatpush1.bf16.msra.mxu0 %v7426_v56  ;;  %v6293_v56 = vcombine.high %v401_v54, %v405_v55  ;;  %v415_v54 = vld [vmem:[%s7571_s15 + $0x2c0] sm:$0xff] }
 0x116   : > { %3179 = vmatprep.subr.bf16.mxu0 %v7496_v3  ;;  %v419_v55 = vld [vmem:[%s7571_s15 + $0x2e0] sm:$0xff] }
 0x117   : > { %7043 = vmatpush1.bf16.msra.mxu1 %v7622_v12  ;;  %v417_v12 = vld [vmem:[%s7571_s15 + $0x2d0] sm:$0xff] }
 0x118   : > { %2944 = vmatmul.mubr.bf16.gmra.mrb[12].mxu0 %v6244_v60  ;;  %v6249_v60 = vcombine.high %v359_v58, %v363_v59  ;;  %7028 = vmatprep.subr.bf16.mxu1 %v7496_v3 }
 0x119   : > { %2951 = vmatprep.mubr.bf16.mxu0 %v6253_v61  ;;  %3180 = vmatpush1.bf16.msra.mxu0 %v7427_v62  ;;  %v409_v61 = vld [vmem:[%s7571_s15 + $0x290] sm:$0xff] }
 0x11a   : > { %3181 = vmatprep.subr.bf16.mxu0 %v7496_v3  ;;  %v413_v62 = vld [vmem:[%s7571_s15 + $0x2b0] sm:$0xff]  ;;  %2384 = vmatmul.mubr.bf16.gmra.mrb[12].mxu1 %v6240_v57 }
 0x11b   : > { %2391 = vmatprep.mubr.bf16.mxu1 %v6249_v60  ;;  %v6301_v63 = vcombine.high %v409_v61, %v413_v62  ;;  %7044 = vmatpush1.bf16.msra.mxu1 %v7629_v13  ;;  %v6256_v13 = vcombine.low %v367_v1, %v371_v8  ;;  %v469_v57 = vld [vmem:[%s7571_s15 + $0x470] sm:$0xff]  ;;  %v6304_v60 = vcombine.low %v415_v54, %v419_v55 }
 0x11c   : > { %7029 = vmatprep.subr.bf16.mxu1 %v7496_v3 }
 0x11d   : > { %3182 = vmatpush1.bf16.msra.mxu0 %v7430_v0  ;;  %v6248_v0 = vcombine.low %v359_v58, %v363_v59 }
 0x11e   : > { %3183 = vmatprep.subr.bf16.mxu0 %v7496_v3 }
 0x11f   : > { %7045 = vmatpush1.bf16.msra.mxu1 %v7636_v14 }
 0x120   : > { %2952 = vmatmul.mubr.bf16.gmra.mrb[16].mxu0 %v6252_v10  ;;  %v421_v10 = vld [vmem:[%s7571_s15 + $0x2f0] sm:$0xff]  ;;  %7030 = vmatprep.subr.bf16.mxu1 %v7496_v3 }
 0x121   : > { %2959 = vmatprep.mubr.bf16.mxu0 %v6261_v22  ;;  %3184 = vmatpush1.bf16.msra.mxu0 %v7435_v23  ;;  %v6300_v22 = vcombine.low %v409_v61, %v413_v62  ;;  %v6309_v23 = vcombine.high %v417_v12, %v421_v10  ;;  %v6308_v14 = vcombine.low %v417_v12, %v421_v10  ;;  %v423_v61 = vld [vmem:[%s7571_s15 + $0x300] sm:$0xff] }
 0x122   : > { %3185 = vmatprep.subr.bf16.mxu0 %v7496_v3  ;;  %2392 = vmatmul.mubr.bf16.gmra.mrb[16].mxu1 %v6248_v0  ;;  %v427_v62 = vld [vmem:[%s7571_s15 + $0x320] sm:$0xff]  ;;  %v477_v0 = vld [vmem:[%s7571_s15 + $0x4b0] sm:$0xff] }
 0x123   : > { %2399 = vmatprep.mubr.bf16.mxu1 %v6257_v9  ;;  %7046 = vmatpush1.bf16.msra.mxu1 %v7643_v15  ;;  %v7451_v15 = vld [vmem:[%s10013_s1 + $0x1f0] sm:$0xff]   ;;  %v6312_v8 = vcombine.low %v423_v61, %v427_v62  ;;  %v431_v9 = vld [vmem:[%s7571_s15 + $0x340] sm:$0xff] }
 0x124   : > { %7031 = vmatprep.subr.bf16.mxu1 %v7496_v3  ;;  %v435_v12 = vld [vmem:[%s7571_s15 + $0x360] sm:$0xff] }
 0x125   : > { %3186 = vmatpush1.bf16.msra.mxu0 %v7440_v27  ;;  %v425_v27 = vld [vmem:[%s7571_s15 + $0x310] sm:$0xff]  ;;  %v6321_v10 = vcombine.high %v431_v9, %v435_v12  ;;  %v6320_v25 = vcombine.low %v431_v9, %v435_v12  ;;  %v495_v9 = vld [vmem:[%s7571_s15 + $0x540] sm:$0xff] }
 0x126   : > { %3187 = vmatprep.subr.bf16.mxu0 %v7496_v3  ;;  %v6317_v29 = vcombine.high %v425_v27, %v429_v28  ;;  %v6316_v35 = vcombine.low %v425_v27, %v429_v28  ;;  %v443_v27 = vld [vmem:[%s7571_s15 + $0x3a0] sm:$0xff] }
 0x127   : > { %7047 = vmatpush1.bf16.msra.mxu1 %v7649_v16  ;;  %v433_v16 = vld [vmem:[%s7571_s15 + $0x350] sm:$0xff]  ;;  %v499_v12 = vld [vmem:[%s7571_s15 + $0x560] sm:$0xff] }
 0x128   : > { %2960 = vmatmul.mubr.bf16.gmra.mrb[20].mxu0 %v6260_v32  ;;  %7032 = vmatprep.subr.bf16.mxu1 %v7496_v3  ;;  %v387_v32 = vld [vmem:[%s7571_s15 + $0x1e0] sm:$0xff] }
 0x129   : > { %2967 = vmatprep.mubr.bf16.mxu0 %v6269_v33  ;;  %3188 = vmatpush1.bf16.msra.mxu0 %v7444_v34  ;;  %v6273_v33 = vcombine.high %v383_v31, %v387_v32  ;;  %v437_v34 = vld [vmem:[%s7571_s15 + $0x370] sm:$0xff] }
 0x12a   : > { %3189 = vmatprep.subr.bf16.mxu0 %v7496_v3  ;;  %2400 = vmatmul.mubr.bf16.gmra.mrb[20].mxu1 %v6256_v13  ;;  %v6325_v36 = vcombine.high %v433_v16, %v437_v34 }
 0x12b   : > { %2407 = vmatprep.mubr.bf16.mxu1 %v6265_v26  ;;  %7048 = vmatpush1.bf16.msra.mxu1 %v7656_v17  ;;  %v6272_v17 = vcombine.low %v383_v31, %v387_v32  ;;  %v439_v26 = vld [vmem:[%s7571_s15 + $0x380] sm:$0xff] }
 0x12c   : > { %7033 = vmatprep.subr.bf16.mxu1 %v7496_v3  ;;  %v6329_v28 = vcombine.high %v439_v26, %v443_v27  ;;  %v6328_v31 = vcombine.low %v439_v26, %v443_v27  ;;  %v447_v32 = vld [vmem:[%s7571_s15 + $0x3c0] sm:$0xff] }
 0x12d   : > { %3190 = vmatpush1.bf16.msra.mxu0 %v7448_v38  ;;  %v395_v38 = vld [vmem:[%s7571_s15 + $0x220] sm:$0xff] }
 0x12e   : > { %3191 = vmatprep.subr.bf16.mxu0 %v7496_v3  ;;  %v6281_v39 = vcombine.high %v391_v37, %v395_v38  ;;  %v503_v26 = vld [vmem:[%s7571_s15 + $0x580] sm:$0xff] }
 0x12f   : > { %7049 = vmatpush1.bf16.msra.mxu1 %v7663_v18  ;;  %v6324_v18 = vcombine.low %v433_v16, %v437_v34  ;;  %v497_v34 = vld [vmem:[%s7571_s15 + $0x550] sm:$0xff]  ;;  %v507_v27 = vld [vmem:[%s7571_s15 + $0x5a0] sm:$0xff] }
 0x130   : > { %2968 = vmatmul.mubr.bf16.gmra.mrb[24].mxu0 %v6268_v42  ;;  %7034 = vmatprep.subr.bf16.mxu1 %v7496_v3  ;;  %v6333_v42 = vcombine.high %v441_v40, %v445_v41 }
 0x131   : > { %2975 = vmatprep.mubr.bf16.mxu0 %v6277_v43  ;;  %3192 = vmatpush1.bf16.msra.mxu0 %v7449_v51  ;;  %v6280_v43 = vcombine.low %v391_v37, %v395_v38  ;;  %v461_v51 = vld [vmem:[%s7571_s15 + $0x430] sm:$0xff]  ;;  %v455_v38 = vld [vmem:[%s7571_s15 + $0x400] sm:$0xff] }
 0x132   : > { %3193 = vmatprep.subr.bf16.mxu0 %v7496_v3  ;;  %2408 = vmatmul.mubr.bf16.gmra.mrb[24].mxu1 %v6264_v30  ;;  %v6349_v53 = vcombine.high %v457_v50, %v461_v51  ;;  %v6348_v58 = vcombine.low %v457_v50, %v461_v51  ;;  %v521_v50 = vld [vmem:[%s7571_s15 + $0x610] sm:$0xff] }
 0x133   : > { %2415 = vmatprep.mubr.bf16.mxu1 %v6273_v33  ;;  %7050 = vmatpush1.bf16.msra.mxu1 %v7670_v19  ;;  %v7452_v19 = vld [vmem:[%s10013_s1 + $0x1f8] sm:$0xff]   ;;  %v451_v33 = vld [vmem:[%s7571_s15 + $0x3e0] sm:$0xff]  ;;  %v525_v51 = vld [vmem:[%s7571_s15 + $0x630] sm:$0xff] }
 0x134   : > { %7035 = vmatprep.subr.bf16.mxu1 %v7496_v3  ;;  %v6337_v16 = vcombine.high %v447_v32, %v451_v33  ;;  %v6336_v37 = vcombine.low %v447_v32, %v451_v33  ;;  %v511_v32 = vld [vmem:[%s7571_s15 + $0x5c0] sm:$0xff] }
 0x135   : > { %3194 = vmatpush1.bf16.msra.mxu0 %v7450_v11  ;;  %v515_v33 = vld [vmem:[%s7571_s15 + $0x5e0] sm:$0xff] }
 0x136   : > { %3195 = vmatprep.subr.bf16.mxu0 %v7496_v3 }
 0x137   : > { %7051 = vmatpush1.bf16.msra.mxu1 %v7677_v20  ;;  %v449_v20 = vld [vmem:[%s7571_s15 + $0x3d0] sm:$0xff] }
 0x138   : > { %2976 = vmatmul.mubr.bf16.gmra.mrb[28].mxu0 %v6276_v49  ;;  %7036 = vmatprep.subr.bf16.mxu1 %v7496_v3  ;;  %v6341_v2 = vcombine.high %v449_v20, %v453_v47  ;;  %v407_v49 = vld [vmem:[%s7571_s15 + $0x280] sm:$0xff]  ;;  %v6340_v52 = vcombine.low %v449_v20, %v453_v47  ;;  %v513_v20 = vld [vmem:[%s7571_s15 + $0x5d0] sm:$0xff] }
 0x139   : > { %2983 = vmatprep.mubr.bf16.mxu0 %v6285_v4  ;;  %3196 = vmatpush1.bf16.msra.mxu0 %v7451_v15  ;;  %v411_v4 = vld [vmem:[%s7571_s15 + $0x2a0] sm:$0xff]  ;;  %v517_v47 = vld [vmem:[%s7571_s15 + $0x5f0] sm:$0xff] }
 0x13a   : > { %3197 = vmatprep.subr.bf16.mxu0 %v7496_v3  ;;  %2416 = vmatmul.mubr.bf16.gmra.mrb[28].mxu1 %v6272_v17  ;;  %v6332_v3 = vcombine.low %v441_v40, %v445_v41  ;;  %v6296_v5 = vcombine.low %v407_v49, %v411_v4  ;;  %v505_v41 = vld [vmem:[%s7571_s15 + $0x590] sm:$0xff] }
 0x13b   : > { %2423 = vmatprep.mubr.bf16.mxu1 %v6281_v39  ;;  %7052 = vmatpush1.bf16.msra.mxu1 %v7684_v21  ;;  %v6297_v21 = vcombine.high %v407_v49, %v411_v4  ;;  %v459_v39 = vld [vmem:[%s7571_s15 + $0x420] sm:$0xff] }
 0x13c   : > { %v6345_v40 = vcombine.high %v455_v38, %v459_v39  ;;  %v471_v49 = vld [vmem:[%s7571_s15 + $0x480] sm:$0xff] }
 0x13d   : > { %3198 = vmatpush1.bf16.msra.mxu0 %v7452_v19  ;;  %v6344_v19 = vcombine.low %v455_v38, %v459_v39  ;;  %v475_v4 = vld [vmem:[%s7571_s15 + $0x4a0] sm:$0xff] }
 0x13e   : > { %v519_v38 = vld [vmem:[%s7571_s15 + $0x600] sm:$0xff] }
 0x13f   : > { %v523_v39 = vld [vmem:[%s7571_s15 + $0x620] sm:$0xff] }
 0x140   : > { %2984 = vmatmul.mubr.bf16.gmra.mrb[32].mxu0 %v6284_v6  ;;  %v6305_v6 = vcombine.high %v415_v54, %v419_v55  ;;  %v479_v54 = vld [vmem:[%s7571_s15 + $0x4c0] sm:$0xff] }
 0x141   : > { %2991 = vmatprep.mubr.bf16.mxu0 %v6293_v56  ;;  %v465_v56 = vld [vmem:[%s7571_s15 + $0x450] sm:$0xff]  ;;  %v483_v55 = vld [vmem:[%s7571_s15 + $0x4e0] sm:$0xff] }
 0x142   : > { %2424 = vmatmul.mubr.bf16.gmra.mrb[32].mxu1 %v6280_v43  ;;  %v6357_v59 = vcombine.high %v465_v56, %v469_v57  ;;  %v6356_v11 = vcombine.low %v465_v56, %v469_v57  ;;  %v529_v56 = vld [vmem:[%s7571_s15 + $0x650] sm:$0xff] }
 0x143   : > { %2431 = vmatprep.mubr.bf16.mxu1 %v6289_v46  ;;  %v6353_v46 = vcombine.high %v463_v44, %v467_v45  ;;  %v533_v57 = vld [vmem:[%s7571_s15 + $0x670] sm:$0xff] }
 0x148   : > { %2992 = vmatmul.mubr.bf16.gmra.mrb[36].mxu0 %v6292_v7  ;;  %v6313_v7 = vcombine.high %v423_v61, %v427_v62  ;;  %v487_v61 = vld [vmem:[%s7571_s15 + $0x500] sm:$0xff] }
 0x149   : > { %2999 = vmatprep.mubr.bf16.mxu0 %v6301_v63  ;;  %v473_v63 = vld [vmem:[%s7571_s15 + $0x490] sm:$0xff]  ;;  %v491_v62 = vld [vmem:[%s7571_s15 + $0x520] sm:$0xff] }
 0x14a   : > { %2432 = vmatmul.mubr.bf16.gmra.mrb[36].mxu1 %v6288_v48  ;;  %v6365_v1 = vcombine.high %v473_v63, %v477_v0  ;;  %v6364_v13 = vcombine.low %v473_v63, %v477_v0  ;;  %v6352_v48 = vcombine.low %v463_v44, %v467_v45  ;;  %v537_v63 = vld [vmem:[%s7571_s15 + $0x690] sm:$0xff]  ;;  %v527_v44 = vld [vmem:[%s7571_s15 + $0x640] sm:$0xff] }
 0x14b   : > { %2439 = vmatprep.mubr.bf16.mxu1 %v6297_v21  ;;  %v6361_v21 = vcombine.high %v471_v49, %v475_v4  ;;  %v541_v0 = vld [vmem:[%s7571_s15 + $0x6b0] sm:$0xff]  ;;  %v531_v45 = vld [vmem:[%s7571_s15 + $0x660] sm:$0xff] }
 0x150   : > { %3000 = vmatmul.mubr.bf16.gmra.mrb[40].mxu0 %v6300_v22  ;;  %v481_v22 = vld [vmem:[%s7571_s15 + $0x4d0] sm:$0xff] }
 0x151   : > { %3007 = vmatprep.mubr.bf16.mxu0 %v6309_v23  ;;  %v485_v23 = vld [vmem:[%s7571_s15 + $0x4f0] sm:$0xff] }
 0x152   : > { %2440 = vmatmul.mubr.bf16.gmra.mrb[40].mxu1 %v6296_v5  ;;  %v6373_v24 = vcombine.high %v481_v22, %v485_v23  ;;  %v6372_v30 = vcombine.low %v481_v22, %v485_v23  ;;  %v6360_v5 = vcombine.low %v471_v49, %v475_v4  ;;  %v545_v22 = vld [vmem:[%s7571_s15 + $0x6d0] sm:$0xff]  ;;  %v535_v49 = vld [vmem:[%s7571_s15 + $0x680] sm:$0xff] }
 0x153   : > { %2447 = vmatprep.mubr.bf16.mxu1 %v6305_v6  ;;  %v6369_v6 = vcombine.high %v479_v54, %v483_v55  ;;  %v549_v23 = vld [vmem:[%s7571_s15 + $0x6f0] sm:$0xff]  ;;  %v539_v4 = vld [vmem:[%s7571_s15 + $0x6a0] sm:$0xff] }
 0x158   : > { %3008 = vmatmul.mubr.bf16.gmra.mrb[44].mxu0 %v6308_v14  ;;  %v489_v14 = vld [vmem:[%s7571_s15 + $0x510] sm:$0xff] }
 0x159   : > { %3015 = vmatprep.mubr.bf16.mxu0 %v6317_v29  ;;  %v493_v29 = vld [vmem:[%s7571_s15 + $0x530] sm:$0xff] }
 0x15a   : > { %2448 = vmatmul.mubr.bf16.gmra.mrb[44].mxu1 %v6304_v60  ;;  %v6381_v15 = vcombine.high %v489_v14, %v493_v29  ;;  %v6368_v60 = vcombine.low %v479_v54, %v483_v55  ;;  %v543_v54 = vld [vmem:[%s7571_s15 + $0x6c0] sm:$0xff] }
 0x15b   : > { %2455 = vmatprep.mubr.bf16.mxu1 %v6313_v7  ;;  %v6377_v7 = vcombine.high %v487_v61, %v491_v62  ;;  %v547_v55 = vld [vmem:[%s7571_s15 + $0x6e0] sm:$0xff] }
 0x160   : > { %3016 = vmatmul.mubr.bf16.gmra.mrb[48].mxu0 %v6316_v35  ;;  %v501_v35 = vld [vmem:[%s7571_s15 + $0x570] sm:$0xff] }
 0x161   : > { %3023 = vmatprep.mubr.bf16.mxu0 %v6325_v36  ;;  %v6380_v36 = vcombine.low %v489_v14, %v493_v29  ;;  %v6389_v17 = vcombine.high %v497_v34, %v501_v35  ;;  %v553_v14 = vld [vmem:[%s7571_s15 + $0x710] sm:$0xff] }
 0x162   : > { %2456 = vmatmul.mubr.bf16.gmra.mrb[48].mxu1 %v6312_v8  ;;  %v6376_v8 = vcombine.low %v487_v61, %v491_v62  ;;  %v557_v29 = vld [vmem:[%s7571_s15 + $0x730] sm:$0xff]  ;;  %v551_v61 = vld [vmem:[%s7571_s15 + $0x700] sm:$0xff] }
 0x163   : > { %2463 = vmatprep.mubr.bf16.mxu1 %v6321_v10  ;;  %v6385_v10 = vcombine.high %v495_v9, %v499_v12  ;;  %v555_v62 = vld [vmem:[%s7571_s15 + $0x720] sm:$0xff] }
 0x168   : > { %3024 = vmatmul.mubr.bf16.gmra.mrb[52].mxu0 %v6324_v18  ;;  %v509_v18 = vld [vmem:[%s7571_s15 + $0x5b0] sm:$0xff] }
 0x169   : > { %3031 = vmatprep.mubr.bf16.mxu0 %v6333_v42  ;;  %v6388_v42 = vcombine.low %v497_v34, %v501_v35  ;;  %v6397_v43 = vcombine.high %v505_v41, %v509_v18  ;;  %v561_v34 = vld [vmem:[%s7571_s15 + $0x750] sm:$0xff] }
 0x16a   : > { %2464 = vmatmul.mubr.bf16.gmra.mrb[52].mxu1 %v6320_v25  ;;  %v6384_v25 = vcombine.low %v495_v9, %v499_v12  ;;  %v565_v35 = vld [vmem:[%s7571_s15 + $0x770] sm:$0xff]  ;;  %v559_v9 = vld [vmem:[%s7571_s15 + $0x740] sm:$0xff] }
 0x16b   : > { %2471 = vmatprep.mubr.bf16.mxu1 %v6329_v28  ;;  %v6393_v28 = vcombine.high %v503_v26, %v507_v27  ;;  %v563_v12 = vld [vmem:[%s7571_s15 + $0x760] sm:$0xff] }
 0x170   : > { %3032 = vmatmul.mubr.bf16.gmra.mrb[56].mxu0 %v6332_v3  ;;  %v6396_v3 = vcombine.low %v505_v41, %v509_v18  ;;  %v569_v41 = vld [vmem:[%s7571_s15 + $0x790] sm:$0xff] }
 0x171   : > { %3039 = vmatprep.mubr.bf16.mxu0 %v6341_v2  ;;  %v6405_v2 = vcombine.high %v513_v20, %v517_v47  ;;  %v573_v18 = vld [vmem:[%s7571_s15 + $0x7b0] sm:$0x11] }
 0x172   : > { %2472 = vmatmul.mubr.bf16.gmra.mrb[56].mxu1 %v6328_v31  ;;  %v6392_v31 = vcombine.low %v503_v26, %v507_v27  ;;  %v567_v26 = vld [vmem:[%s7571_s15 + $0x780] sm:$0xff] }
 0x173   : > { %2479 = vmatprep.mubr.bf16.mxu1 %v6337_v16  ;;  %v6401_v16 = vcombine.high %v511_v32, %v515_v33  ;;  %v571_v27 = vld [vmem:[%s7571_s15 + $0x7a0] sm:$0x11] }
 0x178   : > { %3040 = vmatmul.mubr.bf16.gmra.mrb[60].mxu0 %v6340_v52  ;;  %v6404_v52 = vcombine.low %v513_v20, %v517_v47  ;;  %v330_v20 = vld [vmem:[%s7571_s15 + $0x18] sm:$0xff] }
 0x179   : > { %3047 = vmatprep.mubr.bf16.mxu0 %v6349_v53  ;;  %v6413_v53 = vcombine.high %v521_v50, %v525_v51  ;;  %v334_v47 = vld [vmem:[%s7571_s15 + $0x38] sm:$0xff] }
 0x17a   : > { %2480 = vmatmul.mubr.bf16.gmra.mrb[60].mxu1 %v6336_v37  ;;  %v6400_v37 = vcombine.low %v511_v32, %v515_v33  ;;  %v496_v32 = vld [vmem:[%s7571_s15 + $0x548] sm:$0xff] }
 0x17b   : > { %2487 = vmatprep.mubr.bf16.mxu1 %v6345_v40  ;;  %v6409_v40 = vcombine.high %v519_v38, %v523_v39  ;;  %v500_v33 = vld [vmem:[%s7571_s15 + $0x568] sm:$0xff] }
 0x180   : > { %3048 = vmatmul.mubr.bf16.gmra.mrb[64].mxu0 %v6348_v58  ;;  %v6412_v58 = vcombine.low %v521_v50, %v525_v51  ;;  %v338_v50 = vld [vmem:[%s7571_s15 + $0x58] sm:$0xff] }
 0x181   : > { %3055 = vmatprep.mubr.bf16.mxu0 %v6357_v59  ;;  %v6421_v59 = vcombine.high %v529_v56, %v533_v57  ;;  %v342_v51 = vld [vmem:[%s7571_s15 + $0x78] sm:$0xff] }
 0x182   : > { %2488 = vmatmul.mubr.bf16.gmra.mrb[64].mxu1 %v6344_v19  ;;  %v6408_v19 = vcombine.low %v519_v38, %v523_v39  ;;  %v504_v38 = vld [vmem:[%s7571_s15 + $0x588] sm:$0xff] }
 0x183   : > { %2495 = vmatprep.mubr.bf16.mxu1 %v6353_v46  ;;  %v6417_v46 = vcombine.high %v527_v44, %v531_v45  ;;  %v508_v39 = vld [vmem:[%s7571_s15 + $0x5a8] sm:$0xff] }
 0x188   : > { %3056 = vmatmul.mubr.bf16.gmra.mrb[68].mxu0 %v6356_v11  ;;  %v6420_v11 = vcombine.low %v529_v56, %v533_v57  ;;  %v346_v56 = vld [vmem:[%s7571_s15 + $0x98] sm:$0xff] }
 0x189   : > { %3063 = vmatprep.mubr.bf16.mxu0 %v6365_v1  ;;  %v6429_v1 = vcombine.high %v537_v63, %v541_v0  ;;  %v350_v57 = vld [vmem:[%s7571_s15 + $0xb8] sm:$0xff] }
 0x18a   : > { %2496 = vmatmul.mubr.bf16.gmra.mrb[68].mxu1 %v6352_v48  ;;  %v6416_v48 = vcombine.low %v527_v44, %v531_v45  ;;  %v512_v44 = vld [vmem:[%s7571_s15 + $0x5c8] sm:$0xff] }
 0x18b   : > { %2503 = vmatprep.mubr.bf16.mxu1 %v6361_v21  ;;  %v6425_v21 = vcombine.high %v535_v49, %v539_v4  ;;  %v516_v45 = vld [vmem:[%s7571_s15 + $0x5e8] sm:$0xff] }
 0x190   : > { %3064 = vmatmul.mubr.bf16.gmra.mrb[72].mxu0 %v6364_v13  ;;  %v6428_v13 = vcombine.low %v537_v63, %v541_v0  ;;  %v354_v63 = vld [vmem:[%s7571_s15 + $0xd8] sm:$0xff] }
 0x191   : > { %3071 = vmatprep.mubr.bf16.mxu0 %v6373_v24  ;;  %v6437_v24 = vcombine.high %v545_v22, %v549_v23  ;;  %v358_v0 = vld [vmem:[%s7571_s15 + $0xf8] sm:$0xff] }
 0x192   : > { %2504 = vmatmul.mubr.bf16.gmra.mrb[72].mxu1 %v6360_v5  ;;  %v6424_v5 = vcombine.low %v535_v49, %v539_v4  ;;  %v520_v49 = vld [vmem:[%s7571_s15 + $0x608] sm:$0xff] }
 0x193   : > { %2511 = vmatprep.mubr.bf16.mxu1 %v6369_v6  ;;  %v6433_v6 = vcombine.high %v543_v54, %v547_v55  ;;  %v524_v4 = vld [vmem:[%s7571_s15 + $0x628] sm:$0xff] }
 0x198   : > { %3072 = vmatmul.mubr.bf16.gmra.mrb[76].mxu0 %v6372_v30  ;;  %v6436_v30 = vcombine.low %v545_v22, %v549_v23  ;;  %v362_v22 = vld [vmem:[%s7571_s15 + $0x118] sm:$0xff] }
 0x199   : > { %3079 = vmatprep.mubr.bf16.mxu0 %v6381_v15  ;;  %v6445_v15 = vcombine.high %v553_v14, %v557_v29  ;;  %v366_v23 = vld [vmem:[%s7571_s15 + $0x138] sm:$0xff] }
 0x19a   : > { %2512 = vmatmul.mubr.bf16.gmra.mrb[76].mxu1 %v6368_v60  ;;  %v6432_v60 = vcombine.low %v543_v54, %v547_v55  ;;  %v528_v54 = vld [vmem:[%s7571_s15 + $0x648] sm:$0xff] }
 0x19b   : > { %2519 = vmatprep.mubr.bf16.mxu1 %v6377_v7  ;;  %v6441_v7 = vcombine.high %v551_v61, %v555_v62  ;;  %v532_v55 = vld [vmem:[%s7571_s15 + $0x668] sm:$0xff] }
 0x1a0   : > { %3080 = vmatmul.mubr.bf16.gmra.mrb[80].mxu0 %v6380_v36  ;;  %v6444_v36 = vcombine.low %v553_v14, %v557_v29  ;;  %v370_v14 = vld [vmem:[%s7571_s15 + $0x158] sm:$0xff] }
 0x1a1   : > { %3087 = vmatprep.mubr.bf16.mxu0 %v6389_v17  ;;  %v6453_v17 = vcombine.high %v561_v34, %v565_v35  ;;  %v374_v29 = vld [vmem:[%s7571_s15 + $0x178] sm:$0xff] }
 0x1a2   : > { %2520 = vmatmul.mubr.bf16.gmra.mrb[80].mxu1 %v6376_v8  ;;  %v6440_v8 = vcombine.low %v551_v61, %v555_v62  ;;  %v536_v61 = vld [vmem:[%s7571_s15 + $0x688] sm:$0xff] }
 0x1a3   : > { %2527 = vmatprep.mubr.bf16.mxu1 %v6385_v10  ;;  %v6449_v10 = vcombine.high %v559_v9, %v563_v12  ;;  %v540_v62 = vld [vmem:[%s7571_s15 + $0x6a8] sm:$0xff] }
 0x1a8   : > { %3088 = vmatmul.mubr.bf16.gmra.mrb[84].mxu0 %v6388_v42  ;;  %v6452_v42 = vcombine.low %v561_v34, %v565_v35  ;;  %v378_v34 = vld [vmem:[%s7571_s15 + $0x198] sm:$0xff] }
 0x1a9   : > { %3095 = vmatprep.mubr.bf16.mxu0 %v6397_v43  ;;  %v6461_v43 = vcombine.high %v569_v41, %v573_v18  ;;  %v382_v35 = vld [vmem:[%s7571_s15 + $0x1b8] sm:$0xff] }
 0x1aa   : > { %2528 = vmatmul.mubr.bf16.gmra.mrb[84].mxu1 %v6384_v25  ;;  %v6448_v25 = vcombine.low %v559_v9, %v563_v12 }
 0x1ab   : > { %2535 = vmatprep.mubr.bf16.mxu1 %v6393_v28  ;;  %v6457_v28 = vcombine.high %v567_v26, %v571_v27 }
 0x1b0   : > { %3096 = vmatmul.mubr.bf16.gmra.mrb[88].mxu0 %v6396_v3  ;;  %v6460_v3 = vcombine.low %v569_v41, %v573_v18  ;;  %v386_v41 = vld [vmem:[%s7571_s15 + $0x1d8] sm:$0xff] }
 0x1b1   : > { %3103 = vmatprep.mubr.bf16.mxu0 %v6405_v2  ;;  %v6223_v2 = vcombine.high %v330_v20, %v334_v47  ;;  %v390_v18 = vld [vmem:[%s7571_s15 + $0x1f8] sm:$0xff] }
 0x1b2   : > { %2536 = vmatmul.mubr.bf16.gmra.mrb[88].mxu1 %v6392_v31  ;;  %v6456_v31 = vcombine.low %v567_v26, %v571_v27  ;;  %v548_v26 = vld [vmem:[%s7571_s15 + $0x6e8] sm:$0xff] }
 0x1b3   : > { %2543 = vmatprep.mubr.bf16.mxu1 %v6401_v16  ;;  %v6387_v16 = vcombine.high %v496_v32, %v500_v33 }
 0x1b8   : > { %3104 = vmatmul.mubr.bf16.gmra.mrb[92].mxu0 %v6404_v52  ;;  %v6222_v52 = vcombine.low %v330_v20, %v334_v47  ;;  %v394_v20 = vld [vmem:[%s7571_s15 + $0x218] sm:$0xff] }
 0x1b9   : > { %3111 = vmatprep.mubr.bf16.mxu0 %v6413_v53  ;;  %v6231_v53 = vcombine.high %v338_v50, %v342_v51  ;;  %v398_v47 = vld [vmem:[%s7571_s15 + $0x238] sm:$0xff] }
 0x1ba   : > { %2544 = vmatmul.mubr.bf16.gmra.mrb[92].mxu1 %v6400_v37  ;;  %v6386_v37 = vcombine.low %v496_v32, %v500_v33  ;;  %v552_v33 = vld [vmem:[%s7571_s15 + $0x708] sm:$0xff] }
 0x1bb   : > { %2551 = vmatprep.mubr.bf16.mxu1 %v6409_v40  ;;  %v6395_v40 = vcombine.high %v504_v38, %v508_v39 }
 0x1c0   : > { %3112 = vmatmul.mubr.bf16.gmra.mrb[96].mxu0 %v6412_v58  ;;  %v6230_v58 = vcombine.low %v338_v50, %v342_v51  ;;  %v402_v50 = vld [vmem:[%s7571_s15 + $0x258] sm:$0xff] }
 0x1c1   : > { %3119 = vmatprep.mubr.bf16.mxu0 %v6421_v59  ;;  %v6239_v59 = vcombine.high %v346_v56, %v350_v57  ;;  %v406_v51 = vld [vmem:[%s7571_s15 + $0x278] sm:$0xff] }
 0x1c2   : > { %2552 = vmatmul.mubr.bf16.gmra.mrb[96].mxu1 %v6408_v19  ;;  %v6394_v19 = vcombine.low %v504_v38, %v508_v39  ;;  %v442_v38 = vld [vmem:[%s7571_s15 + $0x398] sm:$0xff] }
 0x1c3   : > { %2559 = vmatprep.mubr.bf16.mxu1 %v6417_v46  ;;  %v6403_v46 = vcombine.high %v512_v44, %v516_v45  ;;  %v446_v39 = vld [vmem:[%s7571_s15 + $0x3b8] sm:$0xff] }
 0x1c8   : > { %3120 = vmatmul.mubr.bf16.gmra.mrb[100].mxu0 %v6420_v11  ;;  %v6238_v11 = vcombine.low %v346_v56, %v350_v57  ;;  %v410_v56 = vld [vmem:[%s7571_s15 + $0x298] sm:$0xff] }
 0x1c9   : > { %3127 = vmatprep.mubr.bf16.mxu0 %v6429_v1  ;;  %v6247_v1 = vcombine.high %v354_v63, %v358_v0  ;;  %v414_v57 = vld [vmem:[%s7571_s15 + $0x2b8] sm:$0xff] }
 0x1ca   : > { %2560 = vmatmul.mubr.bf16.gmra.mrb[100].mxu1 %v6416_v48  ;;  %v6402_v48 = vcombine.low %v512_v44, %v516_v45 }
 0x1cb   : > { %2567 = vmatprep.mubr.bf16.mxu1 %v6425_v21  ;;  %v6411_v21 = vcombine.high %v520_v49, %v524_v4 }
 0x1d0   : > { %3128 = vmatmul.mubr.bf16.gmra.mrb[104].mxu0 %v6428_v13  ;;  %v6246_v13 = vcombine.low %v354_v63, %v358_v0  ;;  %v418_v63 = vld [vmem:[%s7571_s15 + $0x2d8] sm:$0xff]  ;;  %v8112_v9 = vpop.f32.mrb[0].mxu1 }
 0x1d1   : > { %3135 = vmatprep.mubr.bf16.mxu0 %v6437_v24  ;;  %v6255_v24 = vcombine.high %v362_v22, %v366_v23  ;;  %v422_v0 = vld [vmem:[%s7571_s15 + $0x2f8] sm:$0xff]  ;;  %v2363_v12 = vpop.f32.mrb[1].mxu1 }
 0x1d2   : > { %2568 = vmatmul.mubr.bf16.gmra.mrb[104].mxu1 %v6424_v5  ;;  %v6410_v5 = vcombine.low %v520_v49, %v524_v4  ;;  %v568_v4 = vld [vmem:[%s7571_s15 + $0x788] sm:$0xff]  ;;  %v474_v12 = vld [vmem:[%s7571_s15 + $0x498] sm:$0xff] }
 0x1d3   : > { %2575 = vmatprep.mubr.bf16.mxu1 %v6433_v6  ;;  %v6419_v6 = vcombine.high %v528_v54, %v532_v55 }
 0x1d8   : > { %3136 = vmatmul.mubr.bf16.gmra.mrb[108].mxu0 %v6436_v30  ;;  %v6254_v30 = vcombine.low %v362_v22, %v366_v23  ;;  %v430_v22 = vld [vmem:[%s7571_s15 + $0x338] sm:$0xff]  ;;  %v8116_v23 = vpop.f32.mrb[2].mxu1 }
 0x1d9   : > { %3143 = vmatprep.mubr.bf16.mxu0 %v6445_v15  ;;  %v6263_v15 = vcombine.high %v370_v14, %v374_v29 }
 0x1da   : > { %2576 = vmatmul.mubr.bf16.gmra.mrb[108].mxu1 %v6432_v60  ;;  %v6418_v60 = vcombine.low %v528_v54, %v532_v55  ;;  %v458_v54 = vld [vmem:[%s7571_s15 + $0x418] sm:$0xff] }
 0x1db   : > { %2583 = vmatprep.mubr.bf16.mxu1 %v6441_v7  ;;  %v6427_v7 = vcombine.high %v536_v61, %v540_v62  ;;  %v462_v55 = vld [vmem:[%s7571_s15 + $0x438] sm:$0xff] }
 0x1e0   : > { %3144 = vmatmul.mubr.bf16.gmra.mrb[112].mxu0 %v6444_v36  ;;  %v6262_v36 = vcombine.low %v370_v14, %v374_v29  ;;  %v434_v29 = vld [vmem:[%s7571_s15 + $0x358] sm:$0xff] }
 0x1e1   : > { %3151 = vmatprep.mubr.bf16.mxu0 %v6453_v17  ;;  %v6271_v17 = vcombine.high %v378_v34, %v382_v35 }
 0x1e2   : > { %2584 = vmatmul.mubr.bf16.gmra.mrb[112].mxu1 %v6440_v8  ;;  %v6426_v8 = vcombine.low %v536_v61, %v540_v62  ;;  %v466_v61 = vld [vmem:[%s7571_s15 + $0x458] sm:$0xff] }
 0x1e3   : > { %2591 = vmatprep.mubr.bf16.mxu1 %v6449_v10  ;;  %v426_v10 = vld [vmem:[%s7571_s15 + $0x318] sm:$0xff] }
 0x1e4   : > { %v6319_v27 = vcombine.high %v426_v10, %v430_v22  ;;  %v470_v62 = vld [vmem:[%s7571_s15 + $0x478] sm:$0xff] }
 0x1e8   : > { %3152 = vmatmul.mubr.bf16.gmra.mrb[116].mxu0 %v6452_v42  ;;  %v6270_v42 = vcombine.low %v378_v34, %v382_v35 }
 0x1e9   : > { %3159 = vmatprep.mubr.bf16.mxu0 %v6461_v43  ;;  %v6279_v43 = vcombine.high %v386_v41, %v390_v18 }
 0x1ea   : > { %2592 = vmatmul.mubr.bf16.gmra.mrb[116].mxu1 %v6448_v25  ;;  %v544_v25 = vld [vmem:[%s7571_s15 + $0x6c8] sm:$0xff] }
 0x1eb   : > { %2599 = vmatprep.mubr.bf16.mxu1 %v6457_v28  ;;  %v6435_v28 = vcombine.high %v544_v25, %v548_v26  ;;  %v6434_v14 = vcombine.low %v544_v25, %v548_v26 }
 0x1f0   : > { %3160 = vmatmul.mubr.bf16.gmra.mrb[120].mxu0 %v6460_v3  ;;  %v6278_v3 = vcombine.low %v386_v41, %v390_v18 }
 0x1f1   : > { %3199 = vmatprep.mubr.bf16.mxu0 %v6223_v2  ;;  %v6287_v2 = vcombine.high %v394_v20, %v398_v47 }
 0x1f2   : > { %2600 = vmatmul.mubr.bf16.gmra.mrb[120].mxu1 %v6456_v31  ;;  %v6318_v31 = vcombine.low %v426_v10, %v430_v22  ;;  %v478_v10 = vld [vmem:[%s7571_s15 + $0x4b8] sm:$0xff] }
 0x1f3   : > { %2807 = vmatprep.mubr.bf16.mxu1 %v6387_v16  ;;  %v556_v16 = vld [vmem:[%s7571_s15 + $0x728] sm:$0xff]  ;;  %v6367_v25 = vcombine.high %v474_v12, %v478_v10 }
 0x1f8   : > { %3200 = vmatmul.mubr.bf16.vlgmr.msra.gmra.mrb[0].mxu0 %v6222_v52  ;;  %v6286_v52 = vcombine.low %v394_v20, %v398_v47  ;;  %v450_v47 = vld [vmem:[%s7571_s15 + $0x3d8] sm:$0xff] }
 0x1f9   : > { %3207 = vmatprep.mubr.bf16.mxu0 %v6231_v53  ;;  %v6295_v53 = vcombine.high %v402_v50, %v406_v51 }
 0x1fa   : > { %2808 = vmatmul.mubr.bf16.vlgmr.msra.gmra.mrb[84].mxu1 %v6386_v37  ;;  %v6442_v37 = vcombine.low %v552_v33, %v556_v16 }
 0x1fb   : > { %2815 = vmatprep.mubr.bf16.mxu1 %v6395_v40 }
 0x200   : > { %3208 = vmatmul.mubr.bf16.gmra.mrb[4].mxu0 %v6230_v58  ;;  %v6294_v58 = vcombine.low %v402_v50, %v406_v51 }
 0x201   : > { %3215 = vmatprep.mubr.bf16.mxu0 %v6239_v59  ;;  %v6303_v59 = vcombine.high %v410_v56, %v414_v57 }
 0x202   : > { %2816 = vmatmul.mubr.bf16.gmra.mrb[88].mxu1 %v6394_v19  ;;  %v6335_v19 = vcombine.high %v442_v38, %v446_v39 }
 0x203   : > { %2823 = vmatprep.mubr.bf16.mxu1 %v6403_v46 }
 0x208   : > { %3216 = vmatmul.mubr.bf16.gmra.mrb[8].mxu0 %v6238_v11  ;;  %v6302_v11 = vcombine.low %v410_v56, %v414_v57 }
 0x209   : > { %3223 = vmatprep.mubr.bf16.mxu0 %v6247_v1  ;;  %v6311_v1 = vcombine.high %v418_v63, %v422_v0 }
 0x20a   : > { %2824 = vmatmul.mubr.bf16.gmra.mrb[92].mxu1 %v6402_v48  ;;  %v6334_v48 = vcombine.low %v442_v38, %v446_v39 }
 0x20b   : > { %2831 = vmatprep.mubr.bf16.mxu1 %v6411_v21  ;;  %v572_v21 = vld [vmem:[%s7571_s15 + $0x7a8] sm:$0x11] }
 0x210   : > { %3224 = vmatmul.mubr.bf16.gmra.mrb[12].mxu0 %v6246_v13  ;;  %v2366_v13 = vpop.f32.mrb[3].mxu1 }
 0x211   : > { %3231 = vmatprep.mubr.bf16.mxu0 %v6255_v24  ;;  %v6310_v24 = vcombine.low %v418_v63, %v422_v0  ;;  %v6350_v63 = vcombine.low %v458_v54, %v462_v55  ;;  %v6358_v13 = vcombine.low %v466_v61, %v470_v62 }
 0x212   : > { %2832 = vmatmul.mubr.bf16.gmra.mrb[96].mxu1 %v6410_v5  ;;  %v6458_v5 = vcombine.low %v568_v4, %v572_v21 }
 0x213   : > { %2839 = vmatprep.mubr.bf16.mxu1 %v6419_v6 }
 0x218   : > { %3232 = vmatmul.mubr.bf16.gmra.mrb[16].mxu0 %v6254_v30  ;;  %v438_v30 = vld [vmem:[%s7571_s15 + $0x378] sm:$0xff] }
 0x219   : > { %3239 = vmatprep.mubr.bf16.mxu0 %v6263_v15  ;;  %v8122_v15 = vpop.f32.mrb[4].mxu1  ;;  %v6327_v34 = vcombine.high %v434_v29, %v438_v30  ;;  %v6326_v41 = vcombine.low %v434_v29, %v438_v30  ;;  %v6366_v30 = vcombine.low %v474_v12, %v478_v10 }
 0x21a   : > { %2840 = vmatmul.mubr.bf16.gmra.mrb[100].mxu1 %v6418_v60  ;;  %v2371_v32 = vpop.f32.mrb[5].mxu1 }
 0x21b   : > { %2847 = vmatprep.mubr.bf16.mxu1 %v6427_v7  ;;  %v8126_v35 = vpop.f32.mrb[6].mxu1 }
 0x220   : > { %3240 = vmatmul.mubr.bf16.gmra.mrb[20].mxu0 %v6262_v36  ;;  %v6443_v36 = vcombine.high %v552_v33, %v556_v16 }
 0x221   : > { %3247 = vmatprep.mubr.bf16.mxu0 %v6271_v17  ;;  %v2374_v17 = vpop.f32.mrb[7].mxu1 }
 0x222   : > { %2848 = vmatmul.mubr.bf16.gmra.mrb[104].mxu1 %v6426_v8  ;;  %v8130_v40 = vpop.f32.mrb[8].mxu1 }
 0x223   : > { %2855 = vmatprep.mubr.bf16.mxu1 %v6435_v28  ;;  %v2379_v18 = vpop.f32.mrb[9].mxu1  ;;  %v482_v28 = vld [vmem:[%s7571_s15 + $0x4d8] sm:$0xff] }
 0x224   : > { %v8134_v44 = vpop.f32.mrb[10].mxu1 }
 0x225   : > { %v2382_v20 = vpop.f32.mrb[11].mxu1 }
 0x228   : > { %3248 = vmatmul.mubr.bf16.gmra.mrb[24].mxu0 %v6270_v42  ;;  %v560_v42 = vld [vmem:[%s7571_s15 + $0x748] sm:$0xff] }
 0x229   : > { %3255 = vmatprep.mubr.bf16.mxu0 %v6279_v43  ;;  %v564_v43 = vld [vmem:[%s7571_s15 + $0x768] sm:$0xff] }
 0x22a   : > { %2856 = vmatmul.mubr.bf16.gmra.mrb[108].mxu1 %v6434_v14  ;;  %v6451_v45 = vcombine.high %v560_v42, %v564_v43  ;;  %v6450_v46 = vcombine.low %v560_v42, %v564_v43  ;;  %v486_v14 = vld [vmem:[%s7571_s15 + $0x4f8] sm:$0xff] }
 0x22b   : > { %2863 = vmatprep.mubr.bf16.mxu1 %v6443_v36  ;;  %v6375_v32 = vcombine.high %v482_v28, %v486_v14  ;;  %v494_v36 = vld [vmem:[%s7571_s15 + $0x538] sm:$0xff] }
 0x22c   : > { %v498_v42 = vld [vmem:[%s7571_s15 + $0x558] sm:$0xff] }
 0x22d   : > { %v502_v43 = vld [vmem:[%s7571_s15 + $0x578] sm:$0xff] }
 0x22e   : > { %v6391_v20 = vcombine.high %v498_v42, %v502_v43 }
 0x230   : > { %3256 = vmatmul.mubr.bf16.gmra.mrb[28].mxu0 %v6278_v3  ;;  %v454_v3 = vld [vmem:[%s7571_s15 + $0x3f8] sm:$0xff] }
 0x231   : > { %3263 = vmatprep.mubr.bf16.mxu0 %v6287_v2  ;;  %v8138_v2 = vpop.f32.mrb[12].mxu1  ;;  %v6343_v50 = vcombine.high %v450_v47, %v454_v3  ;;  %v6342_v56 = vcombine.low %v450_v47, %v454_v3 }
 0x232   : > { %2864 = vmatmul.mubr.bf16.gmra.mrb[112].mxu1 %v6442_v37  ;;  %v2387_v49 = vpop.f32.mrb[13].mxu1  ;;  %v6374_v37 = vcombine.low %v482_v28, %v486_v14 }
 0x233   : > { %2871 = vmatprep.mubr.bf16.mxu1 %v6451_v45  ;;  %v8142_v51 = vpop.f32.mrb[14].mxu1  ;;  %v510_v49 = vld [vmem:[%s7571_s15 + $0x5b8] sm:$0xff] }
 0x238   : > { %3264 = vmatmul.mubr.bf16.gmra.mrb[32].mxu0 %v6286_v52  ;;  %v6459_v52 = vcombine.high %v568_v4, %v572_v21  ;;  %v6390_v21 = vcombine.low %v498_v42, %v502_v43 }
 0x239   : > { %3271 = vmatprep.mubr.bf16.mxu0 %v6295_v53  ;;  %v2390_v53 = vpop.f32.mrb[15].mxu1 }
 0x23a   : > { %2872 = vmatmul.mubr.bf16.gmra.mrb[116].mxu1 %v6450_v46  ;;  %v8146_v6 = vpop.f32.mrb[16].mxu1 }
 0x23b   : > { %2879 = vmatprep.mubr.bf16.mxu1 %v6459_v52  ;;  %v2395_v57 = vpop.f32.mrb[17].mxu1 }
 0x240   : > { %3272 = vmatmul.mubr.bf16.gmra.mrb[36].mxu0 %v6294_v58  ;;  %v6351_v58 = vcombine.high %v458_v54, %v462_v55  ;;  %v514_v54 = vld [vmem:[%s7571_s15 + $0x5d8] sm:$0xff] }
 0x241   : > { %3279 = vmatprep.mubr.bf16.mxu0 %v6303_v59  ;;  %v8148_v59 = vpop.f32.mrb[18].mxu1  ;;  %v518_v55 = vld [vmem:[%s7571_s15 + $0x5f8] sm:$0xff] }
 0x242   : > { %2880 = vmatmul.mubr.bf16.gmra.mrb[120].mxu1 %v6458_v5  ;;  %v2398_v60 = vpop.f32.mrb[19].mxu1 }
 0x243   : > { %v8152_v7 = vpop.f32.mrb[20].mxu1  ;;  %v6407_v60 = vcombine.high %v514_v54, %v518_v55 }
 0x244   : > { %v2403_v0 = vpop.f32.mrb[21].mxu1 }
 0x245   : > { %v526_v0 = vld [vmem:[%s7571_s15 + $0x638] sm:$0xff] }
 0x248   : > { %3280 = vmatmul.mubr.bf16.gmra.mrb[40].mxu0 %v6302_v11  ;;  %v6359_v11 = vcombine.high %v466_v61, %v470_v62 }
 0x249   : > { %3287 = vmatprep.mubr.bf16.mxu0 %v6311_v1  ;;  %v8154_v1 = vpop.f32.mrb[22].mxu1 }
 0x24a   : > { %v2406_v8 = vpop.f32.mrb[23].mxu1 }
 0x24b   : > { %v8158_v22 = vpop.f32.mrb[24].mxu1  ;;  %v6406_v8 = vcombine.low %v514_v54, %v518_v55 }
 0x250   : > { %3288 = vmatmul.mubr.bf16.gmra.mrb[44].mxu0 %v6310_v24  ;;  %v2411_v24 = vpop.f32.mrb[25].mxu1 }
 0x251   : > { %3295 = vmatprep.mubr.bf16.mxu0 %v6319_v27  ;;  %v8160_v26 = vpop.f32.mrb[26].mxu1 }
 0x252   : > { %v2414_v27 = vpop.f32.mrb[27].mxu1 }
 0x253   : > { %v8164_v29 = vpop.f32.mrb[28].mxu1  ;;  %v534_v27 = vld [vmem:[%s7571_s15 + $0x678] sm:$0xff] }
 0x258   : > { %3296 = vmatmul.mubr.bf16.gmra.mrb[48].mxu0 %v6318_v31  ;;  %v2419_v31 = vpop.f32.mrb[29].mxu1 }
 0x259   : > { %3303 = vmatprep.mubr.bf16.mxu0 %v6327_v34  ;;  %v8166_v33 = vpop.f32.mrb[30].mxu1  ;;  %v490_v34 = vld [vmem:[%s7571_s15 + $0x518] sm:$0xff] }
 0x25a   : > { %v2422_v16 = vpop.f32.mrb[31].mxu1  ;;  %v6383_v39 = vcombine.high %v490_v34, %v494_v36  ;;  %v6382_v45 = vcombine.low %v490_v34, %v494_v36  ;;  %v538_v34 = vld [vmem:[%s7571_s15 + $0x698] sm:$0xff] }
 0x25b   : > { %v8170_v17 = vpop.f32.mrb[32].mxu1  ;;  %v542_v36 = vld [vmem:[%s7571_s15 + $0x6b8] sm:$0xff] }
 0x25c   : > { %v2427_v38 = vpop.f32.mrb[33].mxu1 }
 0x260   : > { %3304 = vmatmul.mubr.bf16.gmra.mrb[52].mxu0 %v6326_v41  ;;  %v8172_v41 = vpop.f32.mrb[34].mxu1 }
 0x261   : > { %3311 = vmatprep.mubr.bf16.mxu0 %v6335_v19  ;;  %v2430_v18 = vpop.f32.mrb[35].mxu1 }
 0x262   : > { %v8176_v19 = vpop.f32.mrb[36].mxu1  ;;  %v6431_v18 = vcombine.high %v538_v34, %v542_v36 }
 0x263   : > { %v2435_v46 = vpop.f32.mrb[37].mxu1 }
 0x264   : > { %v8178_v47 = vpop.f32.mrb[38].mxu1  ;;  %v550_v46 = vld [vmem:[%s7571_s15 + $0x6f8] sm:$0xff] }
 0x265   : > { %v2438_v3 = vpop.f32.mrb[39].mxu1 }
 0x266   : > { %v8182_v4 = vpop.f32.mrb[40].mxu1  ;;  %v6430_v3 = vcombine.low %v538_v34, %v542_v36 }
 0x268   : > { %3312 = vmatmul.mubr.bf16.gmra.mrb[56].mxu0 %v6334_v48  ;;  %v506_v48 = vld [vmem:[%s7571_s15 + $0x598] sm:$0xff] }
 0x269   : > { %3319 = vmatprep.mubr.bf16.mxu0 %v6343_v50  ;;  %v2443_v50 = vpop.f32.mrb[41].mxu1  ;;  %v6399_v52 = vcombine.high %v506_v48, %v510_v49  ;;  %v6398_v57 = vcombine.low %v506_v48, %v510_v49 }
 0x26a   : > { %v8184_v53 = vpop.f32.mrb[42].mxu1 }
 0x26b   : > { %v2446_v5 = vpop.f32.mrb[43].mxu1 }
 0x26c   : > { %v558_v5 = vld [vmem:[%s7571_s15 + $0x738] sm:$0xff] }
 0x270   : > { %3320 = vmatmul.mubr.bf16.gmra.mrb[60].mxu0 %v6342_v56  ;;  %v8188_v56 = vpop.f32.mrb[44].mxu1 }
 0x271   : > { %3327 = vmatprep.mubr.bf16.mxu0 %v6351_v58  ;;  %v2451_v58 = vpop.f32.mrb[45].mxu1 }
 0x272   : > { %v8190_v61 = vpop.f32.mrb[46].mxu1 }
 0x273   : > { %v2454_v62 = vpop.f32.mrb[47].mxu1 }
 0x278   : > { %3328 = vmatmul.mubr.bf16.gmra.mrb[64].mxu0 %v6350_v63  ;;  %v522_v63 = vld [vmem:[%s7571_s15 + $0x618] sm:$0xff] }
 0x279   : > { %3335 = vmatprep.mubr.bf16.mxu0 %v6359_v11  ;;  %v8194_v11 = vpop.f32.mrb[48].mxu1  ;;  %v6415_v10 = vcombine.high %v522_v63, %v526_v0  ;;  %v6414_v14 = vcombine.low %v522_v63, %v526_v0 }
 0x27a   : > { %v2459_v12 = vpop.f32.mrb[49].mxu1 }
 0x280   : > { %3336 = vmatmul.mubr.bf16.gmra.mrb[68].mxu0 %v6358_v13  ;;  %v8196_v13 = vpop.f32.mrb[50].mxu1 }
 0x281   : > { %3343 = vmatprep.mubr.bf16.mxu0 %v6367_v25  ;;  %v2462_v24 = vpop.f32.mrb[51].mxu1  ;;  %v530_v25 = vld [vmem:[%s7571_s15 + $0x658] sm:$0xff] }
 0x282   : > { %v8200_v28 = vpop.f32.mrb[52].mxu1  ;;  %v6423_v31 = vcombine.high %v530_v25, %v534_v27  ;;  %v6422_v38 = vcombine.low %v530_v25, %v534_v27 }
 0x288   : > { %3344 = vmatmul.mubr.bf16.gmra.mrb[72].mxu0 %v6366_v30  ;;  %v2467_v30 = vpop.f32.mrb[53].mxu1 }
 0x289   : > { %3351 = vmatprep.mubr.bf16.mxu0 %v6375_v32  ;;  %v8202_v32 = vpop.f32.mrb[54].mxu1  ;;  %v562_v30 = vld [vmem:[%s7571_s15 + $0x758] sm:$0xff] }
 0x28a   : > { %v2470_v16 = vpop.f32.mrb[55].mxu1 }
 0x290   : > { %3352 = vmatmul.mubr.bf16.gmra.mrb[76].mxu0 %v6374_v37  ;;  %v8206_v37 = vpop.f32.mrb[56].mxu1 }
 0x291   : > { %3359 = vmatprep.mubr.bf16.mxu0 %v6383_v39  ;;  %v2475_v39 = vpop.f32.mrb[57].mxu1 }
 0x292   : > { %v8208_v42 = vpop.f32.mrb[58].mxu1 }
 0x293   : > { %v2478_v43 = vpop.f32.mrb[59].mxu1 }
 0x298   : > { %3360 = vmatmul.mubr.bf16.gmra.mrb[80].mxu0 %v6382_v45  ;;  %v546_v45 = vld [vmem:[%s7571_s15 + $0x6d8] sm:$0xff] }
 0x299   : > { %3367 = vmatprep.mubr.bf16.mxu0 %v6391_v20  ;;  %v8212_v20 = vpop.f32.mrb[60].mxu1  ;;  %v6439_v49 = vcombine.high %v546_v45, %v550_v46 }
 0x29a   : > { %v2483_v48 = vpop.f32.mrb[61].mxu1 }
 0x2a0   : > { %3368 = vmatmul.mubr.bf16.gmra.mrb[84].mxu0 %v6390_v21  ;;  %v8214_v21 = vpop.f32.mrb[62].mxu1 }
 0x2a1   : > { %3375 = vmatprep.mubr.bf16.mxu0 %v6399_v52  ;;  %v2486_v50 = vpop.f32.mrb[63].mxu1  ;;  %v554_v52 = vld [vmem:[%s7571_s15 + $0x718] sm:$0xff] }
 0x2a2   : > { %v8218_v55 = vpop.f32.mrb[64].mxu1  ;;  %v6447_v0 = vcombine.high %v554_v52, %v558_v5  ;;  %v6446_v39 = vcombine.low %v554_v52, %v558_v5  ;;  %v5235_v50 = vld [vmem:[%s10015_s3 + $0x8] sm:$0xff] }
 0x2a3   : > { %v2491_v62 = vpop.f32.mrb[65].mxu1 }
 0x2a4   : > { %v570_v62 = vld [vmem:[%s7571_s15 + $0x798] sm:$0xff] }
 0x2a8   : > { %3376 = vmatmul.mubr.bf16.gmra.mrb[88].mxu0 %v6398_v57 }
 0x2a9   : > { %3383 = vmatprep.mubr.bf16.mxu0 %v6407_v60  ;;  %v6438_v60 = vcombine.low %v546_v45, %v550_v46 }
 0x2b0   : > { %3384 = vmatmul.mubr.bf16.gmra.mrb[92].mxu0 %v6406_v8  ;;  %v8223_v8 = vpop.f32.mrb[66].mxu1 }
 0x2b1   : > { %3391 = vmatprep.mubr.bf16.mxu0 %v6415_v10  ;;  %v2494_v24 = vpop.f32.mrb[67].mxu1 }
 0x2b2   : > { %v8237_v16 = vpop.f32.mrb[68].mxu1 }
 0x2b8   : > { %3392 = vmatmul.mubr.bf16.gmra.mrb[96].mxu0 %v6414_v14 }
 0x2b9   : > { %3399 = vmatprep.mubr.bf16.mxu0 %v6423_v31 }
 0x2c0   : > { %3400 = vmatmul.mubr.bf16.gmra.mrb[100].mxu0 %v6422_v38 }
 0x2c1   : > { %3407 = vmatprep.mubr.bf16.mxu0 %v6431_v18  ;;  %v2499_v18 = vpop.f32.mrb[69].mxu1 }
 0x2c8   : > { %3408 = vmatmul.mubr.bf16.gmra.mrb[104].mxu0 %v6430_v3 }
 0x2c9   : > { %3415 = vmatprep.mubr.bf16.mxu0 %v6439_v49 }
 0x2cb   : > { %v3201_v54 = vpop.f32.mrb[0].mxu0 }
 0x2cc   : > { %v8221_v57 = vadd.f32 %v3201_v54, %v8112_v9  ;;  %v3203_v58 = vpop.f32.mrb[1].mxu0 }
 0x2cd   : > { %v3204_v63 = vpop.f32.mrb[2].mxu0 }
 0x2ce   : > { %v8226_v12 = vadd.f32 %v3204_v63, %v8116_v23  ;;  %v3206_v10 = vpop.f32.mrb[3].mxu0  ;;  %v3567_v9 = vrot.slane %v8221_v57, 1  ;;  %v566_v23 = vld [vmem:[%s7571_s15 + $0x778] sm:$0xff]  ;;  %v3923_v34 = vrot.slane %v8221_v57, 7 }
 0x2cf   : > { %v6455_v45 = vcombine.high %v562_v30, %v566_v23  ;;  %v574_v63 = vld [vmem:[%s7571_s15 + $0x7b8] sm:$0x11]  ;;  %s7503_s15 = smov 96  }
 0x2d0   : > { %3416 = vmatmul.mubr.bf16.gmra.mrb[108].mxu0 %v6438_v60  ;;  %4278 = vrot.lane.b32.xlu1 %v8226_v12, %s7497_s18  ;;  %v3568_v25 = vrot.slane %v8226_v12, 1  ;;  %v3924_v14 = vrot.slane %v8226_v12, 7  ;;  %v4516_v24 = vrot.slane %v8226_v12, 6 }
 0x2d1   : > { %3423 = vmatprep.mubr.bf16.mxu0 %v6447_v0  ;;  %v10022_v0 = vmov 0.0|0.0  }
 0x2d2   : > { %v3569_v27 = vsel %vm3566_vm1, %v3567_v9, %v3568_v25  ;;  %v3925_v48 = vsel %vm3922_vm2, %v3923_v34, %v3924_v14  ;;  %6923 = vmatprep.subr.bf16.mxu1 %v10022_v0 }
 0x2d3   : > { %v3209_v31 = vpop.f32.mrb[4].mxu0  ;;  %3686 = vrot.lane.b32.xlu0 %v3569_v27, %s7498_s19  ;;  %v6454_v27 = vcombine.low %v562_v30, %v566_v23 }
 0x2d4   : > { %v8241_v36 = vadd.f32 %v3209_v31, %v8122_v15  ;;  %v3211_v38 = vpop.f32.mrb[5].mxu0  ;;  %v8250_v15 = vpop.f32.mrb[70].mxu1  ;;  %v10024_v31 = vmov 0.0  }
 0x2d5   : > { %v3212_v43 = vpop.f32.mrb[6].mxu0  ;;  %v2502_v52 = vpop.f32.mrb[71].mxu1  ;;  %6711 = vmatprep.mubr.msk.f32.mxu1 %vm7501_vm4, %v10024_v31 }
 0x2d6   : > { %v8244_v46 = vadd.f32 %v3212_v43, %v8126_v35  ;;  %v3214_v3 = vpop.f32.mrb[7].mxu0  ;;  %4280 = vrot.lane.b32.xlu1 %v8241_v36, %s7497_s18  ;;  %v3570_v49 = vrot.slane %v8241_v36, 1  ;;  %v5234_v35 = vld [vmem:[%s10015_s3] sm:$0xff]  ;;  %v4517_v54 = vrot.slane %v8241_v36, 6  ;;  %v3926_v60 = vrot.slane %v8241_v36, 7  ;;  %v8274_v34 = vpop.f32.mrb[72].mxu1 }
 0x2d7   : > { %4042 = vrot.lane.b32.xlu0 %v3925_v48, %s7499_s20  ;;  %v6924_v58 = vpack.c.bf16 %v5235_v50, %v5234_v35  ;;  %v6463_v43 = vcombine.high %v570_v62, %v574_v63 }
 0x2d8   : > { %3424 = vmatmul.mubr.bf16.gmra.mrb[112].mxu0 %v6446_v39  ;;  %v3571_v5 = vsel %vm3566_vm1, %v3568_v25, %v3570_v49  ;;  %v4518_v39 = vsel %vm4515_vm3, %v4516_v24, %v4517_v54  ;;  %v3928_v18 = vrot.slane %v8244_v46, 7  ;;  %v3927_v30 = vsel %vm3922_vm2, %v3924_v14, %v3926_v60 }
 0x2d9   : > { %3431 = vmatprep.mubr.bf16.mxu0 %v6455_v45  ;;  %6925 = vmatpush3.bf16.msra.mxu1 %v6924_v58  ;;  %v2507_v45 = vpop.f32.mrb[73].mxu1 }
 0x2da   : > { %3688 = vrot.lane.b32.xlu1 %v3571_v5, %s7498_s19  ;;  %v8283_v23 = vpop.f32.mrb[74].mxu1  ;;  %v3929_v35 = vsel %vm3922_vm2, %v3926_v60, %v3928_v18  ;;  %v6462_v5 = vcombine.low %v570_v62, %v574_v63 }
 0x2db   : > { %v3217_v10 = vpop.f32.mrb[8].mxu0  ;;  %4282 = vrot.lane.b32.xlu0 %v8244_v46, %s7497_s18  ;;  %v2510_v48 = vpop.f32.mrb[75].mxu1 }
 0x2dc   : > { %v8270_v9 = vadd.f32 %v3217_v10, %v8130_v40  ;;  %v3219_v25 = vpop.f32.mrb[9].mxu0  ;;  %v8293_v58 = vpop.f32.mrb[76].mxu1 }
 0x2dd   : > { %v3220_v38 = vpop.f32.mrb[10].mxu0  ;;  %v2515_v24 = vpop.f32.mrb[77].mxu1 }
 0x2de   : > { %v8279_v3 = vadd.f32 %v3220_v38, %v8134_v44  ;;  %v3222_v40 = vpop.f32.mrb[11].mxu0  ;;  %4635 = vrot.lane.b32.xlu1 %v4518_v39, %s7503_s15  ;;  %v3572_v44 = vrot.slane %v8244_v46, 1  ;;  %v4519_v38 = vrot.slane %v8244_v46, 6  ;;  %v8301_v39 = vpop.f32.mrb[78].mxu1  ;;  %v3574_v62 = vrot.slane %v8270_v9, 1 }
 0x2df   : > { %4044 = vrot.lane.b32.xlu0 %v3927_v30, %s7499_s20  ;;  %v4521_v48 = vrot.slane %v8270_v9, 6 }
 0x2e0   : > { %3432 = vmatmul.mubr.bf16.gmra.mrb[116].mxu0 %v6454_v27  ;;  %v3573_v27 = vsel %vm3566_vm1, %v3570_v49, %v3572_v44 }
 0x2e1   : > { %3439 = vmatprep.mubr.bf16.mxu0 %v6463_v43 }
 0x2e2   : > { %4046 = vrot.lane.b32.xlu1 %v3929_v35, %s7499_s20 }
 0x2e3   : > { %v3225_v50 = vpop.f32.mrb[12].mxu0  ;;  %4873 = vrot.lane.b32.xlu0 %v3927_v30, %s7504_s25  ;;  %v3575_v30 = vsel %vm3566_vm1, %v3572_v44, %v3574_v62  ;;  %v3932_v44 = vrot.slane %v8279_v3, 7 }
 0x2e4   : > { %v8291_v52 = vadd.f32 %v3225_v50, %v8138_v2  ;;  %v3227_v14 = vpop.f32.mrb[13].mxu0  ;;  %v2518_v2 = vpop.f32.mrb[79].mxu1 }
 0x2e5   : > { %v3228_v10 = vpop.f32.mrb[14].mxu0  ;;  %v8312_v45 = vpop.f32.mrb[80].mxu1 }
 0x2e6   : > { %v8296_v60 = vadd.f32 %v3228_v10, %v8142_v51  ;;  %v3230_v25 = vpop.f32.mrb[15].mxu0  ;;  %4875 = vrot.lane.b32.xlu1 %v3929_v35, %s7504_s25  ;;  %v4520_v51 = vsel %vm4515_vm3, %v4517_v54, %v4519_v38  ;;  %v2523_v35 = vpop.f32.mrb[81].mxu1  ;;  %v3930_v54 = vrot.slane %v8270_v9, 7  ;;  %v4522_v10 = vsel %vm4515_vm3, %v4519_v38, %v4521_v48 }
 0x2e7   : > { %3690 = vrot.lane.b32.xlu0 %v3573_v27, %s7498_s19 }
 0x2e8   : > { %10051 = vst [vmem:[#allocation7_spill] sm:$0xff] %v8296_v60  ;;  %3440 = vmatmul.mubr.bf16.gmra.mrb[120].mxu0 %v6462_v5  ;;  %v8321_v5 = vpop.f32.mrb[82].mxu1 }
 0x2ea   : > { %4284 = vrot.lane.b32.xlu1 %v8270_v9, %s7497_s18 }
 0x2eb   : > { %v3233_v63 = vpop.f32.mrb[16].mxu0  ;;  %4637 = vrot.lane.b32.xlu0 %v4520_v51, %s7503_s15  ;;  %v3933_v51 = vsel %vm3922_vm2, %v3930_v54, %v3932_v44 }
 0x2ec   : > { %v8310_v49 = vadd.f32 %v3233_v63, %v8146_v6  ;;  %v3235_v43 = vpop.f32.mrb[17].mxu0  ;;  %v2526_v6 = vpop.f32.mrb[83].mxu1 }
 0x2ed   : > { %v3236_v40 = vpop.f32.mrb[18].mxu0  ;;  %v8334_v63 = vpop.f32.mrb[84].mxu1 }
 0x2ee   : > { %10052 = vst [vmem:[#allocation8_spill] sm:$0xff] %v8310_v49  ;;  %v8317_v50 = vadd.f32 %v3236_v40, %v8148_v59  ;;  %v3238_v14 = vpop.f32.mrb[19].mxu0  ;;  %3692 = vrot.lane.b32.xlu1 %v3575_v30, %s7498_s19  ;;  %v3931_v59 = vsel %vm3922_vm2, %v3928_v18, %v3930_v54  ;;  %v3576_v18 = vrot.slane %v8279_v3, 1  ;;  %v2811_v40 = vpop.f32.mrb[85].mxu1 }
 0x2ef   : > { %4286 = vrot.lane.b32.xlu0 %v8279_v3, %s7497_s18  ;;  %v8342_v30 = vpop.f32.mrb[86].mxu1  ;;  %v4523_v14 = vrot.slane %v8279_v3, 6 }
 0x2f0   : > { %10053 = vst [vmem:[#allocation9_spill] sm:$0xff] %v8317_v50  ;;  %v3577_v35 = vsel %vm3566_vm1, %v3574_v62, %v3576_v18 }
 0x2f1   : > { %v4524_v62 = vsel %vm4515_vm3, %v4521_v48, %v4523_v14 }
 0x2f2   : > { %4639 = vrot.lane.b32.xlu1 %v4522_v10, %s7503_s15 }
 0x2f3   : > { %v3241_v24 = vpop.f32.mrb[20].mxu0  ;;  %4048 = vrot.lane.b32.xlu0 %v3931_v59, %s7499_s20 }
 0x2f4   : > { %v8331_v25 = vadd.f32 %v3241_v24, %v8152_v7  ;;  %v3243_v27 = vpop.f32.mrb[21].mxu0  ;;  %v2814_v7 = vpop.f32.mrb[87].mxu1  ;;  %v3578_v24 = vrot.slane %v8291_v52, 1 }
 0x2f5   : > { %v3244_v2 = vpop.f32.mrb[22].mxu0  ;;  %v4525_v7 = vrot.slane %v8291_v52, 6 }
 0x2f6   : > { %10054 = vst [vmem:[#allocation10_spill] sm:$0xff] %v8331_v25  ;;  %v8337_v38 = vadd.f32 %v3244_v2, %v8154_v1  ;;  %v3246_v43 = vpop.f32.mrb[23].mxu0  ;;  %4050 = vrot.lane.b32.xlu1 %v3933_v51, %s7499_s20  ;;  %v3579_v40 = vsel %vm3566_vm1, %v3576_v18, %v3578_v24 }
 0x2f7   : > { %4877 = vrot.lane.b32.xlu0 %v3931_v59, %s7504_s25  ;;  %v8352_v59 = vpop.f32.mrb[88].mxu1 }
 0x2fa   : > { %4879 = vrot.lane.b32.xlu1 %v3933_v51, %s7504_s25  ;;  %v2819_v51 = vpop.f32.mrb[89].mxu1 }
 0x2fb   : > { %v3249_v54 = vpop.f32.mrb[24].mxu0  ;;  %3694 = vrot.lane.b32.xlu0 %v3577_v35, %s7498_s19 }
 0x2fc   : > { %v8349_v1 = vadd.f32 %v3249_v54, %v8158_v22  ;;  %v3251_v6 = vpop.f32.mrb[25].mxu0  ;;  %v8361_v22 = vpop.f32.mrb[90].mxu1 }
 0x2fd   : > { %v3252_v10 = vpop.f32.mrb[26].mxu0  ;;  %v2822_v43 = vpop.f32.mrb[91].mxu1 }
 0x2fe   : > { %v8355_v27 = vadd.f32 %v3252_v10, %v8160_v26  ;;  %v3254_v2 = vpop.f32.mrb[27].mxu0  ;;  %4288 = vrot.lane.b32.xlu1 %v8291_v52, %s7497_s18  ;;  %v3934_v26 = vrot.slane %v8291_v52, 7  ;;  %v4526_v10 = vsel %vm4515_vm3, %v4523_v14, %v4525_v7  ;;  %v8374_v18 = vpop.f32.mrb[92].mxu1 }
 0x2ff   : > { %4641 = vrot.lane.b32.xlu0 %v4524_v62, %s7503_s15  ;;  %v3936_v2 = vrot.slane %v8296_v60, 7 }
 0x300   : > { %10055 = vst [vmem:[#allocation11_spill] sm:$0xff] %v8355_v27  ;;  %v3935_v43 = vsel %vm3922_vm2, %v3932_v44, %v3934_v26 }
 0x301   : > { %v3937_v14 = vsel %vm3922_vm2, %v3934_v26, %v3936_v2 }
 0x302   : > { %3696 = vrot.lane.b32.xlu1 %v3579_v40, %s7498_s19  ;;  %v2827_v40 = vpop.f32.mrb[93].mxu1 }
 0x303   : > { %v3257_v35 = vpop.f32.mrb[28].mxu0  ;;  %4290 = vrot.lane.b32.xlu0 %v8296_v60, %s7497_s18 }
 0x304   : > { %v8370_v48 = vadd.f32 %v3257_v35, %v8164_v29  ;;  %v3259_v54 = vpop.f32.mrb[29].mxu0  ;;  %v8382_v29 = vpop.f32.mrb[94].mxu1 }
 0x305   : > { %v3260_v6 = vpop.f32.mrb[30].mxu0  ;;  %v2830_v35 = vpop.f32.mrb[95].mxu1  ;;  %v3580_v54 = vrot.slane %v8296_v60, 1 }
 0x306   : > { %v8377_v62 = vadd.f32 %v3260_v6, %v8166_v33  ;;  %v3262_v51 = vpop.f32.mrb[31].mxu0  ;;  %4643 = vrot.lane.b32.xlu1 %v4526_v10, %s7503_s15  ;;  %v8391_v10 = vpop.f32.mrb[96].mxu1  ;;  %v4527_v35 = vrot.slane %v8296_v60, 6 }
 0x307   : > { %4052 = vrot.lane.b32.xlu0 %v3935_v43, %s7499_s20  ;;  %v3581_v26 = vsel %vm3566_vm1, %v3578_v24, %v3580_v54  ;;  %v2835_v31 = vpop.f32.mrb[97].mxu1 }
 0x30a   : > { %4054 = vrot.lane.b32.xlu1 %v3937_v14, %s7499_s20 }
 0x30b   : > { %v3265_v0 = vpop.f32.mrb[32].mxu0  ;;  %4881 = vrot.lane.b32.xlu0 %v3935_v43, %s7504_s25  ;;  %v8400_v43 = vpop.f32.mrb[98].mxu1 }
 0x30c   : > { %v8389_v33 = vadd.f32 %v3265_v0, %v8170_v17  ;;  %v3267_v6 = vpop.f32.mrb[33].mxu0  ;;  %v2838_v17 = vpop.f32.mrb[99].mxu1  ;;  %v3582_v0 = vrot.slane %v8310_v49, 1 }
 0x30d   : > { %v3268_v44 = vpop.f32.mrb[34].mxu0 }
 0x30e   : > { %v8394_v51 = vadd.f32 %v3268_v44, %v8172_v41  ;;  %v3270_v40 = vpop.f32.mrb[35].mxu0  ;;  %4883 = vrot.lane.b32.xlu1 %v3937_v14, %s7504_s25  ;;  %v4528_v41 = vsel %vm4515_vm3, %v4525_v7, %v4527_v35  ;;  %v3583_v44 = vsel %vm3566_vm1, %v3580_v54, %v3582_v0  ;;  %v3938_v7 = vrot.slane %v8310_v49, 7 }
 0x30f   : > { %3698 = vrot.lane.b32.xlu0 %v3581_v26, %s7498_s19  ;;  %v4529_v40 = vrot.slane %v8310_v49, 6  ;;  %v8412_v26 = vpop.f32.mrb[100].mxu1 }
 0x310   : > { %10056 = vst [vmem:[#allocation12_spill] sm:$0xff] %v8412_v26 }
 0x311   : > { %v4530_v54 = vsel %vm4515_vm3, %v4527_v35, %v4529_v40 }
 0x312   : > { %4292 = vrot.lane.b32.xlu1 %v8310_v49, %s7497_s18 }
 0x313   : > { %v3273_v6 = vpop.f32.mrb[36].mxu0  ;;  %4645 = vrot.lane.b32.xlu0 %v4528_v41, %s7503_s15  ;;  %v2843_v41 = vpop.f32.mrb[101].mxu1 }
 0x314   : > { %v8408_v24 = vadd.f32 %v3273_v6, %v8176_v19  ;;  %v3275_v14 = vpop.f32.mrb[37].mxu0  ;;  %v8421_v19 = vpop.f32.mrb[102].mxu1 }
 0x315   : > { %v3276_v31 = vpop.f32.mrb[38].mxu0  ;;  %10057 = vst [vmem:[#allocation13_spill] sm:$0xff] %v8421_v19  ;;  %v2846_v6 = vpop.f32.mrb[103].mxu1  ;;  %v3940_v14 = vrot.slane %v8317_v50, 7 }
 0x316   : > { %v8415_v17 = vadd.f32 %v3276_v31, %v8178_v47  ;;  %v3278_v60 = vpop.f32.mrb[39].mxu0  ;;  %3700 = vrot.lane.b32.xlu1 %v3583_v44, %s7498_s19  ;;  %v3939_v47 = vsel %vm3922_vm2, %v3936_v2, %v3938_v7  ;;  %v8432_v19 = vpop.f32.mrb[104].mxu1  ;;  %v3584_v2 = vrot.slane %v8317_v50, 1 }
 0x317   : > { %4294 = vrot.lane.b32.xlu0 %v8317_v50, %s7497_s18  ;;  %v3941_v49 = vsel %vm3922_vm2, %v3938_v7, %v3940_v14 }
 0x318   : > { %v3585_v7 = vsel %vm3566_vm1, %v3582_v0, %v3584_v2 }
 0x31a   : > { %4647 = vrot.lane.b32.xlu1 %v4530_v54, %s7503_s15  ;;  %v2851_v54 = vpop.f32.mrb[105].mxu1 }
 0x31b   : > { %v3281_v60 = vpop.f32.mrb[40].mxu0  ;;  %4056 = vrot.lane.b32.xlu0 %v3939_v47, %s7499_s20  ;;  %v8440_v26 = vpop.f32.mrb[106].mxu1  ;;  %v3586_v54 = vrot.slane %v8331_v25, 1 }
 0x31c   : > { %v8429_v31 = vadd.f32 %v3281_v60, %v8182_v4  ;;  %v3283_v44 = vpop.f32.mrb[41].mxu0  ;;  %v2854_v4 = vpop.f32.mrb[107].mxu1  ;;  %v4531_v60 = vrot.slane %v8317_v50, 6 }
 0x31d   : > { %v3284_v41 = vpop.f32.mrb[42].mxu0 }
 0x31e   : > { %v8435_v35 = vadd.f32 %v3284_v41, %v8184_v53  ;;  %v3286_v6 = vpop.f32.mrb[43].mxu0  ;;  %4058 = vrot.lane.b32.xlu1 %v3941_v49, %s7499_s20  ;;  %v4532_v0 = vsel %vm4515_vm3, %v4529_v40, %v4531_v60 }
 0x31f   : > { %4885 = vrot.lane.b32.xlu0 %v3939_v47, %s7504_s25  ;;  %v8450_v47 = vpop.f32.mrb[108].mxu1 }
 0x320   : > { %10058 = vst [vmem:[#allocation14_spill] sm:$0xff] %v8450_v47  ;;  %v2859_v50 = vpop.f32.mrb[109].mxu1 }
 0x322   : > { %4887 = vrot.lane.b32.xlu1 %v3941_v49, %s7504_s25 }
 0x323   : > { %v3289_v44 = vpop.f32.mrb[44].mxu0  ;;  %3702 = vrot.lane.b32.xlu0 %v3585_v7, %s7498_s19 }
 0x324   : > { %v8447_v53 = vadd.f32 %v3289_v44, %v8188_v56  ;;  %v3291_v41 = vpop.f32.mrb[45].mxu0  ;;  %v8459_v56 = vpop.f32.mrb[110].mxu1  ;;  %v3587_v44 = vsel %vm3566_vm1, %v3584_v2, %v3586_v54 }
 0x325   : > { %v3292_v6 = vpop.f32.mrb[46].mxu0  ;;  %10059 = vst [vmem:[#allocation15_spill] sm:$0xff] %v8459_v56  ;;  %v2862_v7 = vpop.f32.mrb[111].mxu1  ;;  %v4533_v41 = vrot.slane %v8331_v25, 6 }
 0x326   : > { %v8453_v4 = vadd.f32 %v3292_v6, %v8190_v61  ;;  %v3294_v49 = vpop.f32.mrb[47].mxu0  ;;  %4296 = vrot.lane.b32.xlu1 %v8331_v25, %s7497_s18  ;;  %v3942_v61 = vrot.slane %v8331_v25, 7  ;;  %v3944_v7 = vrot.slane %v8337_v38, 7  ;;  %v8472_v2 = vpop.f32.mrb[112].mxu1 }
 0x327   : > { %4649 = vrot.lane.b32.xlu0 %v4532_v0, %s7503_s15  ;;  %v4534_v0 = vsel %vm4515_vm3, %v4531_v60, %v4533_v41  ;;  %v2867_v47 = vpop.f32.mrb[113].mxu1 }
 0x328   : > { %v3943_v25 = vsel %vm3922_vm2, %v3940_v14, %v3942_v61  ;;  %v3945_v60 = vsel %vm3922_vm2, %v3942_v61, %v3944_v7 }
 0x32a   : > { %3704 = vrot.lane.b32.xlu1 %v3587_v44, %s7498_s19 }
 0x32b   : > { %v3297_v6 = vpop.f32.mrb[48].mxu0  ;;  %4298 = vrot.lane.b32.xlu0 %v8337_v38, %s7497_s18 }
 0x32c   : > { %v8468_v40 = vadd.f32 %v3297_v6, %v8194_v11  ;;  %v3299_v50 = vpop.f32.mrb[49].mxu0  ;;  %v8480_v11 = vpop.f32.mrb[114].mxu1 }
 0x32d   : > { %v3300_v49 = vpop.f32.mrb[50].mxu0  ;;  %v2870_v6 = vpop.f32.mrb[115].mxu1  ;;  %v3588_v50 = vrot.slane %v8337_v38, 1 }
 0x32e   : > { %10060 = vst [vmem:[#allocation16_spill] sm:$0xff] %v8468_v40  ;;  %v8475_v56 = vadd.f32 %v3300_v49, %v8196_v13  ;;  %v3302_v44 = vpop.f32.mrb[51].mxu0  ;;  %4651 = vrot.lane.b32.xlu1 %v4534_v0, %s7503_s15  ;;  %v8489_v47 = vpop.f32.mrb[116].mxu1  ;;  %v4535_v6 = vrot.slane %v8337_v38, 6 }
 0x32f   : > { %4060 = vrot.lane.b32.xlu0 %v3943_v25, %s7499_s20  ;;  %v3589_v61 = vsel %vm3566_vm1, %v3586_v54, %v3588_v50 }
 0x330   : > { %10061 = vst [vmem:[#allocation17_spill] sm:$0xff] %v8475_v56  ;;  %v2875_v56 = vpop.f32.mrb[117].mxu1 }
 0x332   : > { %4062 = vrot.lane.b32.xlu1 %v3945_v60, %s7499_s20 }
 0x333   : > { %v3305_v40 = vpop.f32.mrb[52].mxu0  ;;  %4889 = vrot.lane.b32.xlu0 %v3943_v25, %s7504_s25  ;;  %v8498_v25 = vpop.f32.mrb[118].mxu1 }
 0x334   : > { %v8487_v13 = vadd.f32 %v3305_v40, %v8200_v28  ;;  %v3307_v49 = vpop.f32.mrb[53].mxu0  ;;  %v2878_v28 = vpop.f32.mrb[119].mxu1  ;;  %v3590_v40 = vrot.slane %v8349_v1, 1 }
 0x335   : > { %v3308_v14 = vpop.f32.mrb[54].mxu0 }
 0x336   : > { %10062 = vst [vmem:[#allocation18_spill] sm:$0xff] %v8487_v13  ;;  %v8492_v0 = vadd.f32 %v3308_v14, %v8202_v32  ;;  %v3310_v44 = vpop.f32.mrb[55].mxu0  ;;  %4891 = vrot.lane.b32.xlu1 %v3945_v60, %s7504_s25  ;;  %v4536_v32 = vsel %vm4515_vm3, %v4533_v41, %v4535_v6  ;;  %v3591_v14 = vsel %vm3566_vm1, %v3588_v50, %v3590_v40  ;;  %v3946_v41 = vrot.slane %v8349_v1, 7 }
 0x337   : > { %3706 = vrot.lane.b32.xlu0 %v3589_v61, %s7498_s19  ;;  %v4537_v44 = vrot.slane %v8349_v1, 6  ;;  %v8510_v61 = vpop.f32.mrb[120].mxu1 }
 0x338   : > { %10063 = vst [vmem:[#allocation19_spill] sm:$0xff] %v8492_v0 }
 0x339   : > { %v4538_v50 = vsel %vm4515_vm3, %v4535_v6, %v4537_v44 }
 0x33a   : > { %4300 = vrot.lane.b32.xlu1 %v8349_v1, %s7497_s18 }
 0x33b   : > { %v3313_v49 = vpop.f32.mrb[56].mxu0  ;;  %4653 = vrot.lane.b32.xlu0 %v4536_v32, %s7503_s15  ;;  %v2883_v32 = vpop.f32.mrb[121].mxu1 }
 0x33c   : > { %v8506_v54 = vadd.f32 %v3313_v49, %v8206_v37  ;;  %v3315_v60 = vpop.f32.mrb[57].mxu0  ;;  %v2884_v37 = vpop.f32.mrb[122].mxu1 }
 0x33d   : > { %v3316_v56 = vpop.f32.mrb[58].mxu0  ;;  %v2885_v49 = vpop.f32.mrb[123].mxu1  ;;  %v3948_v60 = vrot.slane %v8355_v27, 7 }
 0x33e   : > { %10064 = vst [vmem:[#allocation20_spill] sm:$0xff] %v8506_v54  ;;  %v8513_v28 = vadd.f32 %v3316_v56, %v8208_v42  ;;  %v3318_v0 = vpop.f32.mrb[59].mxu0  ;;  %3708 = vrot.lane.b32.xlu1 %v3591_v14, %s7498_s19  ;;  %v3947_v42 = vsel %vm3922_vm2, %v3944_v7, %v3946_v41  ;;  %v3592_v7 = vrot.slane %v8355_v27, 1 }
 0x33f   : > { %4302 = vrot.lane.b32.xlu0 %v8355_v27, %s7497_s18  ;;  %v3949_v37 = vsel %vm3922_vm2, %v3946_v41, %v3948_v60 }
 0x340   : > { %10065 = vst [vmem:[#allocation21_spill] sm:$0xff] %v8513_v28 }
 0x342   : > { %4655 = vrot.lane.b32.xlu1 %v4538_v50, %s7503_s15  ;;  %v4279_v0 = vpop.permute.xlu1 %4278 }
 0x343   : > { %v3321_v56 = vpop.f32.mrb[60].mxu0  ;;  %4064 = vrot.lane.b32.xlu0 %v3947_v42, %s7499_s20 }
 0x344   : > { %v8525_v14 = vadd.f32 %v3321_v56, %v8212_v20  ;;  %v3323_v32 = vpop.f32.mrb[61].mxu0  ;;  %v3593_v20 = vsel %vm3566_vm1, %v3590_v40, %v3592_v7  ;;  %v4539_v56 = vrot.slane %v8355_v27, 6 }
 0x345   : > { %v3324_v28 = vpop.f32.mrb[62].mxu0  ;;  %v3687_v54 = vpop.permute.xlu0 %3686 }
 0x346   : > { %10066 = vst [vmem:[#allocation22_spill] sm:$0xff] %v8525_v14  ;;  %v8529_v6 = vadd.f32 %v3324_v28, %v8214_v21  ;;  %v3326_v49 = vpop.f32.mrb[63].mxu0  ;;  %4066 = vrot.lane.b32.xlu1 %v3949_v37, %s7499_s20  ;;  %v3863_v21 = vadd.f32 %v8221_v57, %v3687_v54  ;;  %v3594_v14 = vrot.slane %v8370_v48, 1  ;;  %v4540_v57 = vsel %vm4515_vm3, %v4537_v44, %v4539_v56 }
 0x347   : > { %4893 = vrot.lane.b32.xlu0 %v3947_v42, %s7504_s25 }
 0x348   : > { %10067 = vst [vmem:[#allocation23_spill] sm:$0xff] %v8529_v6  ;;  %v4281_v50 = vpop.permute.xlu1 %4280 }
 0x349   : > { %v4043_v13 = vpop.permute.xlu0 %4042 }
 0x34a   : > { %4895 = vrot.lane.b32.xlu1 %v3949_v37, %s7504_s25  ;;  %v4219_v37 = vadd.f32 %v4043_v13, %v3863_v21 }
 0x34b   : > { %v3329_v32 = vpop.f32.mrb[64].mxu0  ;;  %3710 = vrot.lane.b32.xlu0 %v3593_v20, %s7498_s19  ;;  %v3595_v20 = vsel %vm3566_vm1, %v3592_v7, %v3594_v14  ;;  %v8564_v7 = vld [vmem:[%s10014_s2] ss:$0 sm:$0xff] }
 0x34c   : > { %v8540_v28 = vadd.f32 %v3329_v32, %v8218_v55  ;;  %v3331_v41 = vpop.f32.mrb[65].mxu0  ;;  %v3689_v49 = vpop.permute.xlu1 %3688  ;;  %v4541_v32 = vrot.slane %v8370_v48, 6 }
 0x34d   : > { %v3332_v6 = vpop.f32.mrb[66].mxu0  ;;  %v8542_v42 = vpop.permute.xlu0 %4282  ;;  %v4455_v41 = vadd.f32 %v4279_v0, %v4219_v37 }
 0x34e   : > { %10068 = vst [vmem:[#allocation24_spill] sm:$0xff] %v8540_v28  ;;  %v8546_v40 = vadd.f32 %v3332_v6, %v8223_v8  ;;  %v3334_v27 = vpop.f32.mrb[67].mxu0  ;;  %4304 = vrot.lane.b32.xlu1 %v8370_v48, %s7497_s18  ;;  %v3950_v8 = vrot.slane %v8370_v48, 7  ;;  %v4542_v37 = vsel %vm4515_vm3, %v4539_v56, %v4541_v32 }
 0x34f   : > { %4657 = vrot.lane.b32.xlu0 %v4540_v57, %s7503_s15 }
 0x350   : > { %10069 = vst [vmem:[#allocation25_spill] sm:$0xff] %v8546_v40  ;;  %v4636_v55 = vpop.permute.xlu1 %4635  ;;  %v3864_v40 = vadd.f32 %v8226_v12, %v3689_v49 }
 0x351   : > { %v4045_v54 = vpop.permute.xlu0 %4044  ;;  %v4812_v27 = vadd.f32 %v4636_v55, %v4455_v41  ;;  %v3951_v41 = vsel %vm3922_vm2, %v3948_v60, %v3950_v8 }
 0x352   : > { %3712 = vrot.lane.b32.xlu1 %v3595_v20, %s7498_s19  ;;  %v10042_v20 = vrot.slane %v8377_v62, 7 }
 0x353   : > { %v3337_v13 = vpop.f32.mrb[68].mxu0  ;;  %4306 = vrot.lane.b32.xlu0 %v8377_v62, %s7497_s18 }
 0x354   : > { %v8559_v44 = vadd.f32 %v3337_v13, %v8237_v16  ;;  %v3339_v6 = vpop.f32.mrb[69].mxu0  ;;  %v4047_v21 = vpop.permute.xlu1 %4046  ;;  %v4220_v13 = vadd.f32 %v4045_v54, %v3864_v40  ;;  %v3953_v12 = vsel %vm3922_vm2, %v3950_v8, %v10042_v20 }
 0x355   : > { %v3340_v57 = vpop.f32.mrb[70].mxu0  ;;  %v4874_v0 = vpop.permute.xlu0 %4873 }
 0x356   : > { %10070 = vst [vmem:[#allocation26_spill] sm:$0xff] %v8559_v44  ;;  %v5050_v28 = vadd.f32 %v4874_v0, %v4812_v27  ;;  %v8570_v55 = vadd.f32 %v3340_v57, %v8250_v15  ;;  %v3342_v16 = vpop.f32.mrb[71].mxu0  ;;  %4659 = vrot.lane.b32.xlu1 %v4542_v37, %s7503_s15  ;;  %v3596_v15 = vrot.slane %v8377_v62, 1  ;;  %v4456_v54 = vadd.f32 %v4281_v50, %v4220_v13 }
 0x357   : > { %4068 = vrot.lane.b32.xlu0 %v3951_v41, %s7499_s20  ;;  %v4543_v0 = vrot.slane %v8377_v62, 6  ;;  %v10071_v37 = vmov 0.0  }
 0x358   : > { %v5116_v6 = vadd.f32 %v8564_v7, %v5050_v28  ;;  %v4876_v44 = vpop.permute.xlu1 %4875 }
 0x359   : > { %v3691_v56 = vpop.permute.xlu0 %3690 }
 0x35a   : > { %v5175_v49 = vmax.f32 %v5116_v6, 0.0  ;;  %4070 = vrot.lane.b32.xlu1 %v3953_v12, %s7499_s20  ;;  %v3865_v16 = vadd.f32 %v8241_v36, %v3691_v56 }
 0x35b   : > { %v3345_v27 = vpop.f32.mrb[72].mxu0  ;;  %4897 = vrot.lane.b32.xlu0 %v3951_v41, %s7504_s25 }
 0x35c   : > { %v8583_v60 = vadd.f32 %v3345_v27, %v8274_v34  ;;  %v3347_v40 = vpop.f32.mrb[73].mxu0  ;;  %6712 = vmatmul.mubr.msk.f32.vlgmr.msra.gmra.mrb[124].mxu1 %vm5236_vm5, %v5175_v49  ;;  %v8586_v28 = vpop.permute.xlu1 %4284  ;;  %v3597_v49 = vsel %vm3566_vm1, %v3594_v14, %v3596_v15  ;;  %v4221_v20 = vadd.f32 %v4047_v21, %v3865_v16  ;;  %v4545_v16 = vrot.slane %v8389_v33, 6 }
 0x35d   : > { %v3348_v57 = vpop.f32.mrb[74].mxu0  ;;  %v4638_v8 = vpop.permute.xlu0 %4637  ;;  %6714 = vmatprep.mubr.msk.f32.mxu1 %vm7501_vm4, %v10071_v37  ;;  %v3598_v40 = vrot.slane %v8389_v33, 1 }
 0x35e   : > { %v4813_v6 = vadd.f32 %v4638_v8, %v4456_v54  ;;  %v8593_v41 = vadd.f32 %v3348_v57, %v8283_v23  ;;  %v3350_v34 = vpop.f32.mrb[75].mxu0  ;;  %4899 = vrot.lane.b32.xlu1 %v3953_v12, %s7504_s25  ;;  %v4544_v23 = vsel %vm4515_vm3, %v4541_v32, %v4543_v0 }
 0x35f   : > { %3714 = vrot.lane.b32.xlu0 %v3597_v49, %s7498_s19  ;;  %v3599_v21 = vsel %vm3566_vm1, %v3596_v15, %v3598_v40 }
 0x360   : > { %v5051_v50 = vadd.f32 %v4876_v44, %v4813_v6  ;;  %v3693_v13 = vpop.permute.xlu1 %3692  ;;  %v4457_v6 = vadd.f32 %v8542_v42, %v4221_v20  ;;  %v4546_v42 = vsel %vm4515_vm3, %v4543_v0, %v4545_v16 }
 0x361   : > { %v8598_v27 = vpop.permute.xlu0 %4286  ;;  %v3866_v20 = vadd.f32 %v8244_v46, %v3693_v13 }
 0x362   : > { %v5117_v36 = vadd.f32 %v8564_v7, %v5051_v50  ;;  %4308 = vrot.lane.b32.xlu1 %v8389_v33, %s7497_s18 }
 0x363   : > { %v3353_v56 = vpop.f32.mrb[76].mxu0  ;;  %4661 = vrot.lane.b32.xlu0 %v4544_v23, %s7503_s15  ;;  %v10072_v23 = vrot.slane %v8377_v62, 7 }
 0x364   : > { %v5176_v14 = vmax.f32 %v5117_v36, 0.0  ;;  %v8607_v12 = vadd.f32 %v3353_v56, %v8293_v58  ;;  %v3355_v44 = vpop.f32.mrb[77].mxu0  ;;  %v4640_v54 = vpop.permute.xlu1 %4639  ;;  %v3954_v58 = vrot.slane %v8389_v33, 7 }
 0x365   : > { %v3356_v57 = vpop.f32.mrb[78].mxu0  ;;  %v4049_v8 = vpop.permute.xlu0 %4048  ;;  %v4814_v15 = vadd.f32 %v4640_v54, %v4457_v6 }
 0x366   : > { %v8613_v34 = vadd.f32 %v3356_v57, %v8301_v39  ;;  %v3358_v32 = vpop.f32.mrb[79].mxu0  ;;  %6715 = vmatmul.mubr.msk.f32.gmra.mrb[126].mxu1 %vm5236_vm5, %v5176_v14  ;;  %3716 = vrot.lane.b32.xlu1 %v3599_v21, %s7498_s19  ;;  %v3956_v39 = vrot.slane %v8394_v51, 7  ;;  %v3955_v56 = vsel %vm3922_vm2, %v10072_v23, %v3954_v58  ;;  %v4222_v44 = vadd.f32 %v4049_v8, %v3866_v20 }
 0x367   : > { %4310 = vrot.lane.b32.xlu0 %v8394_v51, %s7497_s18  ;;  %6717 = vmatprep.mubr.msk.f32.mxu1 %vm7501_vm4, %v10071_v37  ;;  %v3600_v8 = vrot.slane %v8394_v51, 1  ;;  %v4547_v23 = vrot.slane %v8394_v51, 6 }
 0x368   : > { %v4051_v49 = vpop.permute.xlu1 %4050  ;;  %v3957_v13 = vsel %vm3922_vm2, %v3954_v58, %v3956_v39 }
 0x369   : > { %v4878_v50 = vpop.permute.xlu0 %4877 }
 0x36a   : > { %v5052_v36 = vadd.f32 %v4878_v50, %v4814_v15  ;;  %4663 = vrot.lane.b32.xlu1 %v4546_v42, %s7503_s15  ;;  %v4458_v42 = vadd.f32 %v8586_v28, %v4222_v44 }
 0x36b   : > { %v3361_v14 = vpop.f32.mrb[80].mxu0  ;;  %4072 = vrot.lane.b32.xlu0 %v3955_v56, %s7499_s20 }
 0x36c   : > { %v5118_v54 = vadd.f32 %v8564_v7, %v5052_v36  ;;  %v8632_v57 = vadd.f32 %v3361_v14, %v8312_v45  ;;  %v3363_v0 = vpop.f32.mrb[81].mxu0  ;;  %v4880_v21 = vpop.permute.xlu1 %4879  ;;  %v3601_v36 = vsel %vm3566_vm1, %v3598_v40, %v3600_v8 }
 0x36d   : > { %v3364_v6 = vpop.f32.mrb[82].mxu0  ;;  %v3695_v46 = vpop.permute.xlu0 %3694 }
 0x36e   : > { %v5177_v32 = vmax.f32 %v5118_v54, 0.0  ;;  %v8638_v15 = vadd.f32 %v3364_v6, %v8321_v5  ;;  %v3366_v50 = vpop.f32.mrb[83].mxu0  ;;  %4074 = vrot.lane.b32.xlu1 %v3957_v13, %s7499_s20  ;;  %v3867_v5 = vadd.f32 %v8270_v9, %v3695_v46  ;;  %v3602_v9 = vrot.slane %v8408_v24, 1 }
 0x36f   : > { %4901 = vrot.lane.b32.xlu0 %v3955_v56, %s7504_s25 }
 0x370   : > { %6718 = vmatmul.mubr.msk.f32.gmra.mrb[128].mxu1 %vm5236_vm5, %v5177_v32  ;;  %v8644_v45 = vpop.permute.xlu1 %4288  ;;  %v4223_v46 = vadd.f32 %v4051_v49, %v3867_v5  ;;  %v4549_v49 = vrot.slane %v8408_v24, 6 }
 0x371   : > { %v4642_v20 = vpop.permute.xlu0 %4641  ;;  %6720 = vmatprep.mubr.msk.f32.mxu1 %vm7501_vm4, %v10071_v37 }
 0x372   : > { %v4815_v58 = vadd.f32 %v4642_v20, %v4458_v42  ;;  %4903 = vrot.lane.b32.xlu1 %v3957_v13, %s7504_s25  ;;  %v3603_v20 = vsel %vm3566_vm1, %v3600_v8, %v3602_v9  ;;  %v4459_v5 = vadd.f32 %v8598_v27, %v4223_v46 }
 0x373   : > { %v3369_v56 = vpop.f32.mrb[84].mxu0  ;;  %3718 = vrot.lane.b32.xlu0 %v3601_v36, %s7498_s19 }
 0x374   : > { %v5053_v14 = vadd.f32 %v4880_v21, %v4815_v58  ;;  %v8655_v54 = vadd.f32 %v3369_v56, %v8334_v63  ;;  %v3371_v28 = vpop.f32.mrb[85].mxu0  ;;  %v3697_v44 = vpop.permute.xlu1 %3696  ;;  %v4548_v63 = vsel %vm4515_vm3, %v4545_v16, %v4547_v23 }
 0x375   : > { %v3372_v0 = vpop.f32.mrb[86].mxu0  ;;  %v8657_v6 = vpop.permute.xlu0 %4290  ;;  %v4550_v28 = vsel %vm4515_vm3, %v4547_v23, %v4549_v49  ;;  %v3868_v46 = vadd.f32 %v8279_v3, %v3697_v44  ;;  %v3604_v44 = vrot.slane %v8415_v17, 1 }
 0x376   : > { %v5119_v13 = vadd.f32 %v8564_v7, %v5053_v14  ;;  %v8662_v40 = vadd.f32 %v3372_v0, %v8342_v30  ;;  %v3374_v32 = vpop.f32.mrb[87].mxu0  ;;  %4312 = vrot.lane.b32.xlu1 %v8408_v24, %s7497_s18  ;;  %v3958_v30 = vrot.slane %v8408_v24, 7  ;;  %v3960_v0 = vrot.slane %v8415_v17, 7 }
 0x377   : > { %4665 = vrot.lane.b32.xlu0 %v4548_v63, %s7503_s15 }
 0x378   : > { %v5178_v21 = vmax.f32 %v5119_v13, 0.0  ;;  %v4644_v50 = vpop.permute.xlu1 %4643  ;;  %v3961_v3 = vsel %vm3922_vm2, %v3958_v30, %v3960_v0 }
 0x379   : > { %v4053_v42 = vpop.permute.xlu0 %4052  ;;  %v4816_v16 = vadd.f32 %v4644_v50, %v4459_v5 }
 0x37a   : > { %6721 = vmatmul.mubr.msk.f32.gmra.mrb[130].mxu1 %vm5236_vm5, %v5178_v21  ;;  %3720 = vrot.lane.b32.xlu1 %v3603_v20, %s7498_s19  ;;  %v4224_v21 = vadd.f32 %v4053_v42, %v3868_v46 }
 0x37b   : > { %v3377_v58 = vpop.f32.mrb[88].mxu0  ;;  %4314 = vrot.lane.b32.xlu0 %v8415_v17, %s7497_s18  ;;  %6723 = vmatprep.mubr.msk.f32.mxu1 %vm7501_vm4, %v10071_v37 }
 0x37c   : > { %v8679_v8 = vadd.f32 %v3377_v58, %v8352_v59  ;;  %v3379_v36 = vpop.f32.mrb[89].mxu0  ;;  %v4055_v56 = vpop.permute.xlu1 %4054  ;;  %v3959_v59 = vsel %vm3922_vm2, %v3956_v39, %v3958_v30 }
 0x37d   : > { %v3380_v27 = vpop.f32.mrb[90].mxu0  ;;  %v4882_v14 = vpop.permute.xlu0 %4881 }
 0x37e   : > { %v5054_v13 = vadd.f32 %v4882_v14, %v4816_v16  ;;  %v8685_v32 = vadd.f32 %v3380_v27, %v8361_v22  ;;  %v3382_v63 = vpop.f32.mrb[91].mxu0  ;;  %4667 = vrot.lane.b32.xlu1 %v4550_v28, %s7503_s15  ;;  %v4460_v16 = vadd.f32 %v8644_v45, %v4224_v21  ;;  %v4551_v27 = vrot.slane %v8415_v17, 6 }
 0x37f   : > { %4076 = vrot.lane.b32.xlu0 %v3959_v59, %s7499_s20  ;;  %v3606_v21 = vrot.slane %v8429_v31, 1 }
 0x380   : > { %v5120_v23 = vadd.f32 %v8564_v7, %v5054_v13  ;;  %v4884_v50 = vpop.permute.xlu1 %4883  ;;  %v3605_v13 = vsel %vm3566_vm1, %v3602_v9, %v3604_v44 }
 0x381   : > { %v3699_v20 = vpop.permute.xlu0 %3698 }
 0x382   : > { %v5179_v22 = vmax.f32 %v5120_v23, 0.0  ;;  %4078 = vrot.lane.b32.xlu1 %v3961_v3, %s7499_s20  ;;  %v3869_v14 = vadd.f32 %v8291_v52, %v3699_v20 }
 0x383   : > { %v3385_v5 = vpop.f32.mrb[92].mxu0  ;;  %4905 = vrot.lane.b32.xlu0 %v3959_v59, %s7504_s25 }
 0x384   : > { %v8700_v39 = vadd.f32 %v3385_v5, %v8374_v18  ;;  %v3387_v42 = vpop.f32.mrb[93].mxu0  ;;  %6724 = vmatmul.mubr.msk.f32.gmra.mrb[132].mxu1 %vm5236_vm5, %v5179_v22  ;;  %v8703_v58 = vpop.permute.xlu1 %4292  ;;  %v4225_v23 = vadd.f32 %v4055_v56, %v3869_v14  ;;  %v3607_v56 = vsel %vm3566_vm1, %v3604_v44, %v3606_v21 }
 0x385   : > { %v3388_v36 = vpop.f32.mrb[94].mxu0  ;;  %v4646_v30 = vpop.permute.xlu0 %4645  ;;  %6726 = vmatprep.mubr.msk.f32.mxu1 %vm7501_vm4, %v10071_v37 }
 0x386   : > { %v4817_v28 = vadd.f32 %v4646_v30, %v4460_v16  ;;  %v8711_v18 = vadd.f32 %v3388_v36, %v8382_v29  ;;  %v3390_v46 = vpop.f32.mrb[95].mxu0  ;;  %4907 = vrot.lane.b32.xlu1 %v3961_v3, %s7504_s25  ;;  %v4552_v29 = vsel %vm4515_vm3, %v4549_v49, %v4551_v27  ;;  %v4553_v16 = vrot.slane %v8429_v31, 6 }
 0x387   : > { %3722 = vrot.lane.b32.xlu0 %v3605_v13, %s7498_s19  ;;  %v4461_v36 = vadd.f32 %v8657_v6, %v4225_v23  ;;  %v10073_v46 = vld [vmem:[#allocation7_spill] sm:$0xff] }
 0x388   : > { %v5055_v45 = vadd.f32 %v4884_v50, %v4817_v28  ;;  %v3701_v63 = vpop.permute.xlu1 %3700  ;;  %v4554_v6 = vsel %vm4515_vm3, %v4551_v27, %v4553_v16 }
 0x389   : > { %v8716_v59 = vpop.permute.xlu0 %4294  ;;  %v3870_v13 = vadd.f32 %v10073_v46, %v3701_v63 }
 0x38a   : > { %v5121_v52 = vadd.f32 %v8564_v7, %v5055_v45  ;;  %4316 = vrot.lane.b32.xlu1 %v8429_v31, %s7497_s18 }
 0x38b   : > { %v3393_v20 = vpop.f32.mrb[96].mxu0  ;;  %4669 = vrot.lane.b32.xlu0 %v4552_v29, %s7503_s15 }
 0x38c   : > { %v5180_v9 = vmax.f32 %v5121_v52, 0.0  ;;  %v8725_v3 = vadd.f32 %v3393_v20, %v8391_v10  ;;  %v3395_v50 = vpop.f32.mrb[97].mxu0  ;;  %v4648_v22 = vpop.permute.xlu1 %4647  ;;  %v3962_v10 = vrot.slane %v8429_v31, 7 }
 0x38d   : > { %v3396_v5 = vpop.f32.mrb[98].mxu0  ;;  %v4057_v42 = vpop.permute.xlu0 %4056  ;;  %v4818_v44 = vadd.f32 %v4648_v22, %v4461_v36 }
 0x38e   : > { %v8731_v30 = vadd.f32 %v3396_v5, %v8400_v43  ;;  %v3398_v49 = vpop.f32.mrb[99].mxu0  ;;  %6727 = vmatmul.mubr.msk.f32.gmra.mrb[134].mxu1 %vm5236_vm5, %v5180_v9  ;;  %3724 = vrot.lane.b32.xlu1 %v3607_v56, %s7498_s19  ;;  %v10043_v43 = vrot.slane %v8435_v35, 7  ;;  %v3963_v23 = vsel %vm3922_vm2, %v3960_v0, %v3962_v10  ;;  %v4226_v29 = vadd.f32 %v4057_v42, %v3870_v13  ;;  %v10074_v9 = vld [vmem:[#allocation12_spill] sm:$0xff] }
 0x38f   : > { %4318 = vrot.lane.b32.xlu0 %v8435_v35, %s7497_s18  ;;  %6729 = vmatprep.mubr.msk.f32.mxu1 %vm7501_vm4, %v10071_v37  ;;  %v10075_v49 = vld [vmem:[#allocation13_spill] sm:$0xff]  ;;  %v3608_v42 = vrot.slane %v8435_v35, 1 }
 0x390   : > { %v4059_v14 = vpop.permute.xlu1 %4058  ;;  %v3965_v56 = vsel %vm3922_vm2, %v3962_v10, %v10043_v43  ;;  %v10076_v10 = vld [vmem:[#allocation8_spill] sm:$0xff] }
 0x391   : > { %v4886_v28 = vpop.permute.xlu0 %4885 }
 0x392   : > { %v5056_v45 = vadd.f32 %v4886_v28, %v4818_v44  ;;  %4671 = vrot.lane.b32.xlu1 %v4554_v6, %s7503_s15  ;;  %v4462_v6 = vadd.f32 %v8703_v58, %v4226_v29 }
 0x393   : > { %v3401_v52 = vpop.f32.mrb[100].mxu0  ;;  %4080 = vrot.lane.b32.xlu0 %v3963_v23, %s7499_s20 }
 0x394   : > { %v5122_v20 = vadd.f32 %v8564_v7, %v5056_v45  ;;  %v8750_v50 = vadd.f32 %v3401_v52, %v10074_v9  ;;  %v3403_v27 = vpop.f32.mrb[101].mxu0  ;;  %v4888_v22 = vpop.permute.xlu1 %4887  ;;  %v3609_v52 = vsel %vm3566_vm1, %v3606_v21, %v3608_v42 }
 0x395   : > { %v3404_v5 = vpop.f32.mrb[102].mxu0  ;;  %v3703_v63 = vpop.permute.xlu0 %3702 }
 0x396   : > { %v5181_v36 = vmax.f32 %v5122_v20, 0.0  ;;  %v8756_v0 = vadd.f32 %v3404_v5, %v10075_v49  ;;  %v3406_v44 = vpop.f32.mrb[103].mxu0  ;;  %4082 = vrot.lane.b32.xlu1 %v3965_v56, %s7499_s20  ;;  %v3871_v13 = vadd.f32 %v10076_v10, %v3703_v63  ;;  %v4555_v20 = vrot.slane %v8435_v35, 6 }
 0x397   : > { %4909 = vrot.lane.b32.xlu0 %v3963_v23, %s7504_s25  ;;  %v3610_v63 = vrot.slane %v8447_v53, 1 }
 0x398   : > { %6730 = vmatmul.mubr.msk.f32.gmra.mrb[136].mxu1 %vm5236_vm5, %v5181_v36  ;;  %v8762_v28 = vpop.permute.xlu1 %4296  ;;  %v4227_v49 = vadd.f32 %v4059_v14, %v3871_v13  ;;  %v4557_v14 = vrot.slane %v8447_v53, 6 }
 0x399   : > { %v4650_v46 = vpop.permute.xlu0 %4649  ;;  %6732 = vmatprep.mubr.msk.f32.mxu1 %vm7501_vm4, %v10071_v37  ;;  %v3611_v10 = vsel %vm3566_vm1, %v3608_v42, %v3610_v63 }
 0x39a   : > { %v4819_v45 = vadd.f32 %v4650_v46, %v4462_v6  ;;  %4911 = vrot.lane.b32.xlu1 %v3965_v56, %s7504_s25  ;;  %v4463_v13 = vadd.f32 %v8716_v59, %v4227_v49  ;;  %v10044_v49 = vrot.slane %v8453_v4, 7 }
 0x39b   : > { %v3409_v23 = vpop.f32.mrb[104].mxu0  ;;  %3726 = vrot.lane.b32.xlu0 %v3609_v52, %s7498_s19  ;;  %v10077_v52 = vld [vmem:[#allocation14_spill] sm:$0xff] }
 0x39c   : > { %v5057_v9 = vadd.f32 %v4888_v22, %v4819_v45  ;;  %v8773_v27 = vadd.f32 %v3409_v23, %v8432_v19  ;;  %v3411_v58 = vpop.f32.mrb[105].mxu0  ;;  %v3705_v29 = vpop.permute.xlu1 %3704  ;;  %v4556_v19 = vsel %vm4515_vm3, %v4553_v16, %v4555_v20 }
 0x39d   : > { %v3412_v5 = vpop.f32.mrb[106].mxu0  ;;  %v8775_v36 = vpop.permute.xlu0 %4298 }
 0x39e   : > { %v5123_v56 = vadd.f32 %v8564_v7, %v5057_v9  ;;  %v8780_v21 = vadd.f32 %v3412_v5, %v8440_v26  ;;  %v3414_v44 = vpop.f32.mrb[107].mxu0  ;;  %4320 = vrot.lane.b32.xlu1 %v8447_v53, %s7497_s18  ;;  %v3966_v26 = vrot.slane %v8447_v53, 7  ;;  %v4558_v5 = vsel %vm4515_vm3, %v4555_v20, %v4557_v14 }
 0x39f   : > { %4673 = vrot.lane.b32.xlu0 %v4556_v19, %s7503_s15 }
 0x3a0   : > { %v5182_v22 = vmax.f32 %v5123_v56, 0.0  ;;  %v4652_v6 = vpop.permute.xlu1 %4651  ;;  %v10078_v56 = vld [vmem:[#allocation9_spill] sm:$0xff] }
 0x3a1   : > { %v4061_v46 = vpop.permute.xlu0 %4060  ;;  %v4820_v16 = vadd.f32 %v4652_v6, %v4463_v13  ;;  %v3872_v44 = vadd.f32 %v10078_v56, %v3705_v29  ;;  %v10080_v6 = vrot.slane %v8435_v35, 7  ;;  %v3969_v29 = vsel %vm3922_vm2, %v3966_v26, %v10044_v49 }
 0x3a2   : > { %6733 = vmatmul.mubr.msk.f32.gmra.mrb[138].mxu1 %vm5236_vm5, %v5182_v22  ;;  %3728 = vrot.lane.b32.xlu1 %v3611_v10, %s7498_s19  ;;  %v10079_v22 = vld [vmem:[#allocation15_spill] sm:$0xff] }
 0x3a3   : > { %v3417_v45 = vpop.f32.mrb[108].mxu0  ;;  %4322 = vrot.lane.b32.xlu0 %v8453_v4, %s7497_s18  ;;  %6735 = vmatprep.mubr.msk.f32.mxu1 %vm7501_vm4, %v10071_v37  ;;  %v3967_v13 = vsel %vm3922_vm2, %v10080_v6, %v3966_v26 }
 0x3a4   : > { %v8797_v42 = vadd.f32 %v3417_v45, %v10077_v52  ;;  %v3419_v23 = vpop.f32.mrb[109].mxu0  ;;  %v4063_v9 = vpop.permute.xlu1 %4062  ;;  %v4228_v45 = vadd.f32 %v4061_v46, %v3872_v44 }
 0x3a5   : > { %v3420_v59 = vpop.f32.mrb[110].mxu0  ;;  %v4890_v58 = vpop.permute.xlu0 %4889 }
 0x3a6   : > { %v5058_v19 = vadd.f32 %v4890_v58, %v4820_v16  ;;  %v8803_v10 = vadd.f32 %v3420_v59, %v10079_v22  ;;  %v3422_v43 = vpop.f32.mrb[111].mxu0  ;;  %4675 = vrot.lane.b32.xlu1 %v4558_v5, %s7503_s15  ;;  %v4464_v56 = vadd.f32 %v8762_v28, %v4228_v45  ;;  %v10082_v22 = vld [vmem:[#allocation10_spill] sm:$0xff] }
 0x3a7   : > { %4084 = vrot.lane.b32.xlu0 %v3967_v13, %s7499_s20  ;;  %v3612_v43 = vrot.slane %v8453_v4, 1 }
 0x3a8   : > { %v5124_v20 = vadd.f32 %v8564_v7, %v5058_v19  ;;  %v4892_v52 = vpop.permute.xlu1 %4891  ;;  %v4559_v19 = vrot.slane %v8453_v4, 6 }
 0x3a9   : > { %v3707_v23 = vpop.permute.xlu0 %3706 }
 0x3aa   : > { %v5183_v16 = vmax.f32 %v5124_v20, 0.0  ;;  %4086 = vrot.lane.b32.xlu1 %v3969_v29, %s7499_s20  ;;  %v3873_v6 = vadd.f32 %v10082_v22, %v3707_v23 }
 0x3ab   : > { %v3425_v59 = vpop.f32.mrb[112].mxu0  ;;  %4913 = vrot.lane.b32.xlu0 %v3967_v13, %s7504_s25 }
 0x3ac   : > { %v8818_v58 = vadd.f32 %v3425_v59, %v8472_v2  ;;  %v3427_v46 = vpop.f32.mrb[113].mxu0  ;;  %6736 = vmatmul.mubr.msk.f32.gmra.mrb[140].mxu1 %vm5236_vm5, %v5183_v16  ;;  %v8821_v5 = vpop.permute.xlu1 %4300  ;;  %v3613_v16 = vsel %vm3566_vm1, %v3610_v63, %v3612_v43 }
 0x3ad   : > { %v3428_v44 = vpop.f32.mrb[114].mxu0  ;;  %v4654_v26 = vpop.permute.xlu0 %4653  ;;  %6738 = vmatprep.mubr.msk.f32.mxu1 %vm7501_vm4, %v10071_v37  ;;  %v10083_v46 = vld [vmem:[#allocation16_spill] sm:$0xff] }
 0x3ae   : > { %10081 = vst [vmem:[#allocation7_spill] sm:$0xff] %v8818_v58  ;;  %v4821_v13 = vadd.f32 %v4654_v26, %v4464_v56  ;;  %v8829_v2 = vadd.f32 %v3428_v44, %v8480_v11  ;;  %v3430_v20 = vpop.f32.mrb[115].mxu0  ;;  %4915 = vrot.lane.b32.xlu1 %v3969_v29, %s7504_s25  ;;  %v3614_v49 = vrot.slane %v10083_v46, 1  ;;  %v4229_v58 = vadd.f32 %v4063_v9, %v3873_v6 }
 0x3af   : > { %3730 = vrot.lane.b32.xlu0 %v3613_v16, %s7498_s19  ;;  %v4560_v11 = vsel %vm4515_vm3, %v4557_v14, %v4559_v19  ;;  %v4561_v6 = vrot.slane %v10083_v46, 6  ;;  %v10085_v16 = vld [vmem:[#allocation17_spill] sm:$0xff] }
 0x3b0   : > { %v5059_v28 = vadd.f32 %v4892_v52, %v4821_v13  ;;  %v3709_v45 = vpop.permute.xlu1 %3708  ;;  %v3615_v9 = vsel %vm3566_vm1, %v3612_v43, %v3614_v49  ;;  %v4465_v13 = vadd.f32 %v8775_v36, %v4229_v58 }
 0x3b1   : > { %v8834_v59 = vpop.permute.xlu0 %4302  ;;  %v4562_v36 = vsel %vm4515_vm3, %v4559_v19, %v4561_v6  ;;  %v3874_v58 = vadd.f32 %v8337_v38, %v3709_v45  ;;  %v10087_v38 = vrot.slane %v10085_v16, 7 }
 0x3b2   : > { %v5125_v23 = vadd.f32 %v8564_v7, %v5059_v28  ;;  %4324 = vrot.lane.b32.xlu1 %v10083_v46, %s7497_s18 }
 0x3b3   : > { %v3433_v56 = vpop.f32.mrb[116].mxu0  ;;  %4677 = vrot.lane.b32.xlu0 %v4560_v11, %s7503_s15 }
 0x3b4   : > { %v5184_v63 = vmax.f32 %v5125_v23, 0.0  ;;  %v8843_v29 = vadd.f32 %v3433_v56, %v8489_v47  ;;  %v3435_v52 = vpop.f32.mrb[117].mxu0  ;;  %v4656_v44 = vpop.permute.xlu1 %4655  ;;  %v3970_v47 = vrot.slane %v10083_v46, 7  ;;  %v10086_v56 = vrot.slane %v8453_v4, 7 }
 0x3b5   : > { %v3436_v26 = vpop.f32.mrb[118].mxu0  ;;  %v4065_v22 = vpop.permute.xlu0 %4064  ;;  %v4822_v43 = vadd.f32 %v4656_v44, %v4465_v13 }
 0x3b6   : > { %10084 = vst [vmem:[#allocation12_spill] sm:$0xff] %v8843_v29  ;;  %v8849_v20 = vadd.f32 %v3436_v26, %v8498_v25  ;;  %v3438_v14 = vpop.f32.mrb[119].mxu0  ;;  %6739 = vmatmul.mubr.msk.f32.gmra.mrb[142].mxu1 %vm5236_vm5, %v5184_v63  ;;  %3732 = vrot.lane.b32.xlu1 %v3615_v9, %s7498_s19  ;;  %v3971_v63 = vsel %vm3922_vm2, %v10086_v56, %v3970_v47 }
 0x3b7   : > { %4326 = vrot.lane.b32.xlu0 %v10085_v16, %s7497_s18  ;;  %6741 = vmatprep.mubr.msk.f32.mxu1 %vm7501_vm4, %v10071_v37  ;;  %v4230_v26 = vadd.f32 %v4065_v22, %v3874_v58  ;;  %v3973_v45 = vsel %vm3922_vm2, %v3970_v47, %v10087_v38 }
 0x3b8   : > { %v4067_v28 = vpop.permute.xlu1 %4066 }
 0x3b9   : > { %v4894_v23 = vpop.permute.xlu0 %4893 }
 0x3ba   : > { %v5060_v11 = vadd.f32 %v4894_v23, %v4822_v43  ;;  %4679 = vrot.lane.b32.xlu1 %v4562_v36, %s7503_s15  ;;  %v3616_v43 = vrot.slane %v10085_v16, 1  ;;  %v10048_v23 = vrot.slane %v8849_v20, 6 }
 0x3bb   : > { %v3441_v52 = vpop.f32.mrb[120].mxu0  ;;  %4088 = vrot.lane.b32.xlu0 %v3971_v63, %s7499_s20 }
 0x3bc   : > { %v5126_v44 = vadd.f32 %v8564_v7, %v5060_v11  ;;  %v7113_v9 = vadd.f32 %v3441_v52, %v8510_v61  ;;  %v3443_v19 = vpop.f32.mrb[121].mxu0  ;;  %v4896_v13 = vpop.permute.xlu1 %4895  ;;  %v10047_v61 = vrot.slane %v8849_v20, 7  ;;  %v4466_v11 = vadd.f32 %v8821_v5, %v4230_v26 }
 0x3bd   : > { %v3444_v14 = vpop.f32.mrb[122].mxu0  ;;  %v3711_v25 = vpop.permute.xlu0 %3710  ;;  %v3617_v5 = vsel %vm3566_vm1, %v3614_v49, %v3616_v43  ;;  %v4563_v26 = vrot.slane %v10085_v16, 6 }
 0x3be   : > { %v5185_v36 = vmax.f32 %v5126_v44, 0.0  ;;  %v4633_v56 = vrot.slane %v7113_v9, 6  ;;  %v4871_v29 = vrot.slane %v7113_v9, 7  ;;  %v3445_v22 = vpop.f32.mrb[123].mxu0  ;;  %4090 = vrot.lane.b32.xlu1 %v3973_v45, %s7499_s20 }
 0x3bf   : > { %4917 = vrot.lane.b32.xlu0 %v3971_v63, %s7504_s25  ;;  %v3875_v63 = vadd.f32 %v8349_v1, %v3711_v25  ;;  %v4564_v1 = vsel %vm4515_vm3, %v4561_v6, %v4563_v26 }
 0x3c0   : > { %6742 = vmatmul.mubr.msk.f32.gmra.mrb[144].mxu1 %vm5236_vm5, %v5185_v36  ;;  %v4305_v58 = vpop.permute.xlu1 %4304  ;;  %v8881_v47 = vsel %vm4515_vm3, %v10048_v23, %v4633_v56  ;;  %v8886_v52 = vsel %vm3922_vm2, %v10047_v61, %v4871_v29  ;;  %v10089_v29 = vld [vmem:[#allocation18_spill] sm:$0xff] }
 0x3c1   : > { %10088 = vst [vmem:[#allocation13_spill] sm:$0xff] %v8886_v52  ;;  %v4658_v44 = vpop.permute.xlu0 %4657  ;;  %6744 = vmatprep.mubr.msk.f32.mxu1 %vm7501_vm4, %v10071_v37  ;;  %v3618_v36 = vrot.slane %v10089_v29, 1  ;;  %v4231_v56 = vadd.f32 %v4067_v28, %v3875_v63  ;;  %v3974_v28 = vrot.slane %v10089_v29, 7  ;;  %v10090_v63 = vld [vmem:[#allocation19_spill] sm:$0xff] }
 0x3c2   : > { %v4823_v9 = vadd.f32 %v4658_v44, %v4466_v11  ;;  %4919 = vrot.lane.b32.xlu1 %v3973_v45, %s7504_s25 }
 0x3c3   : > { %3734 = vrot.lane.b32.xlu0 %v3617_v5, %s7498_s19  ;;  %v3619_v11 = vsel %vm3566_vm1, %v3616_v43, %v3618_v36  ;;  %v4467_v44 = vadd.f32 %v8834_v59, %v4231_v56  ;;  %v10091_v59 = vld [vmem:[#allocation11_spill] sm:$0xff] }
 0x3c4   : > { %v5061_v19 = vadd.f32 %v4896_v13, %v4823_v9  ;;  %v3713_v14 = vpop.permute.xlu1 %3712  ;;  %v4565_v13 = vrot.slane %v10089_v29, 6 }
 0x3c5   : > { %v4307_v38 = vpop.permute.xlu0 %4306  ;;  %v3876_v56 = vadd.f32 %v10091_v59, %v3713_v14  ;;  %v3620_v14 = vrot.slane %v10090_v63, 1 }
 0x3c6   : > { %v5127_v22 = vadd.f32 %v8564_v7, %v5061_v19  ;;  %4328 = vrot.lane.b32.xlu1 %v10089_v29, %s7497_s18  ;;  %v4566_v43 = vsel %vm4515_vm3, %v4563_v26, %v4565_v13  ;;  %v3976_v19 = vrot.slane %v10090_v63, 7 }
 0x3c7   : > { %4681 = vrot.lane.b32.xlu0 %v4564_v1, %s7503_s15  ;;  %v10092_v1 = vrot.slane %v10085_v16, 7 }
 0x3c8   : > { %v5186_v49 = vmax.f32 %v5127_v22, 0.0  ;;  %v4660_v25 = vpop.permute.xlu1 %4659  ;;  %v3977_v26 = vsel %vm3922_vm2, %v3974_v28, %v3976_v19 }
 0x3c9   : > { %v4069_v45 = vpop.permute.xlu0 %4068  ;;  %v4824_v6 = vadd.f32 %v4660_v25, %v4467_v44 }
 0x3ca   : > { %6745 = vmatmul.mubr.msk.f32.gmra.mrb[146].mxu1 %vm5236_vm5, %v5186_v49  ;;  %3736 = vrot.lane.b32.xlu1 %v3619_v11, %s7498_s19  ;;  %v3975_v49 = vsel %vm3922_vm2, %v10092_v1, %v3974_v28  ;;  %v4232_v11 = vadd.f32 %v4069_v45, %v3876_v56  ;;  %v3621_v28 = vsel %vm3566_vm1, %v3618_v36, %v3620_v14  ;;  %v4567_v56 = vrot.slane %v10090_v63, 6 }
 0x3cb   : > { %4330 = vrot.lane.b32.xlu0 %v10090_v63, %s7497_s18  ;;  %6747 = vmatprep.mubr.msk.f32.mxu1 %vm7501_vm4, %v10071_v37 }
 0x3cc   : > { %v4071_v9 = vpop.permute.xlu1 %4070 }
 0x3cd   : > { %v4898_v5 = vpop.permute.xlu0 %4897 }
 0x3ce   : > { %v5062_v22 = vadd.f32 %v4898_v5, %v4824_v6  ;;  %4683 = vrot.lane.b32.xlu1 %v4566_v43, %s7503_s15  ;;  %v4468_v5 = vadd.f32 %v4305_v58, %v4232_v11 }
 0x3cf   : > { %4092 = vrot.lane.b32.xlu0 %v3975_v49, %s7499_s20 }
 0x3d0   : > { %v5128_v25 = vadd.f32 %v8564_v7, %v5062_v22  ;;  %v4900_v44 = vpop.permute.xlu1 %4899 }
 0x3d1   : > { %v3715_v61 = vpop.permute.xlu0 %3714 }
 0x3d2   : > { %v5187_v23 = vmax.f32 %v5128_v25, 0.0  ;;  %4094 = vrot.lane.b32.xlu1 %v3977_v26, %s7499_s20  ;;  %v3877_v45 = vadd.f32 %v8370_v48, %v3715_v61  ;;  %v4568_v48 = vsel %vm4515_vm3, %v4565_v13, %v4567_v56 }
 0x3d3   : > { %4921 = vrot.lane.b32.xlu0 %v3975_v49, %s7504_s25  ;;  %v10093_v49 = vld [vmem:[#allocation20_spill] sm:$0xff] }
 0x3d4   : > { %6748 = vmatmul.mubr.msk.f32.gmra.mrb[148].mxu1 %vm5236_vm5, %v5187_v23  ;;  %v4309_v6 = vpop.permute.xlu1 %4308  ;;  %v3622_v58 = vrot.slane %v10093_v49, 1  ;;  %v4233_v11 = vadd.f32 %v4071_v9, %v3877_v45  ;;  %v3978_v9 = vrot.slane %v10093_v49, 7  ;;  %v10094_v45 = vld [vmem:[#allocation21_spill] sm:$0xff] }
 0x3d5   : > { %v4662_v43 = vpop.permute.xlu0 %4661  ;;  %6750 = vmatprep.mubr.msk.f32.mxu1 %vm7501_vm4, %v10071_v37 }
 0x3d6   : > { %v4825_v59 = vadd.f32 %v4662_v43, %v4468_v5  ;;  %4923 = vrot.lane.b32.xlu1 %v3977_v26, %s7504_s25  ;;  %v3623_v5 = vsel %vm3566_vm1, %v3620_v14, %v3622_v58  ;;  %v4469_v43 = vadd.f32 %v4307_v38, %v4233_v11 }
 0x3d7   : > { %3738 = vrot.lane.b32.xlu0 %v3621_v28, %s7498_s19 }
 0x3d8   : > { %v5063_v22 = vadd.f32 %v4900_v44, %v4825_v59  ;;  %v3717_v1 = vpop.permute.xlu1 %3716  ;;  %v4569_v44 = vrot.slane %v10093_v49, 6 }
 0x3d9   : > { %v4311_v23 = vpop.permute.xlu0 %4310  ;;  %v3878_v38 = vadd.f32 %v8377_v62, %v3717_v1 }
 0x3da   : > { %v5129_v25 = vadd.f32 %v8564_v7, %v5063_v22  ;;  %4332 = vrot.lane.b32.xlu1 %v10093_v49, %s7497_s18  ;;  %v4570_v14 = vsel %vm4515_vm3, %v4567_v56, %v4569_v44  ;;  %v3980_v22 = vrot.slane %v10094_v45, 7  ;;  %v3624_v56 = vrot.slane %v10094_v45, 1 }
 0x3db   : > { %4685 = vrot.lane.b32.xlu0 %v4568_v48, %s7503_s15 }
 0x3dc   : > { %v5188_v61 = vmax.f32 %v5129_v25, 0.0  ;;  %v4664_v36 = vpop.permute.xlu1 %4663  ;;  %v3979_v25 = vsel %vm3922_vm2, %v3976_v19, %v3978_v9 }
 0x3dd   : > { %v4073_v26 = vpop.permute.xlu0 %4072  ;;  %v4826_v13 = vadd.f32 %v4664_v36, %v4469_v43  ;;  %v3981_v43 = vsel %vm3922_vm2, %v3978_v9, %v3980_v22  ;;  %v3625_v9 = vsel %vm3566_vm1, %v3622_v58, %v3624_v56 }
 0x3de   : > { %6751 = vmatmul.mubr.msk.f32.gmra.mrb[150].mxu1 %vm5236_vm5, %v5188_v61  ;;  %3740 = vrot.lane.b32.xlu1 %v3623_v5, %s7498_s19  ;;  %v4234_v48 = vadd.f32 %v4073_v26, %v3878_v38 }
 0x3df   : > { %4334 = vrot.lane.b32.xlu0 %v10094_v45, %s7497_s18  ;;  %6753 = vmatprep.mubr.msk.f32.mxu1 %vm7501_vm4, %v10071_v37 }
 0x3e0   : > { %v4075_v59 = vpop.permute.xlu1 %4074  ;;  %v4470_v19 = vadd.f32 %v4309_v6, %v4234_v48  ;;  %v10095_v6 = vld [vmem:[#allocation22_spill] sm:$0xff] }
 0x3e1   : > { %v4902_v28 = vpop.permute.xlu0 %4901 }
 0x3e2   : > { %v5064_v11 = vadd.f32 %v4902_v28, %v4826_v13  ;;  %4687 = vrot.lane.b32.xlu1 %v4570_v14, %s7503_s15  ;;  %v4571_v28 = vrot.slane %v10094_v45, 6 }
 0x3e3   : > { %4096 = vrot.lane.b32.xlu0 %v3979_v25, %s7499_s20 }
 0x3e4   : > { %v5130_v61 = vadd.f32 %v8564_v7, %v5064_v11  ;;  %v4904_v5 = vpop.permute.xlu1 %4903  ;;  %v3626_v11 = vrot.slane %v10095_v6, 1 }
 0x3e5   : > { %v3719_v36 = vpop.permute.xlu0 %3718 }
 0x3e6   : > { %v5189_v52 = vmax.f32 %v5130_v61, 0.0  ;;  %4098 = vrot.lane.b32.xlu1 %v3981_v43, %s7499_s20  ;;  %v3879_v26 = vadd.f32 %v8389_v33, %v3719_v36  ;;  %v4572_v33 = vsel %vm4515_vm3, %v4569_v44, %v4571_v28 }
 0x3e7   : > { %4925 = vrot.lane.b32.xlu0 %v3979_v25, %s7504_s25 }
 0x3e8   : > { %6754 = vmatmul.mubr.msk.f32.gmra.mrb[152].mxu1 %vm5236_vm5, %v5189_v52  ;;  %v4313_v62 = vpop.permute.xlu1 %4312  ;;  %v4235_v25 = vadd.f32 %v4075_v59, %v3879_v26  ;;  %v3982_v59 = vrot.slane %v10095_v6, 7 }
 0x3e9   : > { %v4666_v1 = vpop.permute.xlu0 %4665  ;;  %6756 = vmatprep.mubr.msk.f32.mxu1 %vm7501_vm4, %v10071_v37 }
 0x3ea   : > { %v4827_v13 = vadd.f32 %v4666_v1, %v4470_v19  ;;  %4927 = vrot.lane.b32.xlu1 %v3981_v43, %s7504_s25  ;;  %v4573_v43 = vrot.slane %v10095_v6, 6  ;;  %v4471_v19 = vadd.f32 %v4311_v23, %v4235_v25  ;;  %v10096_v1 = vld [vmem:[#allocation23_spill] sm:$0xff]  ;;  %v3983_v25 = vsel %vm3922_vm2, %v3980_v22, %v3982_v59 }
 0x3eb   : > { %3742 = vrot.lane.b32.xlu0 %v3625_v9, %s7498_s19  ;;  %v3984_v9 = vrot.slane %v10096_v1, 7 }
 0x3ec   : > { %v5065_v14 = vadd.f32 %v4904_v5, %v4827_v13  ;;  %v3721_v38 = vpop.permute.xlu1 %3720  ;;  %v3627_v5 = vsel %vm3566_vm1, %v3624_v56, %v3626_v11  ;;  %v4574_v56 = vsel %vm4515_vm3, %v4571_v28, %v4573_v43  ;;  %v3628_v28 = vrot.slane %v10096_v1, 1 }
 0x3ed   : > { %v8966_v52 = vpop.permute.xlu0 %4314  ;;  %v3880_v23 = vadd.f32 %v8394_v51, %v3721_v38 }
 0x3ee   : > { %v5131_v48 = vadd.f32 %v8564_v7, %v5065_v14  ;;  %4336 = vrot.lane.b32.xlu1 %v10095_v6, %s7497_s18 }
 0x3ef   : > { %4689 = vrot.lane.b32.xlu0 %v4572_v33, %s7503_s15 }
 0x3f0   : > { %v5190_v58 = vmax.f32 %v5131_v48, 0.0  ;;  %v4668_v61 = vpop.permute.xlu1 %4667 }
 0x3f1   : > { %v4077_v36 = vpop.permute.xlu0 %4076  ;;  %v4828_v44 = vadd.f32 %v4668_v61, %v4471_v19 }
 0x3f2   : > { %6757 = vmatmul.mubr.msk.f32.gmra.mrb[154].mxu1 %vm5236_vm5, %v5190_v58  ;;  %3744 = vrot.lane.b32.xlu1 %v3627_v5, %s7498_s19  ;;  %v4236_v48 = vadd.f32 %v4077_v36, %v3880_v23  ;;  %v3985_v5 = vsel %vm3922_vm2, %v3982_v59, %v3984_v9  ;;  %v3629_v59 = vsel %vm3566_vm1, %v3626_v11, %v3628_v28 }
 0x3f3   : > { %4338 = vrot.lane.b32.xlu0 %v10096_v1, %s7497_s18  ;;  %6759 = vmatprep.mubr.msk.f32.mxu1 %vm7501_vm4, %v10071_v37 }
 0x3f4   : > { %v4079_v26 = vpop.permute.xlu1 %4078  ;;  %v4472_v22 = vadd.f32 %v4313_v62, %v4236_v48  ;;  %v10097_v62 = vld [vmem:[#allocation24_spill] sm:$0xff] }
 0x3f5   : > { %v4906_v13 = vpop.permute.xlu0 %4905 }
 0x3f6   : > { %v5066_v14 = vadd.f32 %v4906_v13, %v4828_v44  ;;  %4691 = vrot.lane.b32.xlu1 %v4574_v56, %s7503_s15  ;;  %v4575_v44 = vrot.slane %v10096_v1, 6 }
 0x3f7   : > { %4100 = vrot.lane.b32.xlu0 %v3983_v25, %s7499_s20 }
 0x3f8   : > { %v5132_v33 = vadd.f32 %v8564_v7, %v5066_v14  ;;  %v4908_v58 = vpop.permute.xlu1 %4907  ;;  %v3630_v14 = vrot.slane %v10097_v62, 1  ;;  %v4576_v11 = vsel %vm4515_vm3, %v4573_v43, %v4575_v44 }
 0x3f9   : > { %v3723_v61 = vpop.permute.xlu0 %3722 }
 0x3fa   : > { %v5191_v19 = vmax.f32 %v5132_v33, 0.0  ;;  %4102 = vrot.lane.b32.xlu1 %v3985_v5, %s7499_s20  ;;  %v3881_v7 = vadd.f32 %v8408_v24, %v3723_v61  ;;  %v9008_v24 = vld [vmem:[%s10014_s2] ss:$0 sm:$0xff] }
 0x3fb   : > { %4929 = vrot.lane.b32.xlu0 %v3983_v25, %s7504_s25 }
 0x3fc   : > { %6760 = vmatmul.mubr.msk.f32.gmra.mrb[156].mxu1 %vm5236_vm5, %v5191_v19  ;;  %v4317_v51 = vpop.permute.xlu1 %4316  ;;  %v4237_v25 = vadd.f32 %v4079_v26, %v3881_v7  ;;  %v4577_v26 = vrot.slane %v10097_v62, 6 }
 0x3fd   : > { %v4670_v38 = vpop.permute.xlu0 %4669  ;;  %6762 = vmatprep.mubr.msk.f32.mxu1 %vm7501_vm4, %v10071_v37 }
 0x3fe   : > { %v4829_v36 = vadd.f32 %v4670_v38, %v4472_v22  ;;  %4931 = vrot.lane.b32.xlu1 %v3985_v5, %s7504_s25  ;;  %v3631_v5 = vsel %vm3566_vm1, %v3628_v28, %v3630_v14  ;;  %v4473_v19 = vadd.f32 %v8966_v52, %v4237_v25  ;;  %v3986_v22 = vrot.slane %v10097_v62, 7  ;;  %v10098_v38 = vld [vmem:[#allocation25_spill] sm:$0xff] }
 0x3ff   : > { %3746 = vrot.lane.b32.xlu0 %v3629_v59, %s7498_s19  ;;  %v4578_v28 = vsel %vm4515_vm3, %v4575_v44, %v4577_v26  ;;  %v3988_v59 = vrot.slane %v10098_v38, 7  ;;  %v3632_v44 = vrot.slane %v10098_v38, 1 }
 0x400   : > { %v5067_v13 = vadd.f32 %v4908_v58, %v4829_v36  ;;  %v3725_v56 = vpop.permute.xlu1 %3724  ;;  %v3987_v25 = vsel %vm3922_vm2, %v3984_v9, %v3986_v22 }
 0x401   : > { %v9002_v23 = vpop.permute.xlu0 %4318  ;;  %v3882_v52 = vadd.f32 %v8415_v17, %v3725_v56 }
 0x402   : > { %v5133_v48 = vadd.f32 %v9008_v24, %v5067_v13  ;;  %4340 = vrot.lane.b32.xlu1 %v10097_v62, %s7497_s18 }
 0x403   : > { %4693 = vrot.lane.b32.xlu0 %v4576_v11, %s7503_s15 }
 0x404   : > { %v5192_v33 = vmax.f32 %v5133_v48, 0.0  ;;  %v4672_v58 = vpop.permute.xlu1 %4671 }
 0x405   : > { %v4081_v61 = vpop.permute.xlu0 %4080  ;;  %v4830_v43 = vadd.f32 %v4672_v58, %v4473_v19 }
 0x406   : > { %6763 = vmatmul.mubr.msk.f32.gmra.mrb[158].mxu1 %vm5236_vm5, %v5192_v33  ;;  %3748 = vrot.lane.b32.xlu1 %v3631_v5, %s7498_s19  ;;  %v4238_v48 = vadd.f32 %v4081_v61, %v3882_v52  ;;  %v3989_v5 = vsel %vm3922_vm2, %v3986_v22, %v3988_v59  ;;  %v3633_v22 = vsel %vm3566_vm1, %v3630_v14, %v3632_v44 }
 0x407   : > { %4342 = vrot.lane.b32.xlu0 %v10098_v38, %s7497_s18  ;;  %6765 = vmatprep.mubr.msk.f32.mxu1 %vm7501_vm4, %v10071_v37 }
 0x408   : > { %v4083_v7 = vpop.permute.xlu1 %4082  ;;  %v4474_v9 = vadd.f32 %v4317_v51, %v4238_v48 }
 0x409   : > { %v4910_v36 = vpop.permute.xlu0 %4909 }
 0x40a   : > { %v5068_v13 = vadd.f32 %v4910_v36, %v4830_v43  ;;  %4695 = vrot.lane.b32.xlu1 %v4578_v28, %s7503_s15  ;;  %v4579_v36 = vrot.slane %v10098_v38, 6 }
 0x40b   : > { %4104 = vrot.lane.b32.xlu0 %v3987_v25, %s7499_s20 }
 0x40c   : > { %v5134_v11 = vadd.f32 %v9008_v24, %v5068_v13  ;;  %v4912_v33 = vpop.permute.xlu1 %4911 }
 0x40d   : > { %v3727_v58 = vpop.permute.xlu0 %3726 }
 0x40e   : > { %v5193_v19 = vmax.f32 %v5134_v11, 0.0  ;;  %4106 = vrot.lane.b32.xlu1 %v3989_v5, %s7499_s20  ;;  %v3883_v61 = vadd.f32 %v8429_v31, %v3727_v58  ;;  %v4580_v31 = vsel %vm4515_vm3, %v4577_v26, %v4579_v36 }
 0x40f   : > { %4933 = vrot.lane.b32.xlu0 %v3987_v25, %s7504_s25  ;;  %v10099_v25 = vld [vmem:[#allocation26_spill] sm:$0xff] }
 0x410   : > { %6766 = vmatmul.mubr.msk.f32.gmra.mrb[160].mxu1 %vm5236_vm5, %v5193_v19  ;;  %v4321_v17 = vpop.permute.xlu1 %4320  ;;  %v3634_v51 = vrot.slane %v10099_v25, 1  ;;  %v4239_v48 = vadd.f32 %v4083_v7, %v3883_v61  ;;  %v3990_v7 = vrot.slane %v10099_v25, 7 }
 0x411   : > { %v4674_v56 = vpop.permute.xlu0 %4673  ;;  %6768 = vmatprep.mubr.msk.f32.mxu1 %vm7501_vm4, %v10071_v37 }
 0x412   : > { %v4831_v43 = vadd.f32 %v4674_v56, %v4474_v9  ;;  %4935 = vrot.lane.b32.xlu1 %v3989_v5, %s7504_s25  ;;  %v3635_v19 = vsel %vm3566_vm1, %v3632_v44, %v3634_v51  ;;  %v4475_v9 = vadd.f32 %v9002_v23, %v4239_v48 }
 0x413   : > { %3750 = vrot.lane.b32.xlu0 %v3633_v22, %s7498_s19 }
 0x414   : > { %v5069_v28 = vadd.f32 %v4912_v33, %v4831_v43  ;;  %v3729_v52 = vpop.permute.xlu1 %3728  ;;  %v4581_v33 = vrot.slane %v10099_v25, 6  ;;  %v3992_v43 = vrot.slane %v8570_v55, 7 }
 0x415   : > { %v4323_v13 = vpop.permute.xlu0 %4322  ;;  %v3884_v23 = vadd.f32 %v8435_v35, %v3729_v52 }
 0x416   : > { %v5135_v11 = vadd.f32 %v9008_v24, %v5069_v28  ;;  %4344 = vrot.lane.b32.xlu1 %v10099_v25, %s7497_s18  ;;  %v4582_v44 = vsel %vm4515_vm3, %v4579_v36, %v4581_v33  ;;  %v3991_v28 = vsel %vm3922_vm2, %v3988_v59, %v3990_v7  ;;  %v3636_v36 = vrot.slane %v8570_v55, 1 }
 0x417   : > { %4697 = vrot.lane.b32.xlu0 %v4580_v31, %s7503_s15 }
 0x418   : > { %v5194_v14 = vmax.f32 %v5135_v11, 0.0  ;;  %v4676_v58 = vpop.permute.xlu1 %4675 }
 0x419   : > { %v4085_v5 = vpop.permute.xlu0 %4084  ;;  %v4832_v26 = vadd.f32 %v4676_v58, %v4475_v9  ;;  %v3993_v58 = vsel %vm3922_vm2, %v3990_v7, %v3992_v43  ;;  %v3637_v7 = vsel %vm3566_vm1, %v3634_v51, %v3636_v36 }
 0x41a   : > { %6769 = vmatmul.mubr.msk.f32.gmra.mrb[162].mxu1 %vm5236_vm5, %v5194_v14  ;;  %3752 = vrot.lane.b32.xlu1 %v3635_v19, %s7498_s19  ;;  %v4240_v48 = vadd.f32 %v4085_v5, %v3884_v23 }
 0x41b   : > { %4346 = vrot.lane.b32.xlu0 %v8570_v55, %s7497_s18  ;;  %6771 = vmatprep.mubr.msk.f32.mxu1 %vm7501_vm4, %v10071_v37 }
 0x41c   : > { %v4087_v56 = vpop.permute.xlu1 %4086  ;;  %v4476_v59 = vadd.f32 %v4321_v17, %v4240_v48  ;;  %v3638_v17 = vrot.slane %v8583_v60, 1 }
 0x41d   : > { %v4914_v61 = vpop.permute.xlu0 %4913 }
 0x41e   : > { %v5070_v22 = vadd.f32 %v4914_v61, %v4832_v26  ;;  %4699 = vrot.lane.b32.xlu1 %v4582_v44, %s7503_s15  ;;  %v4583_v26 = vrot.slane %v8570_v55, 6 }
 0x41f   : > { %4108 = vrot.lane.b32.xlu0 %v3991_v28, %s7499_s20 }
 0x420   : > { %v5136_v11 = vadd.f32 %v9008_v24, %v5070_v22  ;;  %v4916_v31 = vpop.permute.xlu1 %4915 }
 0x421   : > { %v3731_v14 = vpop.permute.xlu0 %3730 }
 0x422   : > { %v5195_v19 = vmax.f32 %v5136_v11, 0.0  ;;  %4110 = vrot.lane.b32.xlu1 %v3993_v58, %s7499_s20  ;;  %v3885_v5 = vadd.f32 %v8447_v53, %v3731_v14  ;;  %v4584_v53 = vsel %vm4515_vm3, %v4581_v33, %v4583_v26  ;;  %v4585_v14 = vrot.slane %v8583_v60, 6 }
 0x423   : > { %4937 = vrot.lane.b32.xlu0 %v3991_v28, %s7504_s25 }
 0x424   : > { %6772 = vmatmul.mubr.msk.f32.gmra.mrb[164].mxu1 %vm5236_vm5, %v5195_v19  ;;  %v4325_v35 = vpop.permute.xlu1 %4324  ;;  %v4241_v22 = vadd.f32 %v4087_v56, %v3885_v5  ;;  %v3994_v56 = vrot.slane %v8583_v60, 7  ;;  %v4586_v5 = vsel %vm4515_vm3, %v4583_v26, %v4585_v14 }
 0x425   : > { %v4678_v52 = vpop.permute.xlu0 %4677  ;;  %6774 = vmatprep.mubr.msk.f32.mxu1 %vm7501_vm4, %v10071_v37 }
 0x426   : > { %v4833_v9 = vadd.f32 %v4678_v52, %v4476_v59  ;;  %4939 = vrot.lane.b32.xlu1 %v3993_v58, %s7504_s25  ;;  %v4477_v58 = vadd.f32 %v4323_v13, %v4241_v22  ;;  %v3996_v13 = vrot.slane %v8593_v41, 7 }
 0x427   : > { %3754 = vrot.lane.b32.xlu0 %v3637_v7, %s7498_s19 }
 0x428   : > { %v5071_v61 = vadd.f32 %v4916_v31, %v4833_v9  ;;  %v3733_v44 = vpop.permute.xlu1 %3732  ;;  %v3639_v31 = vsel %vm3566_vm1, %v3636_v36, %v3638_v17  ;;  %v3997_v26 = vsel %vm3922_vm2, %v3994_v56, %v3996_v13 }
 0x429   : > { %v9079_v23 = vpop.permute.xlu0 %4326  ;;  %v3886_v9 = vadd.f32 %v8453_v4, %v3733_v44  ;;  %v5774_v4 = vld [vmem:[%s10016_s4] sm:$0xff] }
 0x42a   : > { %v5137_v28 = vadd.f32 %v9008_v24, %v5071_v61  ;;  %4348 = vrot.lane.b32.xlu1 %v8583_v60, %s7497_s18  ;;  %v3995_v61 = vsel %vm3922_vm2, %v3992_v43, %v3994_v56  ;;  %v5775_v43 = vld [vmem:[%s10016_s4 + $0x8] sm:$0xff] }
 0x42b   : > { %4701 = vrot.lane.b32.xlu0 %v4584_v53, %s7503_s15 }
 0x42c   : > { %v5196_v51 = vmax.f32 %v5137_v28, 0.0  ;;  %v4680_v48 = vpop.permute.xlu1 %4679 }
 0x42d   : > { %v4089_v11 = vpop.permute.xlu0 %4088  ;;  %v4834_v19 = vadd.f32 %v4680_v48, %v4477_v58  ;;  %v3640_v48 = vrot.slane %v8593_v41, 1 }
 0x42e   : > { %6775 = vmatmul.mubr.msk.f32.gmra.mrb[166].mxu1 %vm5236_vm5, %v5196_v51  ;;  %3756 = vrot.lane.b32.xlu1 %v3639_v31, %s7498_s19  ;;  %v4242_v22 = vadd.f32 %v4089_v11, %v3886_v9 }
 0x42f   : > { %4350 = vrot.lane.b32.xlu0 %v8593_v41, %s7497_s18  ;;  %v5480_v33 = vpop.f32.mrb[124].mxu1  ;;  %6777 = vmatprep.mubr.msk.f32.mxu1 %vm7501_vm4, %v10071_v37 }
 0x430   : > { %v4091_v59 = vpop.permute.xlu1 %4090  ;;  %v6713_v52 = vpop.f32.mrb[125].mxu1  ;;  %v4478_v11 = vadd.f32 %v4325_v35, %v4242_v22 }
 0x431   : > { %v4918_v36 = vpop.permute.xlu0 %4917  ;;  %v4587_v52 = vrot.slane %v8593_v41, 6 }
 0x432   : > { %v5072_v7 = vadd.f32 %v4918_v36, %v4834_v19  ;;  %4703 = vrot.lane.b32.xlu1 %v4586_v5, %s7503_s15  ;;  %v3641_v19 = vsel %vm3566_vm1, %v3638_v17, %v3640_v48  ;;  %v9120_v36 = vmul.f32 %v5774_v4, %v5480_v33  ;;  %v3642_v33 = vrot.slane %v8607_v12, 1 }
 0x433   : > { %4112 = vrot.lane.b32.xlu0 %v3995_v61, %s7499_s20 }
 0x434   : > { %v5138_v28 = vadd.f32 %v9008_v24, %v5072_v7  ;;  %v4920_v53 = vpop.permute.xlu1 %4919 }
 0x435   : > { %v3735_v51 = vpop.permute.xlu0 %3734 }
 0x436   : > { %v5197_v31 = vmax.f32 %v5138_v28, 0.0  ;;  %4114 = vrot.lane.b32.xlu1 %v3997_v26, %s7499_s20  ;;  %v3887_v5 = vadd.f32 %v10083_v46, %v3735_v51  ;;  %v4588_v51 = vsel %vm4515_vm3, %v4585_v14, %v4587_v52 }
 0x437   : > { %4941 = vrot.lane.b32.xlu0 %v3995_v61, %s7504_s25 }
 0x438   : > { %6778 = vmatmul.mubr.msk.f32.gmra.mrb[168].mxu1 %vm5236_vm5, %v5197_v31  ;;  %v4329_v44 = vpop.permute.xlu1 %4328  ;;  %v4243_v31 = vadd.f32 %v4091_v59, %v3887_v5  ;;  %v3998_v59 = vrot.slane %v8607_v12, 7 }
 0x439   : > { %v4682_v58 = vpop.permute.xlu0 %4681  ;;  %v5485_v56 = vpop.f32.mrb[126].mxu1  ;;  %6780 = vmatprep.mubr.msk.f32.mxu1 %vm7501_vm4, %v10071_v37 }
 0x43a   : > { %v4835_v9 = vadd.f32 %v4682_v58, %v4478_v11  ;;  %v9123_v7 = vmul.f32 %v5775_v43, %v5485_v56  ;;  %4943 = vrot.lane.b32.xlu1 %v3997_v26, %s7504_s25  ;;  %v6716_v61 = vpop.f32.mrb[127].mxu1  ;;  %v3643_v43 = vsel %vm3566_vm1, %v3640_v48, %v3642_v33  ;;  %v4589_v11 = vrot.slane %v8607_v12, 6 }
 0x43b   : > { %3758 = vrot.lane.b32.xlu0 %v3641_v19, %s7498_s19  ;;  %v4479_v58 = vadd.f32 %v9079_v23, %v4243_v31  ;;  %v4000_v23 = vrot.slane %v8613_v34, 7  ;;  %v3999_v31 = vsel %vm3922_vm2, %v3996_v13, %v3998_v59  ;;  %v5776_v13 = vld [vmem:[%s10016_s4 + $0x10] sm:$0xff] }
 0x43c   : > { %v5073_v35 = vadd.f32 %v4920_v53, %v4835_v9  ;;  %v3737_v22 = vpop.permute.xlu1 %3736  ;;  %v4590_v9 = vsel %vm4515_vm3, %v4587_v52, %v4589_v11 }
 0x43d   : > { %v9129_v28 = vpop.permute.xlu0 %4330  ;;  %v3888_v61 = vadd.f32 %v10085_v16, %v3737_v22  ;;  %v4001_v52 = vsel %vm3922_vm2, %v3998_v59, %v4000_v23  ;;  %v3644_v16 = vrot.slane %v8613_v34, 1 }
 0x43e   : > { %v5139_v46 = vadd.f32 %v9008_v24, %v5073_v35  ;;  %4352 = vrot.lane.b32.xlu1 %v8607_v12, %s7497_s18 }
 0x43f   : > { %4705 = vrot.lane.b32.xlu0 %v4588_v51, %s7503_s15 }
 0x440   : > { %v5198_v26 = vmax.f32 %v5139_v46, 0.0  ;;  %v4684_v53 = vpop.permute.xlu1 %4683 }
 0x441   : > { %v4093_v4 = vpop.permute.xlu0 %4092  ;;  %v4836_v56 = vadd.f32 %v4684_v53, %v4479_v58 }
 0x442   : > { %6781 = vmatmul.mubr.msk.f32.gmra.mrb[170].mxu1 %vm5236_vm5, %v5198_v26  ;;  %3760 = vrot.lane.b32.xlu1 %v3643_v43, %s7498_s19  ;;  %v4244_v46 = vadd.f32 %v4093_v4, %v3888_v61  ;;  %v5777_v4 = vld [vmem:[%s10016_s4 + $0x18] sm:$0xff] }
 0x443   : > { %4354 = vrot.lane.b32.xlu0 %v8613_v34, %s7497_s18  ;;  %v5490_v14 = vpop.f32.mrb[128].mxu1  ;;  %6783 = vmatprep.mubr.msk.f32.mxu1 %vm7501_vm4, %v10071_v37 }
 0x444   : > { %v4095_v19 = vpop.permute.xlu1 %4094  ;;  %v6719_v48 = vpop.f32.mrb[129].mxu1  ;;  %v4480_v58 = vadd.f32 %v4329_v44, %v4244_v46 }
 0x445   : > { %v4922_v5 = vpop.permute.xlu0 %4921  ;;  %v3645_v48 = vsel %vm3566_vm1, %v3642_v33, %v3644_v16 }
 0x446   : > { %v5074_v35 = vadd.f32 %v4922_v5, %v4836_v56  ;;  %4707 = vrot.lane.b32.xlu1 %v4590_v9, %s7503_s15  ;;  %v4591_v5 = vrot.slane %v8613_v34, 6  ;;  %v9173_v9 = vmul.f32 %v5776_v13, %v5490_v14  ;;  %v3646_v14 = vrot.slane %v8632_v57, 1 }
 0x447   : > { %4116 = vrot.lane.b32.xlu0 %v3999_v31, %s7499_s20 }
 0x448   : > { %v5140_v51 = vadd.f32 %v9008_v24, %v5074_v35  ;;  %v4924_v26 = vpop.permute.xlu1 %4923 }
 0x449   : > { %v3739_v53 = vpop.permute.xlu0 %3738 }
 0x44a   : > { %v5199_v22 = vmax.f32 %v5140_v51, 0.0  ;;  %4118 = vrot.lane.b32.xlu1 %v4001_v52, %s7499_s20  ;;  %v3889_v61 = vadd.f32 %v10089_v29, %v3739_v53  ;;  %v4592_v53 = vsel %vm4515_vm3, %v4589_v11, %v4591_v5 }
 0x44b   : > { %4945 = vrot.lane.b32.xlu0 %v3999_v31, %s7504_s25 }
 0x44c   : > { %6784 = vmatmul.mubr.msk.f32.gmra.mrb[172].mxu1 %vm5236_vm5, %v5199_v22  ;;  %v4333_v43 = vpop.permute.xlu1 %4332  ;;  %v4245_v13 = vadd.f32 %v4095_v19, %v3889_v61  ;;  %v4002_v19 = vrot.slane %v8632_v57, 7 }
 0x44d   : > { %v4686_v59 = vpop.permute.xlu0 %4685  ;;  %v5495_v56 = vpop.f32.mrb[130].mxu1  ;;  %6786 = vmatprep.mubr.msk.f32.mxu1 %vm7501_vm4, %v10071_v37 }
 0x44e   : > { %v4837_v35 = vadd.f32 %v4686_v59, %v4480_v58  ;;  %v9176_v31 = vmul.f32 %v5777_v4, %v5495_v56  ;;  %4947 = vrot.lane.b32.xlu1 %v4001_v52, %s7504_s25  ;;  %v6722_v51 = vpop.f32.mrb[131].mxu1  ;;  %v3647_v58 = vsel %vm3566_vm1, %v3644_v16, %v3646_v14  ;;  %v4593_v59 = vrot.slane %v8632_v57, 6 }
 0x44f   : > { %3762 = vrot.lane.b32.xlu0 %v3645_v48, %s7498_s19  ;;  %v4481_v56 = vadd.f32 %v9129_v28, %v4245_v13  ;;  %v4004_v28 = vrot.slane %v8638_v15, 7 }
 0x450   : > { %v5075_v44 = vadd.f32 %v4924_v26, %v4837_v35  ;;  %v3741_v46 = vpop.permute.xlu1 %3740  ;;  %v4594_v51 = vsel %vm4515_vm3, %v4591_v5, %v4593_v59 }
 0x451   : > { %v9182_v22 = vpop.permute.xlu0 %4334  ;;  %v4005_v5 = vsel %vm3922_vm2, %v4002_v19, %v4004_v28 }
 0x452   : > { %v5141_v29 = vadd.f32 %v9008_v24, %v5075_v44  ;;  %4356 = vrot.lane.b32.xlu1 %v8632_v57, %s7497_s18  ;;  %v3890_v44 = vadd.f32 %v10090_v63, %v3741_v46  ;;  %v3648_v63 = vrot.slane %v8638_v15, 1 }
 0x453   : > { %4709 = vrot.lane.b32.xlu0 %v4592_v53, %s7503_s15 }
 0x454   : > { %v5200_v52 = vmax.f32 %v5141_v29, 0.0  ;;  %v4688_v26 = vpop.permute.xlu1 %4687  ;;  %v4003_v29 = vsel %vm3922_vm2, %v4000_v23, %v4002_v19  ;;  %v5778_v23 = vld [vmem:[%s10016_s4 + $0x20] sm:$0xff] }
 0x455   : > { %v4097_v4 = vpop.permute.xlu0 %4096  ;;  %v4838_v48 = vadd.f32 %v4688_v26, %v4481_v56 }
 0x456   : > { %6787 = vmatmul.mubr.msk.f32.gmra.mrb[174].mxu1 %vm5236_vm5, %v5200_v52  ;;  %3764 = vrot.lane.b32.xlu1 %v3647_v58, %s7498_s19  ;;  %v4246_v53 = vadd.f32 %v4097_v4, %v3890_v44  ;;  %v5779_v4 = vld [vmem:[%s10016_s4 + $0x28] sm:$0xff] }
 0x457   : > { %4358 = vrot.lane.b32.xlu0 %v8638_v15, %s7497_s18  ;;  %v5500_v11 = vpop.f32.mrb[132].mxu1  ;;  %6789 = vmatprep.mubr.msk.f32.mxu1 %vm7501_vm4, %v10071_v37 }
 0x458   : > { %v4099_v61 = vpop.permute.xlu1 %4098  ;;  %v6725_v16 = vpop.f32.mrb[133].mxu1  ;;  %v9226_v44 = vmul.f32 %v5778_v23, %v5500_v11  ;;  %v3650_v11 = vrot.slane %v8655_v54, 1 }
 0x459   : > { %v4926_v35 = vpop.permute.xlu0 %4925 }
 0x45a   : > { %v5076_v13 = vadd.f32 %v4926_v35, %v4838_v48  ;;  %4711 = vrot.lane.b32.xlu1 %v4594_v51, %s7503_s15  ;;  %v4482_v48 = vadd.f32 %v4333_v43, %v4246_v53  ;;  %v3649_v35 = vsel %vm3566_vm1, %v3646_v14, %v3648_v63  ;;  %v4595_v51 = vrot.slane %v8638_v15, 6 }
 0x45b   : > { %4120 = vrot.lane.b32.xlu0 %v4003_v29, %s7499_s20 }
 0x45c   : > { %v5142_v52 = vadd.f32 %v9008_v24, %v5076_v13  ;;  %v4928_v26 = vpop.permute.xlu1 %4927 }
 0x45d   : > { %v3743_v58 = vpop.permute.xlu0 %3742 }
 0x45e   : > { %v5201_v46 = vmax.f32 %v5142_v52, 0.0  ;;  %4122 = vrot.lane.b32.xlu1 %v4005_v5, %s7499_s20  ;;  %v3891_v13 = vadd.f32 %v10093_v49, %v3743_v58  ;;  %v4596_v58 = vsel %vm4515_vm3, %v4593_v59, %v4595_v51 }
 0x45f   : > { %4949 = vrot.lane.b32.xlu0 %v4003_v29, %s7504_s25 }
 0x460   : > { %6790 = vmatmul.mubr.msk.f32.gmra.mrb[176].mxu1 %vm5236_vm5, %v5201_v46  ;;  %v4337_v56 = vpop.permute.xlu1 %4336  ;;  %v4247_v23 = vadd.f32 %v4099_v61, %v3891_v13  ;;  %v4006_v61 = vrot.slane %v8655_v54, 7 }
 0x461   : > { %v4690_v19 = vpop.permute.xlu0 %4689  ;;  %v5505_v16 = vpop.f32.mrb[134].mxu1  ;;  %6792 = vmatprep.mubr.msk.f32.mxu1 %vm7501_vm4, %v10071_v37 }
 0x462   : > { %v4839_v29 = vadd.f32 %v4690_v19, %v4482_v48  ;;  %v9229_v52 = vmul.f32 %v5779_v4, %v5505_v16  ;;  %4951 = vrot.lane.b32.xlu1 %v4005_v5, %s7504_s25  ;;  %v6728_v46 = vpop.f32.mrb[135].mxu1  ;;  %v3651_v48 = vsel %vm3566_vm1, %v3648_v63, %v3650_v11  ;;  %v4597_v19 = vrot.slane %v8655_v54, 6 }
 0x463   : > { %3766 = vrot.lane.b32.xlu0 %v3649_v35, %s7498_s19  ;;  %v4483_v16 = vadd.f32 %v9182_v22, %v4247_v23  ;;  %v4008_v22 = vrot.slane %v8662_v40, 7 }
 0x464   : > { %v5077_v43 = vadd.f32 %v4928_v26, %v4839_v29  ;;  %v3745_v53 = vpop.permute.xlu1 %3744  ;;  %v4598_v46 = vsel %vm4515_vm3, %v4595_v51, %v4597_v19 }
 0x465   : > { %v9235_v33 = vpop.permute.xlu0 %4338  ;;  %v4009_v51 = vsel %vm3922_vm2, %v4006_v61, %v4008_v22 }
 0x466   : > { %v5143_v49 = vadd.f32 %v9008_v24, %v5077_v43  ;;  %4360 = vrot.lane.b32.xlu1 %v8655_v54, %s7497_s18  ;;  %v3892_v43 = vadd.f32 %v10094_v45, %v3745_v53  ;;  %v3652_v45 = vrot.slane %v8662_v40, 1 }
 0x467   : > { %4713 = vrot.lane.b32.xlu0 %v4596_v58, %s7503_s15 }
 0x468   : > { %v5202_v5 = vmax.f32 %v5143_v49, 0.0  ;;  %v4692_v26 = vpop.permute.xlu1 %4691  ;;  %v4007_v49 = vsel %vm3922_vm2, %v4004_v28, %v4006_v61  ;;  %v5780_v28 = vld [vmem:[%s10016_s4 + $0x30] sm:$0xff] }
 0x469   : > { %v4101_v4 = vpop.permute.xlu0 %4100  ;;  %v4840_v35 = vadd.f32 %v4692_v26, %v4483_v16 }
 0x46a   : > { %6793 = vmatmul.mubr.msk.f32.gmra.mrb[178].mxu1 %vm5236_vm5, %v5202_v5  ;;  %3768 = vrot.lane.b32.xlu1 %v3651_v48, %s7498_s19  ;;  %v4248_v58 = vadd.f32 %v4101_v4, %v3892_v43  ;;  %v5781_v4 = vld [vmem:[%s10016_s4 + $0x38] sm:$0xff] }
 0x46b   : > { %4362 = vrot.lane.b32.xlu0 %v8662_v40, %s7497_s18  ;;  %v5510_v59 = vpop.f32.mrb[136].mxu1  ;;  %6795 = vmatprep.mubr.msk.f32.mxu1 %vm7501_vm4, %v10071_v37 }
 0x46c   : > { %v4103_v13 = vpop.permute.xlu1 %4102  ;;  %v6731_v63 = vpop.f32.mrb[137].mxu1  ;;  %v9279_v43 = vmul.f32 %v5780_v28, %v5510_v59  ;;  %v3654_v59 = vrot.slane %v8679_v8, 1 }
 0x46d   : > { %v4930_v29 = vpop.permute.xlu0 %4929 }
 0x46e   : > { %v5078_v23 = vadd.f32 %v4930_v29, %v4840_v35  ;;  %4715 = vrot.lane.b32.xlu1 %v4598_v46, %s7503_s15  ;;  %v4484_v35 = vadd.f32 %v4337_v56, %v4248_v58  ;;  %v3653_v29 = vsel %vm3566_vm1, %v3650_v11, %v3652_v45  ;;  %v4599_v46 = vrot.slane %v8662_v40, 6 }
 0x46f   : > { %4124 = vrot.lane.b32.xlu0 %v4007_v49, %s7499_s20 }
 0x470   : > { %v5144_v5 = vadd.f32 %v9008_v24, %v5078_v23  ;;  %v4932_v26 = vpop.permute.xlu1 %4931 }
 0x471   : > { %v3747_v48 = vpop.permute.xlu0 %3746 }
 0x472   : > { %v5203_v53 = vmax.f32 %v5144_v5, 0.0  ;;  %4126 = vrot.lane.b32.xlu1 %v4009_v51, %s7499_s20  ;;  %v3893_v23 = vadd.f32 %v10095_v6, %v3747_v48  ;;  %v4600_v48 = vsel %vm4515_vm3, %v4597_v19, %v4599_v46 }
 0x473   : > { %4953 = vrot.lane.b32.xlu0 %v4007_v49, %s7504_s25 }
 0x474   : > { %6796 = vmatmul.mubr.msk.f32.gmra.mrb[180].mxu1 %vm5236_vm5, %v5203_v53  ;;  %v4341_v16 = vpop.permute.xlu1 %4340  ;;  %v4249_v28 = vadd.f32 %v4103_v13, %v3893_v23  ;;  %v4010_v13 = vrot.slane %v8679_v8, 7 }
 0x475   : > { %v4694_v61 = vpop.permute.xlu0 %4693  ;;  %v5515_v63 = vpop.f32.mrb[138].mxu1  ;;  %6798 = vmatprep.mubr.msk.f32.mxu1 %vm7501_vm4, %v10071_v37 }
 0x476   : > { %v4841_v49 = vadd.f32 %v4694_v61, %v4484_v35  ;;  %v9282_v5 = vmul.f32 %v5781_v4, %v5515_v63  ;;  %4955 = vrot.lane.b32.xlu1 %v4009_v51, %s7504_s25  ;;  %v6734_v53 = vpop.f32.mrb[139].mxu1  ;;  %v3655_v35 = vsel %vm3566_vm1, %v3652_v45, %v3654_v59  ;;  %v4601_v61 = vrot.slane %v8679_v8, 6 }
 0x477   : > { %3770 = vrot.lane.b32.xlu0 %v3653_v29, %s7498_s19  ;;  %v4485_v63 = vadd.f32 %v9235_v33, %v4249_v28  ;;  %v4012_v33 = vrot.slane %v8685_v32, 7 }
 0x478   : > { %v5079_v56 = vadd.f32 %v4932_v26, %v4841_v49  ;;  %v3749_v58 = vpop.permute.xlu1 %3748  ;;  %v4602_v53 = vsel %vm4515_vm3, %v4599_v46, %v4601_v61 }
 0x479   : > { %v9288_v14 = vpop.permute.xlu0 %4342  ;;  %v4013_v46 = vsel %vm3922_vm2, %v4010_v13, %v4012_v33 }
 0x47a   : > { %v5145_v6 = vadd.f32 %v9008_v24, %v5079_v56  ;;  %4364 = vrot.lane.b32.xlu1 %v8679_v8, %s7497_s18  ;;  %v3894_v56 = vadd.f32 %v10096_v1, %v3749_v58  ;;  %v3656_v1 = vrot.slane %v8685_v32, 1 }
 0x47b   : > { %4717 = vrot.lane.b32.xlu0 %v4600_v48, %s7503_s15 }
 0x47c   : > { %v5204_v51 = vmax.f32 %v5145_v6, 0.0  ;;  %v4696_v26 = vpop.permute.xlu1 %4695  ;;  %v4011_v6 = vsel %vm3922_vm2, %v4008_v22, %v4010_v13  ;;  %v5782_v22 = vld [vmem:[%s10016_s4 + $0x40] sm:$0xff] }
 0x47d   : > { %v4105_v4 = vpop.permute.xlu0 %4104  ;;  %v4842_v29 = vadd.f32 %v4696_v26, %v4485_v63 }
 0x47e   : > { %6799 = vmatmul.mubr.msk.f32.gmra.mrb[182].mxu1 %vm5236_vm5, %v5204_v51  ;;  %3772 = vrot.lane.b32.xlu1 %v3655_v35, %s7498_s19  ;;  %v4250_v48 = vadd.f32 %v4105_v4, %v3894_v56  ;;  %v5783_v4 = vld [vmem:[%s10016_s4 + $0x48] sm:$0xff] }
 0x47f   : > { %4366 = vrot.lane.b32.xlu0 %v8685_v32, %s7497_s18  ;;  %v5520_v19 = vpop.f32.mrb[140].mxu1  ;;  %6801 = vmatprep.mubr.msk.f32.mxu1 %vm7501_vm4, %v10071_v37 }
 0x480   : > { %v4107_v23 = vpop.permute.xlu1 %4106  ;;  %v6737_v45 = vpop.f32.mrb[141].mxu1  ;;  %v9332_v56 = vmul.f32 %v5782_v22, %v5520_v19  ;;  %v3658_v19 = vrot.slane %v8700_v39, 1 }
 0x481   : > { %v4934_v49 = vpop.permute.xlu0 %4933 }
 0x482   : > { %v5080_v28 = vadd.f32 %v4934_v49, %v4842_v29  ;;  %4719 = vrot.lane.b32.xlu1 %v4602_v53, %s7503_s15  ;;  %v4486_v29 = vadd.f32 %v4341_v16, %v4250_v48  ;;  %v3657_v49 = vsel %vm3566_vm1, %v3654_v59, %v3656_v1  ;;  %v4603_v53 = vrot.slane %v8685_v32, 6 }
 0x483   : > { %4128 = vrot.lane.b32.xlu0 %v4011_v6, %s7499_s20 }
 0x484   : > { %v5146_v51 = vadd.f32 %v9008_v24, %v5080_v28  ;;  %v4936_v26 = vpop.permute.xlu1 %4935 }
 0x485   : > { %v3751_v35 = vpop.permute.xlu0 %3750 }
 0x486   : > { %v5205_v58 = vmax.f32 %v5146_v51, 0.0  ;;  %4130 = vrot.lane.b32.xlu1 %v4013_v46, %s7499_s20  ;;  %v3895_v28 = vadd.f32 %v10097_v62, %v3751_v35  ;;  %v4604_v35 = vsel %vm4515_vm3, %v4601_v61, %v4603_v53 }
 0x487   : > { %4957 = vrot.lane.b32.xlu0 %v4011_v6, %s7504_s25 }
 0x488   : > { %6802 = vmatmul.mubr.msk.f32.gmra.mrb[184].mxu1 %vm5236_vm5, %v5205_v58  ;;  %v4345_v63 = vpop.permute.xlu1 %4344  ;;  %v4251_v22 = vadd.f32 %v4107_v23, %v3895_v28  ;;  %v4014_v23 = vrot.slane %v8700_v39, 7 }
 0x489   : > { %v4698_v13 = vpop.permute.xlu0 %4697  ;;  %v5525_v45 = vpop.f32.mrb[142].mxu1  ;;  %6804 = vmatprep.mubr.msk.f32.mxu1 %vm7501_vm4, %v10071_v37 }
 0x48a   : > { %v4843_v6 = vadd.f32 %v4698_v13, %v4486_v29  ;;  %v9335_v51 = vmul.f32 %v5783_v4, %v5525_v45  ;;  %4959 = vrot.lane.b32.xlu1 %v4013_v46, %s7504_s25  ;;  %v6740_v58 = vpop.f32.mrb[143].mxu1  ;;  %v3659_v29 = vsel %vm3566_vm1, %v3656_v1, %v3658_v19  ;;  %v4605_v13 = vrot.slane %v8700_v39, 6 }
 0x48b   : > { %3774 = vrot.lane.b32.xlu0 %v3657_v49, %s7498_s19  ;;  %v4487_v45 = vadd.f32 %v9288_v14, %v4251_v22  ;;  %v4016_v14 = vrot.slane %v8711_v18, 7 }
 0x48c   : > { %v5081_v16 = vadd.f32 %v4936_v26, %v4843_v6  ;;  %v3753_v48 = vpop.permute.xlu1 %3752  ;;  %v4606_v58 = vsel %vm4515_vm3, %v4603_v53, %v4605_v13 }
 0x48d   : > { %v9341_v11 = vpop.permute.xlu0 %4346  ;;  %v4017_v53 = vsel %vm3922_vm2, %v4014_v23, %v4016_v14 }
 0x48e   : > { %v5147_v62 = vadd.f32 %v9008_v24, %v5081_v16  ;;  %4368 = vrot.lane.b32.xlu1 %v8700_v39, %s7497_s18  ;;  %v3896_v16 = vadd.f32 %v10098_v38, %v3753_v48  ;;  %v3660_v38 = vrot.slane %v8711_v18, 1 }
 0x48f   : > { %4721 = vrot.lane.b32.xlu0 %v4604_v35, %s7503_s15 }
 0x490   : > { %v5206_v46 = vmax.f32 %v5147_v62, 0.0  ;;  %v4700_v26 = vpop.permute.xlu1 %4699  ;;  %v4015_v62 = vsel %vm3922_vm2, %v4012_v33, %v4014_v23  ;;  %v5784_v33 = vld [vmem:[%s10016_s4 + $0x50] sm:$0xff] }
 0x491   : > { %v4109_v4 = vpop.permute.xlu0 %4108  ;;  %v4844_v49 = vadd.f32 %v4700_v26, %v4487_v45 }
 0x492   : > { %6805 = vmatmul.mubr.msk.f32.gmra.mrb[186].mxu1 %vm5236_vm5, %v5206_v46  ;;  %3776 = vrot.lane.b32.xlu1 %v3659_v29, %s7498_s19  ;;  %v4252_v35 = vadd.f32 %v4109_v4, %v3896_v16  ;;  %v5785_v4 = vld [vmem:[%s10016_s4 + $0x58] sm:$0xff] }
 0x493   : > { %4370 = vrot.lane.b32.xlu0 %v8711_v18, %s7497_s18  ;;  %v5530_v61 = vpop.f32.mrb[144].mxu1  ;;  %6807 = vmatprep.mubr.msk.f32.mxu1 %vm7501_vm4, %v10071_v37 }
 0x494   : > { %v4111_v28 = vpop.permute.xlu1 %4110  ;;  %v6743_v1 = vpop.f32.mrb[145].mxu1  ;;  %v9385_v16 = vmul.f32 %v5784_v33, %v5530_v61  ;;  %v3662_v61 = vrot.slane %v8725_v3, 1 }
 0x495   : > { %v4938_v6 = vpop.permute.xlu0 %4937 }
 0x496   : > { %v5082_v22 = vadd.f32 %v4938_v6, %v4844_v49  ;;  %4723 = vrot.lane.b32.xlu1 %v4606_v58, %s7503_s15  ;;  %v4488_v49 = vadd.f32 %v4345_v63, %v4252_v35  ;;  %v3661_v6 = vsel %vm3566_vm1, %v3658_v19, %v3660_v38  ;;  %v4607_v58 = vrot.slane %v8711_v18, 6 }
 0x497   : > { %4132 = vrot.lane.b32.xlu0 %v4015_v62, %s7499_s20 }
 0x498   : > { %v5148_v46 = vadd.f32 %v9008_v24, %v5082_v22  ;;  %v4940_v26 = vpop.permute.xlu1 %4939 }
 0x499   : > { %v3755_v29 = vpop.permute.xlu0 %3754 }
 0x49a   : > { %v5207_v48 = vmax.f32 %v5148_v46, 0.0  ;;  %4134 = vrot.lane.b32.xlu1 %v4017_v53, %s7499_s20  ;;  %v3897_v22 = vadd.f32 %v10099_v25, %v3755_v29  ;;  %v4608_v29 = vsel %vm4515_vm3, %v4605_v13, %v4607_v58 }
 0x49b   : > { %4961 = vrot.lane.b32.xlu0 %v4015_v62, %s7504_s25 }
 0x49c   : > { %6808 = vmatmul.mubr.msk.f32.gmra.mrb[188].mxu1 %vm5236_vm5, %v5207_v48  ;;  %v4349_v45 = vpop.permute.xlu1 %4348  ;;  %v4253_v33 = vadd.f32 %v4111_v28, %v3897_v22  ;;  %v4018_v28 = vrot.slane %v8725_v3, 7 }
 0x49d   : > { %v4702_v23 = vpop.permute.xlu0 %4701  ;;  %v5535_v1 = vpop.f32.mrb[146].mxu1  ;;  %6810 = vmatprep.mubr.msk.f32.mxu1 %vm7501_vm4, %v10071_v37 }
 0x49e   : > { %v4845_v62 = vadd.f32 %v4702_v23, %v4488_v49  ;;  %v9388_v46 = vmul.f32 %v5785_v4, %v5535_v1  ;;  %4963 = vrot.lane.b32.xlu1 %v4017_v53, %s7504_s25  ;;  %v6746_v48 = vpop.f32.mrb[147].mxu1  ;;  %v3663_v49 = vsel %vm3566_vm1, %v3660_v38, %v3662_v61  ;;  %v4609_v23 = vrot.slane %v8725_v3, 6 }
 0x49f   : > { %3778 = vrot.lane.b32.xlu0 %v3661_v6, %s7498_s19  ;;  %v4489_v1 = vadd.f32 %v9341_v11, %v4253_v33  ;;  %v4020_v11 = vrot.slane %v8731_v30, 7 }
 0x4a0   : > { %v5083_v63 = vadd.f32 %v4940_v26, %v4845_v62  ;;  %v3757_v35 = vpop.permute.xlu1 %3756  ;;  %v4610_v48 = vsel %vm4515_vm3, %v4607_v58, %v4609_v23 }
 0x4a1   : > { %v9394_v59 = vpop.permute.xlu0 %4350  ;;  %v4021_v58 = vsel %vm3922_vm2, %v4018_v28, %v4020_v11 }
 0x4a2   : > { %v5149_v25 = vadd.f32 %v9008_v24, %v5083_v63  ;;  %4372 = vrot.lane.b32.xlu1 %v8725_v3, %s7497_s18  ;;  %v3898_v63 = vadd.f32 %v8570_v55, %v3757_v35  ;;  %v3664_v55 = vrot.slane %v8731_v30, 1 }
 0x4a3   : > { %4725 = vrot.lane.b32.xlu0 %v4608_v29, %s7503_s15 }
 0x4a4   : > { %v5208_v53 = vmax.f32 %v5149_v25, 0.0  ;;  %v4704_v26 = vpop.permute.xlu1 %4703  ;;  %v4019_v25 = vsel %vm3922_vm2, %v4016_v14, %v4018_v28  ;;  %v5786_v14 = vld [vmem:[%s10016_s4 + $0x60] sm:$0xff] }
 0x4a5   : > { %v4113_v4 = vpop.permute.xlu0 %4112  ;;  %v4846_v6 = vadd.f32 %v4704_v26, %v4489_v1 }
 0x4a6   : > { %6811 = vmatmul.mubr.msk.f32.gmra.mrb[190].mxu1 %vm5236_vm5, %v5208_v53  ;;  %3780 = vrot.lane.b32.xlu1 %v3663_v49, %s7498_s19  ;;  %v4254_v29 = vadd.f32 %v4113_v4, %v3898_v63 }
 0x4a7   : > { %4374 = vrot.lane.b32.xlu0 %v8731_v30, %s7497_s18  ;;  %v5540_v13 = vpop.f32.mrb[148].mxu1  ;;  %6813 = vmatprep.mubr.msk.f32.mxu1 %vm7501_vm4, %v10071_v37 }
 0x4a8   : > { %v4115_v22 = vpop.permute.xlu1 %4114  ;;  %v6749_v38 = vpop.f32.mrb[149].mxu1  ;;  %v4490_v1 = vadd.f32 %v4349_v45, %v4254_v29 }
 0x4a9   : > { %v4942_v62 = vpop.permute.xlu0 %4941  ;;  %v3665_v38 = vsel %vm3566_vm1, %v3662_v61, %v3664_v55 }
 0x4aa   : > { %v5084_v33 = vadd.f32 %v4942_v62, %v4846_v6  ;;  %4727 = vrot.lane.b32.xlu1 %v4610_v48, %s7503_s15  ;;  %v4611_v62 = vrot.slane %v8731_v30, 6  ;;  %v9438_v48 = vmul.f32 %v5786_v14, %v5540_v13  ;;  %v3666_v13 = vrot.slane %v8750_v50, 1 }
 0x4ab   : > { %4136 = vrot.lane.b32.xlu0 %v4019_v25, %s7499_s20 }
 0x4ac   : > { %v5150_v53 = vadd.f32 %v9008_v24, %v5084_v33  ;;  %v4944_v26 = vpop.permute.xlu1 %4943  ;;  %v5787_v24 = vld [vmem:[%s10016_s4 + $0x68] sm:$0xff] }
 0x4ad   : > { %v3759_v49 = vpop.permute.xlu0 %3758 }
 0x4ae   : > { %v5209_v35 = vmax.f32 %v5150_v53, 0.0  ;;  %4138 = vrot.lane.b32.xlu1 %v4021_v58, %s7499_s20  ;;  %v3899_v63 = vadd.f32 %v8583_v60, %v3759_v49  ;;  %v9453_v60 = vld [vmem:[%s10014_s2] ss:$0 sm:$0xff] }
 0x4af   : > { %4965 = vrot.lane.b32.xlu0 %v4019_v25, %s7504_s25 }
 0x4b0   : > { %6814 = vmatmul.mubr.msk.f32.gmra.mrb[192].mxu1 %vm5236_vm5, %v5209_v35  ;;  %v4353_v4 = vpop.permute.xlu1 %4352  ;;  %v4255_v14 = vadd.f32 %v4115_v22, %v3899_v63  ;;  %v4613_v22 = vrot.slane %v8750_v50, 6 }
 0x4b1   : > { %v4706_v28 = vpop.permute.xlu0 %4705  ;;  %v5545_v6 = vpop.f32.mrb[150].mxu1  ;;  %6816 = vmatprep.mubr.msk.f32.mxu1 %vm7501_vm4, %v10071_v37 }
 0x4b2   : > { %v4847_v33 = vadd.f32 %v4706_v28, %v4490_v1  ;;  %v9441_v25 = vmul.f32 %v5787_v24, %v5545_v6  ;;  %4967 = vrot.lane.b32.xlu1 %v4021_v58, %s7504_s25  ;;  %v6752_v53 = vpop.f32.mrb[151].mxu1  ;;  %v3667_v28 = vsel %vm3566_vm1, %v3664_v55, %v3666_v13  ;;  %v4491_v6 = vadd.f32 %v9394_v59, %v4255_v14 }
 0x4b3   : > { %3782 = vrot.lane.b32.xlu0 %v3665_v38, %s7498_s19  ;;  %v4022_v38 = vrot.slane %v8750_v50, 7  ;;  %v4024_v59 = vrot.slane %v8756_v0, 7 }
 0x4b4   : > { %v5085_v45 = vadd.f32 %v4944_v26, %v4847_v33  ;;  %v3761_v29 = vpop.permute.xlu1 %3760  ;;  %v4612_v26 = vsel %vm4515_vm3, %v4609_v23, %v4611_v62 }
 0x4b5   : > { %v9447_v35 = vpop.permute.xlu0 %4354  ;;  %v3900_v14 = vadd.f32 %v8593_v41, %v3761_v29  ;;  %v3668_v41 = vrot.slane %v8756_v0, 1 }
 0x4b6   : > { %v5151_v49 = vadd.f32 %v9453_v60, %v5085_v45  ;;  %4376 = vrot.lane.b32.xlu1 %v8750_v50, %s7497_s18  ;;  %v4614_v45 = vsel %vm4515_vm3, %v4611_v62, %v4613_v22  ;;  %v4025_v62 = vsel %vm3922_vm2, %v4022_v38, %v4024_v59 }
 0x4b7   : > { %4729 = vrot.lane.b32.xlu0 %v4612_v26, %s7503_s15  ;;  %v4023_v26 = vsel %vm3922_vm2, %v4020_v11, %v4022_v38  ;;  %v5788_v11 = vld [vmem:[%s10016_s4 + $0x70] sm:$0xff] }
 0x4b8   : > { %v5210_v58 = vmax.f32 %v5151_v49, 0.0  ;;  %v4708_v24 = vpop.permute.xlu1 %4707 }
 0x4b9   : > { %v4117_v1 = vpop.permute.xlu0 %4116  ;;  %v4848_v63 = vadd.f32 %v4708_v24, %v4491_v6 }
 0x4ba   : > { %6817 = vmatmul.mubr.msk.f32.gmra.mrb[194].mxu1 %vm5236_vm5, %v5210_v58  ;;  %3784 = vrot.lane.b32.xlu1 %v3667_v28, %s7498_s19  ;;  %v4256_v58 = vadd.f32 %v4117_v1, %v3900_v14  ;;  %v5789_v1 = vld [vmem:[%s10016_s4 + $0x78] sm:$0xff]  ;;  %v4615_v14 = vrot.slane %v8756_v0, 6 }
 0x4bb   : > { %4378 = vrot.lane.b32.xlu0 %v8756_v0, %s7497_s18  ;;  %v5550_v23 = vpop.f32.mrb[152].mxu1  ;;  %6819 = vmatprep.mubr.msk.f32.mxu1 %vm7501_vm4, %v10071_v37 }
 0x4bc   : > { %v4119_v33 = vpop.permute.xlu1 %4118  ;;  %v6755_v55 = vpop.f32.mrb[153].mxu1 }
 0x4bd   : > { %v4946_v53 = vpop.permute.xlu0 %4945  ;;  %v4492_v55 = vadd.f32 %v4353_v4, %v4256_v58 }
 0x4be   : > { %v5086_v49 = vadd.f32 %v4946_v53, %v4848_v63  ;;  %4731 = vrot.lane.b32.xlu1 %v4614_v45, %s7503_s15  ;;  %v3669_v45 = vsel %vm3566_vm1, %v3666_v13, %v3668_v41 }
 0x4bf   : > { %4140 = vrot.lane.b32.xlu0 %v4023_v26, %s7499_s20 }
 0x4c0   : > { %v5152_v24 = vadd.f32 %v9453_v60, %v5086_v49  ;;  %v4948_v28 = vpop.permute.xlu1 %4947  ;;  %v9496_v49 = vmul.f32 %v5788_v11, %v5550_v23  ;;  %v3670_v23 = vrot.slane %v8773_v27, 1 }
 0x4c1   : > { %v3763_v6 = vpop.permute.xlu0 %3762 }
 0x4c2   : > { %v5211_v29 = vmax.f32 %v5152_v24, 0.0  ;;  %4142 = vrot.lane.b32.xlu1 %v4025_v62, %s7499_s20  ;;  %10100 = vst [vmem:[#allocation8_spill] sm:$0xff] %v9496_v49 }
 0x4c3   : > { %4969 = vrot.lane.b32.xlu0 %v4023_v26, %s7504_s25  ;;  %v3901_v26 = vadd.f32 %v8607_v12, %v3763_v6  ;;  %v4616_v6 = vsel %vm4515_vm3, %v4613_v22, %v4615_v14 }
 0x4c4   : > { %6820 = vmatmul.mubr.msk.f32.gmra.mrb[196].mxu1 %vm5236_vm5, %v5211_v29  ;;  %v4357_v63 = vpop.permute.xlu1 %4356 }
 0x4c5   : > { %v4710_v38 = vpop.permute.xlu0 %4709  ;;  %v5555_v53 = vpop.f32.mrb[154].mxu1  ;;  %6822 = vmatprep.mubr.msk.f32.mxu1 %vm7501_vm4, %v10071_v37  ;;  %v4257_v11 = vadd.f32 %v4119_v33, %v3901_v26  ;;  %v4026_v33 = vrot.slane %v8773_v27, 7 }
 0x4c6   : > { %v4849_v24 = vadd.f32 %v4710_v38, %v4492_v55  ;;  %v9499_v61 = vmul.f32 %v5789_v1, %v5555_v53  ;;  %4971 = vrot.lane.b32.xlu1 %v4025_v62, %s7504_s25  ;;  %v6758_v29 = vpop.f32.mrb[155].mxu1  ;;  %v3671_v55 = vsel %vm3566_vm1, %v3668_v41, %v3670_v23  ;;  %v4617_v38 = vrot.slane %v8773_v27, 6 }
 0x4c7   : > { %3786 = vrot.lane.b32.xlu0 %v3669_v45, %s7498_s19  ;;  %v4493_v53 = vadd.f32 %v9447_v35, %v4257_v11  ;;  %v10049_v35 = vrot.slane %v8780_v21, 7 }
 0x4c8   : > { %v5087_v4 = vadd.f32 %v4948_v28, %v4849_v24  ;;  %v3765_v58 = vpop.permute.xlu1 %3764  ;;  %v4618_v29 = vsel %vm4515_vm3, %v4615_v14, %v4617_v38 }
 0x4c9   : > { %v9505_v19 = vpop.permute.xlu0 %4358  ;;  %v4029_v14 = vsel %vm3922_vm2, %v4026_v33, %v10049_v35 }
 0x4ca   : > { %v5153_v12 = vadd.f32 %v9453_v60, %v5087_v4  ;;  %4380 = vrot.lane.b32.xlu1 %v8773_v27, %s7497_s18  ;;  %v3902_v4 = vadd.f32 %v8613_v34, %v3765_v58  ;;  %v3672_v34 = vrot.slane %v8780_v21, 1 }
 0x4cb   : > { %4733 = vrot.lane.b32.xlu0 %v4616_v6, %s7503_s15 }
 0x4cc   : > { %v5212_v62 = vmax.f32 %v5153_v12, 0.0  ;;  %v4712_v28 = vpop.permute.xlu1 %4711  ;;  %v4027_v12 = vsel %vm3922_vm2, %v4024_v59, %v4026_v33  ;;  %v5790_v59 = vld [vmem:[%s10016_s4 + $0x80] sm:$0xff] }
 0x4cd   : > { %v4121_v1 = vpop.permute.xlu0 %4120  ;;  %v4850_v45 = vadd.f32 %v4712_v28, %v4493_v53 }
 0x4ce   : > { %6823 = vmatmul.mubr.msk.f32.gmra.mrb[198].mxu1 %vm5236_vm5, %v5212_v62  ;;  %3788 = vrot.lane.b32.xlu1 %v3671_v55, %s7498_s19  ;;  %v4258_v6 = vadd.f32 %v4121_v1, %v3902_v4  ;;  %v5791_v1 = vld [vmem:[%s10016_s4 + $0x88] sm:$0xff] }
 0x4cf   : > { %4382 = vrot.lane.b32.xlu0 %v8780_v21, %s7497_s18  ;;  %v5560_v22 = vpop.f32.mrb[156].mxu1  ;;  %6825 = vmatprep.mubr.msk.f32.mxu1 %vm7501_vm4, %v10071_v37 }
 0x4d0   : > { %v4123_v26 = vpop.permute.xlu1 %4122  ;;  %v6761_v41 = vpop.f32.mrb[157].mxu1  ;;  %v5849_v4 = vmul.f32 %v5790_v59, %v5560_v22 }
 0x4d1   : > { %v4950_v24 = vpop.permute.xlu0 %4949 }
 0x4d2   : > { %v5088_v11 = vadd.f32 %v4950_v24, %v4850_v45  ;;  %4735 = vrot.lane.b32.xlu1 %v4618_v29, %s7503_s15  ;;  %v4494_v45 = vadd.f32 %v4357_v63, %v4258_v6  ;;  %v3673_v24 = vsel %vm3566_vm1, %v3670_v23, %v3672_v34  ;;  %v4619_v29 = vrot.slane %v8780_v21, 6 }
 0x4d3   : > { %4144 = vrot.lane.b32.xlu0 %v4027_v12, %s7499_s20  ;;  %v3674_v23 = vrot.slane %v8797_v42, 1 }
 0x4d4   : > { %v5154_v62 = vadd.f32 %v9453_v60, %v5088_v11  ;;  %v4952_v28 = vpop.permute.xlu1 %4951 }
 0x4d5   : > { %v3767_v55 = vpop.permute.xlu0 %3766 }
 0x4d6   : > { %v5213_v58 = vmax.f32 %v5154_v62, 0.0  ;;  %4146 = vrot.lane.b32.xlu1 %v4029_v14, %s7499_s20  ;;  %v3903_v11 = vadd.f32 %v8632_v57, %v3767_v55  ;;  %v4620_v57 = vsel %vm4515_vm3, %v4617_v38, %v4619_v29  ;;  %v4030_v38 = vrot.slane %v8797_v42, 7 }
 0x4d7   : > { %4973 = vrot.lane.b32.xlu0 %v4027_v12, %s7504_s25 }
 0x4d8   : > { %6826 = vmatmul.mubr.msk.f32.gmra.mrb[200].mxu1 %vm5236_vm5, %v5213_v58  ;;  %v4361_v53 = vpop.permute.xlu1 %4360  ;;  %v4259_v17 = vadd.f32 %v4123_v26, %v3903_v11  ;;  %v4621_v26 = vrot.slane %v8797_v42, 6 }
 0x4d9   : > { %v4714_v33 = vpop.permute.xlu0 %4713  ;;  %v5565_v41 = vpop.f32.mrb[158].mxu1  ;;  %6828 = vmatprep.mubr.msk.f32.mxu1 %vm7501_vm4, %v10071_v37 }
 0x4da   : > { %v4851_v12 = vadd.f32 %v4714_v33, %v4494_v45  ;;  %v5850_v62 = vmul.f32 %v5791_v1, %v5565_v41  ;;  %4975 = vrot.lane.b32.xlu1 %v4029_v14, %s7504_s25  ;;  %v6764_v13 = vpop.f32.mrb[159].mxu1  ;;  %v3675_v14 = vsel %vm3566_vm1, %v3672_v34, %v3674_v23  ;;  %v4495_v59 = vadd.f32 %v9505_v19, %v4259_v17 }
 0x4db   : > { %3790 = vrot.lane.b32.xlu0 %v3673_v24, %s7498_s19  ;;  %v10101_v13 = vpack.c.bf16 %v9123_v7, %v9120_v36  ;;  %v4622_v45 = vsel %vm4515_vm3, %v4619_v29, %v4621_v26  ;;  %v4032_v17 = vrot.slane %v8803_v10, 7  ;;  %v10102_v41 = vrot.slane %v8780_v21, 7 }
 0x4dc   : > { %v5089_v63 = vadd.f32 %v4952_v28, %v4851_v12  ;;  %v6926_v6 = vpack.c.bf16 %v5850_v62, %v5849_v4  ;;  %v3769_v58 = vpop.permute.xlu1 %3768 }
 0x4dd   : > { %v9552_v35 = vpop.permute.xlu0 %4362  ;;  %v3904_v19 = vadd.f32 %v8638_v15, %v3769_v58  ;;  %v4031_v24 = vsel %vm3922_vm2, %v10102_v41, %v4030_v38  ;;  %v4033_v29 = vsel %vm3922_vm2, %v4030_v38, %v4032_v17  ;;  %v3676_v15 = vrot.slane %v8803_v10, 1  ;;  %v5793_v58 = vld [vmem:[%s10016_s4 + $0x98] sm:$0xff] }
 0x4de   : > { %v5155_v49 = vadd.f32 %v9453_v60, %v5089_v63  ;;  %4384 = vrot.lane.b32.xlu1 %v8797_v42, %s7497_s18  ;;  %6927 = vmatprep.subr.bf16.mxu1 %v6926_v6  ;;  %v5792_v6 = vld [vmem:[%s10016_s4 + $0x90] sm:$0xff] }
 0x4df   : > { %4737 = vrot.lane.b32.xlu0 %v4620_v57, %s7503_s15  ;;  %6929 = vmatpush3.bf16.msra.mxu1 %v10101_v13 }
 0x4e0   : > { %v5214_v22 = vmax.f32 %v5155_v49, 0.0  ;;  %v4716_v28 = vpop.permute.xlu1 %4715 }
 0x4e1   : > { %v4125_v55 = vpop.permute.xlu0 %4124  ;;  %v4852_v7 = vadd.f32 %v4716_v28, %v4495_v59 }
 0x4e2   : > { %6829 = vmatmul.mubr.msk.f32.gmra.mrb[202].mxu1 %vm5236_vm5, %v5214_v22  ;;  %3792 = vrot.lane.b32.xlu1 %v3675_v14, %s7498_s19  ;;  %v4260_v4 = vadd.f32 %v4125_v55, %v3904_v19  ;;  %v3677_v55 = vsel %vm3566_vm1, %v3674_v23, %v3676_v15  ;;  %v4623_v14 = vrot.slane %v8803_v10, 6  ;;  %v10103_v23 = vld [vmem:[#allocation7_spill] sm:$0xff] }
 0x4e3   : > { %4386 = vrot.lane.b32.xlu0 %v8803_v10, %s7497_s18  ;;  %v5570_v36 = vpop.f32.mrb[160].mxu1  ;;  %6831 = vmatprep.mubr.msk.f32.mxu1 %vm7501_vm4, %v10071_v37  ;;  %v3678_v41 = vrot.slane %v10103_v23, 1 }
 0x4e4   : > { %v4127_v49 = vpop.permute.xlu1 %4126  ;;  %v6767_v34 = vpop.f32.mrb[161].mxu1  ;;  %v4496_v13 = vadd.f32 %v4361_v53, %v4260_v4  ;;  %v5851_v59 = vmul.f32 %v5792_v6, %v5570_v36  ;;  %v10104_v36 = vpack.c.bf16 %v9176_v31, %v9173_v9 }
 0x4e5   : > { %v4954_v1 = vpop.permute.xlu0 %4953 }
 0x4e6   : > { %v5090_v33 = vadd.f32 %v4954_v1, %v4852_v7  ;;  %4739 = vrot.lane.b32.xlu1 %v4622_v45, %s7503_s15 }
 0x4e7   : > { %4148 = vrot.lane.b32.xlu0 %v4031_v24, %s7499_s20 }
 0x4e8   : > { %v5156_v11 = vadd.f32 %v9453_v60, %v5090_v33  ;;  %v4956_v12 = vpop.permute.xlu1 %4955 }
 0x4e9   : > { %v3771_v62 = vpop.permute.xlu0 %3770 }
 0x4ea   : > { %v5215_v63 = vmax.f32 %v5156_v11, 0.0  ;;  %4150 = vrot.lane.b32.xlu1 %v4033_v29, %s7499_s20  ;;  %v3905_v38 = vadd.f32 %v8655_v54, %v3771_v62  ;;  %v4624_v54 = vsel %vm4515_vm3, %v4621_v26, %v4623_v14  ;;  %v4034_v26 = vrot.slane %v10103_v23, 7 }
 0x4eb   : > { %4977 = vrot.lane.b32.xlu0 %v4031_v24, %s7504_s25 }
 0x4ec   : > { %6832 = vmatmul.mubr.msk.f32.gmra.mrb[204].mxu1 %vm5236_vm5, %v5215_v63  ;;  %v4365_v57 = vpop.permute.xlu1 %4364  ;;  %v4261_v24 = vadd.f32 %v4127_v49, %v3905_v38  ;;  %v4625_v49 = vrot.slane %v10103_v23, 6 }
 0x4ed   : > { %v4718_v22 = vpop.permute.xlu0 %4717  ;;  %v5575_v28 = vpop.f32.mrb[162].mxu1  ;;  %6834 = vmatprep.mubr.msk.f32.mxu1 %vm7501_vm4, %v10071_v37 }
 0x4ee   : > { %v4853_v7 = vadd.f32 %v4718_v22, %v4496_v13  ;;  %v5852_v34 = vmul.f32 %v5793_v58, %v5575_v28  ;;  %4979 = vrot.lane.b32.xlu1 %v4033_v29, %s7504_s25  ;;  %v6770_v1 = vpop.f32.mrb[163].mxu1  ;;  %v3679_v29 = vsel %vm3566_vm1, %v3676_v15, %v3678_v41  ;;  %v4497_v63 = vadd.f32 %v9552_v35, %v4261_v24 }
 0x4ef   : > { %3794 = vrot.lane.b32.xlu0 %v3677_v55, %s7498_s19  ;;  %v4626_v13 = vsel %vm4515_vm3, %v4623_v14, %v4625_v49  ;;  %v4036_v35 = vrot.slane %v8829_v2, 7  ;;  %v4035_v55 = vsel %vm3922_vm2, %v4032_v17, %v4034_v26  ;;  %v3680_v1 = vrot.slane %v8829_v2, 1  ;;  %v5795_v17 = vld [vmem:[%s10016_s4 + $0xa8] sm:$0xff] }
 0x4f0   : > { %v5091_v53 = vadd.f32 %v4956_v12, %v4853_v7  ;;  %v6930_v45 = vpack.c.bf16 %v5852_v34, %v5851_v59  ;;  %v3773_v19 = vpop.permute.xlu1 %3772 }
 0x4f1   : > { %v9602_v33 = vpop.permute.xlu0 %4366  ;;  %v3906_v22 = vadd.f32 %v8662_v40, %v3773_v19  ;;  %v4037_v14 = vsel %vm3922_vm2, %v4034_v26, %v4036_v35  ;;  %v5794_v40 = vld [vmem:[%s10016_s4 + $0xa0] sm:$0xff] }
 0x4f2   : > { %v5157_v4 = vadd.f32 %v9453_v60, %v5091_v53  ;;  %4388 = vrot.lane.b32.xlu1 %v10103_v23, %s7497_s18  ;;  %6931 = vmatprep.subr.bf16.mxu1 %v6930_v45 }
 0x4f3   : > { %4741 = vrot.lane.b32.xlu0 %v4624_v54, %s7503_s15  ;;  %6933 = vmatpush3.bf16.msra.mxu1 %v10104_v36  ;;  %v3681_v54 = vsel %vm3566_vm1, %v3678_v41, %v3680_v1  ;;  %v10105_v36 = vld [vmem:[#allocation12_spill] sm:$0xff] }
 0x4f4   : > { %v5216_v11 = vmax.f32 %v5157_v4, 0.0  ;;  %v4720_v12 = vpop.permute.xlu1 %4719 }
 0x4f5   : > { %v4129_v62 = vpop.permute.xlu0 %4128  ;;  %v4854_v31 = vadd.f32 %v4720_v12, %v4497_v63  ;;  %v4627_v12 = vrot.slane %v8829_v2, 6 }
 0x4f6   : > { %6835 = vmatmul.mubr.msk.f32.gmra.mrb[206].mxu1 %vm5236_vm5, %v5216_v11  ;;  %3796 = vrot.lane.b32.xlu1 %v3679_v29, %s7498_s19  ;;  %v4262_v59 = vadd.f32 %v4129_v62, %v3906_v22  ;;  %v3682_v11 = vrot.slane %v10105_v36, 1  ;;  %v4629_v22 = vrot.slane %v10105_v36, 6 }
 0x4f7   : > { %4390 = vrot.lane.b32.xlu0 %v8829_v2, %s7497_s18  ;;  %v5580_v9 = vpop.f32.mrb[164].mxu1  ;;  %6837 = vmatprep.mubr.msk.f32.mxu1 %vm7501_vm4, %v10071_v37 }
 0x4f8   : > { %v4131_v6 = vpop.permute.xlu1 %4130  ;;  %v6773_v15 = vpop.f32.mrb[165].mxu1  ;;  %v4498_v19 = vadd.f32 %v4365_v57, %v4262_v59  ;;  %v5853_v62 = vmul.f32 %v5794_v40, %v5580_v9 }
 0x4f9   : > { %v4958_v58 = vpop.permute.xlu0 %4957 }
 0x4fa   : > { %v5092_v28 = vadd.f32 %v4958_v58, %v4854_v31  ;;  %4743 = vrot.lane.b32.xlu1 %v4626_v13, %s7503_s15  ;;  %v3683_v13 = vsel %vm3566_vm1, %v3680_v1, %v3682_v11 }
 0x4fb   : > { %4152 = vrot.lane.b32.xlu0 %v4035_v55, %s7499_s20 }
 0x4fc   : > { %v5158_v38 = vadd.f32 %v9453_v60, %v5092_v28  ;;  %v4960_v7 = vpop.permute.xlu1 %4959 }
 0x4fd   : > { %v3775_v34 = vpop.permute.xlu0 %3774 }
 0x4fe   : > { %v5217_v53 = vmax.f32 %v5158_v38, 0.0  ;;  %4154 = vrot.lane.b32.xlu1 %v4037_v14, %s7499_s20  ;;  %v3907_v29 = vadd.f32 %v8679_v8, %v3775_v34  ;;  %v4628_v8 = vsel %vm4515_vm3, %v4625_v49, %v4627_v12  ;;  %v4630_v34 = vsel %vm4515_vm3, %v4627_v12, %v4629_v22 }
 0x4ff   : > { %4981 = vrot.lane.b32.xlu0 %v4035_v55, %s7504_s25  ;;  %v10106_v55 = vpack.c.bf16 %v9229_v52, %v9226_v44 }
 0x500   : > { %6838 = vmatmul.mubr.msk.f32.gmra.mrb[208].mxu1 %vm5236_vm5, %v5217_v53  ;;  %v4369_v45 = vpop.permute.xlu1 %4368  ;;  %v4263_v28 = vadd.f32 %v4131_v6, %v3907_v29  ;;  %v4038_v6 = vrot.slane %v10105_v36, 7 }
 0x501   : > { %v4722_v24 = vpop.permute.xlu0 %4721  ;;  %v5585_v4 = vpop.f32.mrb[166].mxu1  ;;  %6840 = vmatprep.mubr.msk.f32.mxu1 %vm7501_vm4, %v10071_v37 }
 0x502   : > { %v4855_v63 = vadd.f32 %v4722_v24, %v4498_v19  ;;  %v5854_v26 = vmul.f32 %v5795_v17, %v5585_v4  ;;  %4983 = vrot.lane.b32.xlu1 %v4037_v14, %s7504_s25  ;;  %v6776_v31 = vpop.f32.mrb[167].mxu1  ;;  %v4499_v14 = vadd.f32 %v9602_v33, %v4263_v28  ;;  %v4039_v40 = vsel %vm3922_vm2, %v4036_v35, %v4038_v6  ;;  %v5796_v35 = vld [vmem:[%s10016_s4 + $0xb0] sm:$0xff] }
 0x503   : > { %3798 = vrot.lane.b32.xlu0 %v3681_v54, %s7498_s19  ;;  %v3684_v19 = vrot.slane %v8849_v20, 1 }
 0x504   : > { %v5093_v57 = vadd.f32 %v4960_v7, %v4855_v63  ;;  %v6934_v15 = vpack.c.bf16 %v5854_v26, %v5853_v62  ;;  %v3777_v41 = vpop.permute.xlu1 %3776  ;;  %v10107_v62 = vrot.slane %v8849_v20, 6  ;;  %v5797_v26 = vld [vmem:[%s10016_s4 + $0xb8] sm:$0xff] }
 0x505   : > { %v9651_v58 = vpop.permute.xlu0 %4370  ;;  %v3908_v17 = vadd.f32 %v8685_v32, %v3777_v41  ;;  %v3685_v32 = vsel %vm3566_vm1, %v3682_v11, %v3684_v19 }
 0x506   : > { %v5159_v9 = vadd.f32 %v9453_v60, %v5093_v57  ;;  %3800 = vrot.lane.b32.xlu1 %v3683_v13, %s7498_s19  ;;  %6935 = vmatprep.subr.bf16.mxu1 %v6934_v15  ;;  %v4632_v29 = vsel %vm4515_vm3, %v4629_v22, %v10107_v62  ;;  %v10108_v13 = vrot.slane %v8849_v20, 7 }
 0x507   : > { %4745 = vrot.lane.b32.xlu0 %v4628_v8, %s7503_s15  ;;  %6937 = vmatpush3.bf16.msra.mxu1 %v10106_v55 }
 0x508   : > { %v5218_v59 = vmax.f32 %v5159_v9, 0.0  ;;  %v4724_v38 = vpop.permute.xlu1 %4723  ;;  %v4041_v11 = vsel %vm3922_vm2, %v4038_v6, %v10108_v13 }
 0x509   : > { %v4133_v7 = vpop.permute.xlu0 %4132  ;;  %v4856_v44 = vadd.f32 %v4724_v38, %v4499_v14 }
 0x50a   : > { %6841 = vmatmul.mubr.msk.f32.gmra.mrb[210].mxu1 %vm5236_vm5, %v5218_v59  ;;  %4747 = vrot.lane.b32.xlu1 %v4630_v34, %s7503_s15  ;;  %v4264_v24 = vadd.f32 %v4133_v7, %v3908_v17 }
 0x50b   : > { %4392 = vrot.lane.b32.xlu0 %v10105_v36, %s7497_s18  ;;  %v5590_v49 = vpop.f32.mrb[168].mxu1  ;;  %6843 = vmatprep.mubr.msk.f32.mxu1 %vm7501_vm4, %v10071_v37 }
 0x50c   : > { %v4135_v52 = vpop.permute.xlu1 %4134  ;;  %v6779_v1 = vpop.f32.mrb[169].mxu1  ;;  %v4500_v57 = vadd.f32 %v4369_v45, %v4264_v24  ;;  %v5855_v22 = vmul.f32 %v5796_v35, %v5590_v49 }
 0x50d   : > { %v4962_v53 = vpop.permute.xlu0 %4961 }
 0x50e   : > { %v5094_v33 = vadd.f32 %v4962_v53, %v4856_v44  ;;  %4985 = vrot.lane.b32.xlu1 %v4039_v40, %s7504_s25 }
 0x50f   : > { %4156 = vrot.lane.b32.xlu0 %v4039_v40, %s7499_s20 }
 0x510   : > { %v5160_v4 = vadd.f32 %v9453_v60, %v5094_v33  ;;  %v4964_v54 = vpop.permute.xlu1 %4963 }
 0x511   : > { %v3779_v12 = vpop.permute.xlu0 %3778 }
 0x512   : > { %v5219_v63 = vmax.f32 %v5160_v4, 0.0  ;;  %4749 = vrot.lane.b32.xlu1 %v4632_v29, %s7503_s15  ;;  %v3909_v28 = vadd.f32 %v8700_v39, %v3779_v12  ;;  %v10109_v39 = vpack.c.bf16 %v9282_v5, %v9279_v43  ;;  %v5799_v12 = vld [vmem:[%s10016_s4 + $0xc8] sm:$0xff] }
 0x513   : > { %3802 = vrot.lane.b32.xlu0 %v3685_v32, %s7498_s19 }
 0x514   : > { %6844 = vmatmul.mubr.msk.f32.gmra.mrb[212].mxu1 %vm5236_vm5, %v5219_v63  ;;  %v4373_v31 = vpop.permute.xlu1 %4372  ;;  %v4265_v34 = vadd.f32 %v4135_v52, %v3909_v28  ;;  %v10110_v52 = vld [vmem:[#allocation13_spill] sm:$0xff] }
 0x515   : > { %v4726_v15 = vpop.permute.xlu0 %4725  ;;  %v5595_v41 = vpop.f32.mrb[170].mxu1  ;;  %6846 = vmatprep.mubr.msk.f32.mxu1 %vm7501_vm4, %v10071_v37 }
 0x516   : > { %v4857_v9 = vadd.f32 %v4726_v15, %v4500_v57  ;;  %v5856_v8 = vmul.f32 %v5797_v26, %v5595_v41  ;;  %4987 = vrot.lane.b32.xlu1 %v4041_v11, %s7504_s25  ;;  %v6782_v55 = vpop.f32.mrb[171].mxu1  ;;  %v4501_v1 = vadd.f32 %v9651_v58, %v4265_v34 }
 0x517   : > { %4158 = vrot.lane.b32.xlu0 %v4041_v11, %s7499_s20 }
 0x518   : > { %v5095_v45 = vadd.f32 %v4964_v54, %v4857_v9  ;;  %v6938_v59 = vpack.c.bf16 %v5856_v8, %v5855_v22  ;;  %v3781_v38 = vpop.permute.xlu1 %3780  ;;  %v5798_v54 = vld [vmem:[%s10016_s4 + $0xc0] sm:$0xff] }
 0x519   : > { %v4375_v7 = vpop.permute.xlu0 %4374  ;;  %v3910_v43 = vadd.f32 %v8711_v18, %v3781_v38 }
 0x51a   : > { %v5161_v6 = vadd.f32 %v9453_v60, %v5095_v45  ;;  %4751 = vrot.lane.b32.xlu1 %v8881_v47, %s7503_s15  ;;  %6939 = vmatprep.subr.bf16.mxu1 %v6938_v59 }
 0x51b   : > { %4394 = vrot.lane.b32.xlu0 %v8849_v20, %s7497_s18  ;;  %6941 = vmatpush3.bf16.msra.mxu1 %v10109_v39 }
 0x51c   : > { %v5220_v14 = vmax.f32 %v5161_v6, 0.0  ;;  %v4728_v49 = vpop.permute.xlu1 %4727 }
 0x51d   : > { %v4137_v44 = vpop.permute.xlu0 %4136  ;;  %v4858_v47 = vadd.f32 %v4728_v49, %v4501_v1 }
 0x51e   : > { %6847 = vmatmul.mubr.msk.f32.gmra.mrb[214].mxu1 %vm5236_vm5, %v5220_v14  ;;  %v4266_v33 = vadd.f32 %v4137_v44, %v3910_v43 }
 0x51f   : > { %4989 = vrot.lane.b32.xlu0 %v10110_v52, %s7504_s25  ;;  %v5600_v53 = vpop.f32.mrb[172].mxu1  ;;  %6849 = vmatprep.mubr.msk.f32.mxu1 %vm7501_vm4, %v10071_v37 }
 0x520   : > { %v4139_v20 = vpop.permute.xlu1 %4138  ;;  %v6785_v40 = vpop.f32.mrb[173].mxu1  ;;  %v4502_v29 = vadd.f32 %v4373_v31, %v4266_v33  ;;  %v5857_v32 = vmul.f32 %v5798_v54, %v5600_v53  ;;  %v10111_v31 = vpack.c.bf16 %v9335_v51, %v9332_v56  ;;  %v5801_v53 = vld [vmem:[%s10016_s4 + $0xd8] sm:$0xff] }
 0x521   : > { %v4966_v17 = vpop.permute.xlu0 %4965 }
 0x522   : > { %v5096_v5 = vadd.f32 %v4966_v17, %v4858_v47 }
 0x524   : > { %v5162_v19 = vadd.f32 %v9453_v60, %v5096_v5  ;;  %v4968_v58 = vpop.permute.xlu1 %4967 }
 0x525   : > { %v3783_v24 = vpop.permute.xlu0 %3782 }
 0x526   : > { %v5221_v4 = vmax.f32 %v5162_v19, 0.0  ;;  %v3911_v35 = vadd.f32 %v8725_v3, %v3783_v24 }
 0x528   : > { %6850 = vmatmul.mubr.msk.f32.gmra.mrb[216].mxu1 %vm5236_vm5, %v5221_v4  ;;  %v4377_v62 = vpop.permute.xlu1 %4376  ;;  %v4267_v28 = vadd.f32 %v4139_v20, %v3911_v35 }
 0x529   : > { %v4730_v18 = vpop.permute.xlu0 %4729  ;;  %v5605_v63 = vpop.f32.mrb[174].mxu1  ;;  %6852 = vmatprep.mubr.msk.f32.mxu1 %vm7501_vm4, %v10071_v37 }
 0x52a   : > { %v4859_v26 = vadd.f32 %v4730_v18, %v4502_v29  ;;  %v5858_v57 = vmul.f32 %v5799_v12, %v5605_v63  ;;  %v6788_v15 = vpop.f32.mrb[175].mxu1  ;;  %v4503_v59 = vadd.f32 %v4375_v7, %v4267_v28  ;;  %v5800_v7 = vld [vmem:[%s10016_s4 + $0xd0] sm:$0xff] }
 0x52c   : > { %v5097_v41 = vadd.f32 %v4968_v58, %v4859_v26  ;;  %v6942_v13 = vpack.c.bf16 %v5858_v57, %v5857_v32  ;;  %v3785_v11 = vpop.permute.xlu1 %3784 }
 0x52d   : > { %v4379_v22 = vpop.permute.xlu0 %4378  ;;  %v3912_v14 = vadd.f32 %v8731_v30, %v3785_v11 }
 0x52e   : > { %v5163_v9 = vadd.f32 %v9453_v60, %v5097_v41  ;;  %6943 = vmatprep.subr.bf16.mxu1 %v6942_v13 }
 0x52f   : > { %6945 = vmatpush3.bf16.msra.mxu1 %v10111_v31 }
 0x530   : > { %v5222_v8 = vmax.f32 %v5163_v9, 0.0  ;;  %v4732_v55 = vpop.permute.xlu1 %4731 }
 0x531   : > { %v4141_v45 = vpop.permute.xlu0 %4140  ;;  %v4860_v38 = vadd.f32 %v4732_v55, %v4503_v59 }
 0x532   : > { %6853 = vmatmul.mubr.msk.f32.gmra.mrb[218].mxu1 %vm5236_vm5, %v5222_v8  ;;  %v4268_v44 = vadd.f32 %v4141_v45, %v3912_v14  ;;  %v5803_v8 = vld [vmem:[%s10016_s4 + $0xe8] sm:$0xff] }
 0x533   : > { %v5610_v3 = vpop.f32.mrb[176].mxu1  ;;  %6855 = vmatprep.mubr.msk.f32.mxu1 %vm7501_vm4, %v10071_v37 }
 0x534   : > { %v4143_v34 = vpop.permute.xlu1 %4142  ;;  %v6791_v6 = vpop.f32.mrb[177].mxu1  ;;  %v4504_v20 = vadd.f32 %v4377_v62, %v4268_v44  ;;  %v5859_v17 = vmul.f32 %v5800_v7, %v5610_v3  ;;  %v10112_v62 = vpack.c.bf16 %v9388_v46, %v9385_v16 }
 0x535   : > { %v4970_v39 = vpop.permute.xlu0 %4969 }
 0x536   : > { %v5098_v49 = vadd.f32 %v4970_v39, %v4860_v38 }
 0x538   : > { %v5164_v56 = vadd.f32 %v9453_v60, %v5098_v49  ;;  %v4972_v51 = vpop.permute.xlu1 %4971 }
 0x539   : > { %v3787_v1 = vpop.permute.xlu0 %3786 }
 0x53a   : > { %v5223_v52 = vmax.f32 %v5164_v56, 0.0  ;;  %v3913_v43 = vadd.f32 %v8750_v50, %v3787_v1 }
 0x53c   : > { %6856 = vmatmul.mubr.msk.f32.gmra.mrb[220].mxu1 %vm5236_vm5, %v5223_v52  ;;  %v4381_v47 = vpop.permute.xlu1 %4380  ;;  %v4269_v12 = vadd.f32 %v4143_v34, %v3913_v43  ;;  %v10113_v52 = vpack.c.bf16 %v9441_v25, %v9438_v48 }
 0x53d   : > { %v4734_v30 = vpop.permute.xlu0 %4733  ;;  %v5615_v40 = vpop.f32.mrb[178].mxu1  ;;  %6858 = vmatprep.mubr.msk.f32.mxu1 %vm7501_vm4, %v10071_v37 }
 0x53e   : > { %v4861_v5 = vadd.f32 %v4734_v30, %v4504_v20  ;;  %v5860_v33 = vmul.f32 %v5801_v53, %v5615_v40  ;;  %v6794_v19 = vpop.f32.mrb[179].mxu1  ;;  %v4505_v35 = vadd.f32 %v4379_v22, %v4269_v12  ;;  %v5802_v22 = vld [vmem:[%s10016_s4 + $0xe0] sm:$0xff] }
 0x540   : > { %v5099_v58 = vadd.f32 %v4972_v51, %v4861_v5  ;;  %v6946_v24 = vpack.c.bf16 %v5860_v33, %v5859_v17  ;;  %v3789_v4 = vpop.permute.xlu1 %3788 }
 0x541   : > { %v4383_v54 = vpop.permute.xlu0 %4382  ;;  %v3914_v13 = vadd.f32 %v8756_v0, %v3789_v4  ;;  %v5804_v4 = vld [vmem:[%s10016_s4 + $0xf0] sm:$0xff] }
 0x542   : > { %v5165_v29 = vadd.f32 %v9453_v60, %v5099_v58  ;;  %6947 = vmatprep.subr.bf16.mxu1 %v6946_v24 }
 0x543   : > { %6949 = vmatpush3.bf16.msra.mxu1 %v10112_v62 }
 0x544   : > { %v5224_v18 = vmax.f32 %v5165_v29, 0.0  ;;  %v4736_v63 = vpop.permute.xlu1 %4735 }
 0x545   : > { %v4145_v32 = vpop.permute.xlu0 %4144  ;;  %v4862_v26 = vadd.f32 %v4736_v63, %v4505_v35 }
 0x546   : > { %6859 = vmatmul.mubr.msk.f32.gmra.mrb[222].mxu1 %vm5236_vm5, %v5224_v18  ;;  %v4270_v28 = vadd.f32 %v4145_v32, %v3914_v13 }
 0x547   : > { %v5620_v50 = vpop.f32.mrb[180].mxu1  ;;  %6861 = vmatprep.mubr.msk.f32.mxu1 %vm7501_vm4, %v10071_v37 }
 0x548   : > { %v4147_v57 = vpop.permute.xlu1 %4146  ;;  %v6797_v15 = vpop.f32.mrb[181].mxu1  ;;  %v4506_v45 = vadd.f32 %v4381_v47, %v4270_v28  ;;  %v5861_v3 = vmul.f32 %v5802_v22, %v5620_v50  ;;  %v10114_v28 = vld [vmem:[#allocation8_spill] sm:$0xff] }
 0x549   : > { %v4974_v41 = vpop.permute.xlu0 %4973 }
 0x54a   : > { %v5100_v11 = vadd.f32 %v4974_v41, %v4862_v26 }
 0x54c   : > { %v5166_v16 = vadd.f32 %v9453_v60, %v5100_v11  ;;  %v4976_v46 = vpop.permute.xlu1 %4975 }
 0x54d   : > { %v3791_v9 = vpop.permute.xlu0 %3790 }
 0x54e   : > { %v5225_v31 = vmax.f32 %v5166_v16, 0.0  ;;  %v3915_v38 = vadd.f32 %v8773_v27, %v3791_v9  ;;  %v10115_v16 = vpack.c.bf16 %v9499_v61, %v10114_v28 }
 0x550   : > { %6862 = vmatmul.mubr.msk.f32.gmra.mrb[224].mxu1 %vm5236_vm5, %v5225_v31  ;;  %v4385_v55 = vpop.permute.xlu1 %4384  ;;  %v4271_v51 = vadd.f32 %v4147_v57, %v3915_v38  ;;  %v10116_v31 = vmov 0.0|0.0  }
 0x551   : > { %v4738_v0 = vpop.permute.xlu0 %4737  ;;  %v5625_v59 = vpop.f32.mrb[182].mxu1  ;;  %6864 = vmatprep.mubr.msk.f32.mxu1 %vm7501_vm4, %v10071_v37 }
 0x552   : > { %v4863_v34 = vadd.f32 %v4738_v0, %v4506_v45  ;;  %v5862_v6 = vmul.f32 %v5803_v8, %v5625_v59  ;;  %v6800_v39 = vpop.f32.mrb[183].mxu1  ;;  %v4507_v20 = vadd.f32 %v4383_v54, %v4271_v51  ;;  %v5805_v54 = vld [vmem:[%s10016_s4 + $0xf8] sm:$0xff] }
 0x554   : > { %v5101_v14 = vadd.f32 %v4976_v46, %v4863_v34  ;;  %v6950_v49 = vpack.c.bf16 %v5862_v6, %v5861_v3  ;;  %v3793_v44 = vpop.permute.xlu1 %3792 }
 0x555   : > { %v4387_v56 = vpop.permute.xlu0 %4386  ;;  %v3916_v5 = vadd.f32 %v8780_v21, %v3793_v44  ;;  %v5806_v44 = vld [vmem:[%s10016_s4 + $0x100] sm:$0xff] }
 0x556   : > { %v5167_v1 = vadd.f32 %v9453_v60, %v5101_v14  ;;  %6951 = vmatprep.subr.bf16.mxu1 %v6950_v49 }
 0x557   : > { %6953 = vmatpush3.bf16.msra.mxu1 %v10113_v52 }
 0x558   : > { %v5226_v7 = vmax.f32 %v5167_v1, 0.0  ;;  %v4740_v53 = vpop.permute.xlu1 %4739 }
 0x559   : > { %v4149_v47 = vpop.permute.xlu0 %4148  ;;  %v4864_v30 = vadd.f32 %v4740_v53, %v4507_v20 }
 0x55a   : > { %6865 = vmatmul.mubr.msk.f32.gmra.mrb[226].mxu1 %vm5236_vm5, %v5226_v7  ;;  %v4272_v19 = vadd.f32 %v4149_v47, %v3916_v5 }
 0x55b   : > { %v5630_v27 = vpop.f32.mrb[184].mxu1  ;;  %6867 = vmatprep.mubr.msk.f32.mxu1 %vm7501_vm4, %v10071_v37 }
 0x55c   : > { %v4151_v40 = vpop.permute.xlu1 %4150  ;;  %v6803_v17 = vpop.f32.mrb[185].mxu1  ;;  %v4508_v29 = vadd.f32 %v4385_v55, %v4272_v19  ;;  %v5863_v18 = vmul.f32 %v5804_v4, %v5630_v27 }
 0x55d   : > { %v4978_v43 = vpop.permute.xlu0 %4977 }
 0x55e   : > { %v5102_v33 = vadd.f32 %v4978_v43, %v4864_v30 }
 0x560   : > { %v5168_v48 = vadd.f32 %v9453_v60, %v5102_v33  ;;  %v4980_v25 = vpop.permute.xlu1 %4979 }
 0x561   : > { %v3795_v58 = vpop.permute.xlu0 %3794 }
 0x562   : > { %v5227_v24 = vmax.f32 %v5168_v48, 0.0  ;;  %v3917_v63 = vadd.f32 %v8797_v42, %v3795_v58 }
 0x564   : > { %6868 = vmatmul.mubr.msk.f32.gmra.mrb[228].mxu1 %vm5236_vm5, %v5227_v24  ;;  %v4389_v12 = vpop.permute.xlu1 %4388  ;;  %v4273_v13 = vadd.f32 %v4151_v40, %v3917_v63 }
 0x565   : > { %v4742_v21 = vpop.permute.xlu0 %4741  ;;  %v5635_v62 = vpop.f32.mrb[186].mxu1  ;;  %6870 = vmatprep.mubr.msk.f32.mxu1 %vm7501_vm4, %v10071_v37 }
 0x566   : > { %v4865_v32 = vadd.f32 %v4742_v21, %v4508_v29  ;;  %v5864_v35 = vmul.f32 %v5805_v54, %v5635_v62  ;;  %v6806_v50 = vpop.f32.mrb[187].mxu1  ;;  %v4509_v22 = vadd.f32 %v4387_v56, %v4273_v13  ;;  %v5807_v56 = vld [vmem:[%s10016_s4 + $0x108] sm:$0xff] }
 0x568   : > { %v5103_v26 = vadd.f32 %v4980_v25, %v4865_v32  ;;  %v6954_v57 = vpack.c.bf16 %v5864_v35, %v5863_v18  ;;  %v3797_v15 = vpop.permute.xlu1 %3796 }
 0x569   : > { %v4391_v41 = vpop.permute.xlu0 %4390  ;;  %v3918_v3 = vadd.f32 %v8803_v10, %v3797_v15 }
 0x56a   : > { %v5169_v11 = vadd.f32 %v9453_v60, %v5103_v26  ;;  %6955 = vmatprep.subr.bf16.mxu1 %v6954_v57  ;;  %v5808_v26 = vld [vmem:[%s10016_s4 + $0x110] sm:$0xff]  ;;  %v7455_v57 = vld [vmem:[%s10014_s2] ss:$0 sm:$0xff] }
 0x56b   : > { %6957 = vmatpush3.bf16.msra.mxu1 %v10115_v16 }
 0x56c   : > { %v5228_v46 = vmax.f32 %v5169_v11, 0.0  ;;  %v4744_v9 = vpop.permute.xlu1 %4743  ;;  %6958 = vmatprep.subr.bf16.mxu1 %v10116_v31 }
 0x56d   : > { %v4153_v42 = vpop.permute.xlu0 %4152  ;;  %v4866_v55 = vadd.f32 %v4744_v9, %v4509_v22 }
 0x56e   : > { %6871 = vmatmul.mubr.msk.f32.gmra.mrb[230].mxu1 %vm5236_vm5, %v5228_v46  ;;  %v4274_v38 = vadd.f32 %v4153_v42, %v3918_v3 }
 0x56f   : > { %v5640_v8 = vpop.f32.mrb[188].mxu1  ;;  %6873 = vmatprep.mubr.msk.f32.mxu1 %vm7501_vm4, %v10071_v37 }
 0x570   : > { %v4155_v45 = vpop.permute.xlu1 %4154  ;;  %v6809_v0 = vpop.f32.mrb[189].mxu1  ;;  %v4510_v1 = vadd.f32 %v4389_v12, %v4274_v38  ;;  %v5865_v53 = vmul.f32 %v5806_v44, %v5640_v8 }
 0x571   : > { %v4982_v59 = vpop.permute.xlu0 %4981 }
 0x572   : > { %v5104_v61 = vadd.f32 %v4982_v59, %v4866_v55 }
 0x574   : > { %v5170_v34 = vadd.f32 %v9453_v60, %v5104_v61  ;;  %v4984_v6 = vpop.permute.xlu1 %4983  ;;  %v5893_v61 = vld [vmem:[%s10017_s5 + $0x8] sm:$0x1f] }
 0x575   : > { %v3799_v39 = vpop.permute.xlu0 %3798 }
 0x576   : > { %v5229_v14 = vmax.f32 %v5170_v34, 0.0  ;;  %v3919_v49 = vadd.f32 %v10103_v23, %v3799_v39  ;;  %v5810_v39 = vld [vmem:[%s10016_s4 + $0x120] sm:$0xff] }
 0x578   : > { %v4275_v51 = vadd.f32 %v4155_v45, %v3919_v49  ;;  %6874 = vmatmul.mubr.msk.f32.gmra.mrb[232].mxu1 %vm5236_vm5, %v5229_v14  ;;  %v3801_v10 = vpop.permute.xlu1 %3800  ;;  %v5811_v14 = vld [vmem:[%s10016_s4 + $0x128] sm:$0xff] }
 0x579   : > { %v4746_v52 = vpop.permute.xlu0 %4745  ;;  %v5645_v7 = vpop.f32.mrb[190].mxu1  ;;  %6876 = vmatprep.mubr.msk.f32.mxu1 %vm7501_vm4, %v10071_v37  ;;  %v3920_v19 = vadd.f32 %v8829_v2, %v3801_v10 }
 0x57a   : > { %v4867_v23 = vadd.f32 %v4746_v52, %v4510_v1  ;;  %v5866_v47 = vmul.f32 %v5807_v56, %v5645_v7  ;;  %v6812_v20 = vpop.f32.mrb[191].mxu1  ;;  %v4511_v27 = vadd.f32 %v4391_v41, %v4275_v51  ;;  %v5809_v41 = vld [vmem:[%s10016_s4 + $0x118] sm:$0xff]  ;;  %v5812_v7 = vld [vmem:[%s10016_s4 + $0x130] sm:$0xff] }
 0x57c   : > { %v5105_v30 = vadd.f32 %v4984_v6, %v4867_v23  ;;  %v6959_v40 = vpack.c.bf16 %v5866_v47, %v5865_v53  ;;  %v4748_v17 = vpop.permute.xlu1 %4747  ;;  %v5892_v6 = vld [vmem:[%s10017_s5] sm:$0x1f]  ;;  %v5813_v53 = vld [vmem:[%s10016_s4 + $0x138] sm:$0xff] }
 0x57d   : > { %v4393_v43 = vpop.permute.xlu0 %4392  ;;  %v4868_v33 = vadd.f32 %v4748_v17, %v4511_v27 }
 0x57e   : > { %v5171_v5 = vadd.f32 %v9453_v60, %v5105_v30 }
 0x580   : > { %v5230_v48 = vmax.f32 %v5171_v5, 0.0  ;;  %v4986_v25 = vpop.permute.xlu1 %4985  ;;  %v5815_v5 = vld [vmem:[%s10016_s4 + $0x148] sm:$0xff] }
 0x581   : > { %v5106_v58 = vadd.f32 %v4986_v25, %v4868_v33  ;;  %v4157_v24 = vpop.permute.xlu0 %4156 }
 0x582   : > { %v4276_v4 = vadd.f32 %v4157_v24, %v3920_v19  ;;  %6877 = vmatmul.mubr.msk.f32.gmra.mrb[234].mxu1 %vm5236_vm5, %v5230_v48 }
 0x583   : > { %v5172_v54 = vadd.f32 %v9453_v60, %v5106_v58  ;;  %v5650_v12 = vpop.f32.mrb[192].mxu1  ;;  %6879 = vmatprep.mubr.msk.f32.mxu1 %vm7501_vm4, %v10071_v37 }
 0x584   : > { %v4512_v29 = vadd.f32 %v4393_v43, %v4276_v4  ;;  %v4750_v21 = vpop.permute.xlu1 %4749  ;;  %v6815_v62 = vpop.f32.mrb[193].mxu1  ;;  %v5867_v46 = vmul.f32 %v5808_v26, %v5650_v12  ;;  %v5814_v43 = vld [vmem:[%s10016_s4 + $0x140] sm:$0xff]  ;;  %v5817_v12 = vld [vmem:[%s10016_s4 + $0x158] sm:$0xff] }
 0x585   : > { %v5231_v18 = vmax.f32 %v5172_v54, 0.0  ;;  %v3803_v63 = vpop.permute.xlu0 %3802  ;;  %v5816_v54 = vld [vmem:[%s10016_s4 + $0x150] sm:$0xff] }
 0x586   : > { %v4869_v32 = vadd.f32 %v4750_v21, %v4512_v29  ;;  %v3921_v60 = vadd.f32 %v10105_v36, %v3803_v63 }
 0x587   : > { %6880 = vmatmul.mubr.msk.f32.gmra.mrb[236].mxu1 %vm5236_vm5, %v5231_v18 }
 0x588   : > { %v4988_v2 = vpop.permute.xlu1 %4987  ;;  %6882 = vmatprep.mubr.msk.f32.mxu1 %vm7501_vm4, %v10071_v37 }
 0x589   : > { %v5107_v35 = vadd.f32 %v4988_v2, %v4869_v32  ;;  %v4159_v50 = vpop.permute.xlu0 %4158 }
 0x58a   : > { %v4277_v13 = vadd.f32 %v4159_v50, %v3921_v60  ;;  %v5818_v50 = vld [vmem:[%s10016_s4 + $0x160] sm:$0xff]  ;;  %v5819_v60 = vld [vmem:[%s10016_s4 + $0x168] sm:$0xff] }
 0x58b   : > { %v5173_v15 = vadd.f32 %v7455_v57, %v5107_v35  ;;  %v5895_v35 = vld [vmem:[%s10017_s5 + $0x18] sm:$0x1f] }
 0x58c   : > { %v4752_v22 = vpop.permute.xlu1 %4751 }
 0x58d   : > { %v5232_v11 = vmax.f32 %v5173_v15, 0.0  ;;  %v4395_v28 = vpop.permute.xlu0 %4394  ;;  %v5655_v16 = vpop.f32.mrb[194].mxu1 }
 0x58e   : > { %v4513_v9 = vadd.f32 %v4395_v28, %v4277_v13  ;;  %v5868_v36 = vmul.f32 %v5809_v41, %v5655_v16  ;;  %v6818_v42 = vpop.f32.mrb[195].mxu1  ;;  %v5820_v16 = vld [vmem:[%s10016_s4 + $0x170] sm:$0xff] }
 0x58f   : > { %6883 = vmatmul.mubr.msk.f32.gmra.mrb[238].mxu1 %vm5236_vm5, %v5232_v11 }
 0x590   : > { %v6962_v8 = vpack.c.bf16 %v5868_v36, %v5867_v46  ;;  %v4870_v55 = vadd.f32 %v4752_v22, %v4513_v9  ;;  %6885 = vmatprep.mubr.msk.f32.mxu1 %vm7501_vm4, %v10071_v37  ;;  %v5821_v46 = vld [vmem:[%s10016_s4 + $0x178] sm:$0xff] }
 0x591   : > { %v4990_v45 = vpop.permute.xlu0 %4989 }
 0x592   : > { %v5108_v0 = vadd.f32 %v4990_v45, %v4870_v55 }
 0x594   : > { %v5174_v59 = vadd.f32 %v7455_v57, %v5108_v0  ;;  %v5822_v0 = vld [vmem:[%s10016_s4 + $0x180] sm:$0xff] }
 0x596   : > { %v5233_v3 = vmax.f32 %v5174_v59, 0.0  ;;  %v5823_v59 = vld [vmem:[%s10016_s4 + $0x188] sm:$0xff] }
 0x597   : > { %v5660_v38 = vpop.f32.mrb[196].mxu1 }
 0x598   : > { %v6821_v34 = vpop.f32.mrb[197].mxu1  ;;  %6886 = vmatmul.mubr.msk.f32.gmra.mrb[240].mxu1 %vm5236_vm5, %v5233_v3  ;;  %v5869_v44 = vmul.f32 %v5810_v39, %v5660_v38 }
 0x599   : > { %5964 = vmatprep.mubr.f32.mxu1 %v5893_v61 }
 0x59c   : > { %5965 = vmatmul.mubr.f32.vlgmr.msra.gmra.mrb[242].mxu1 %v5892_v6 }
 0x59d   : > { %6960 = vmatpush1.bf16.msra.mxu1 %v6959_v40  ;;  %6588 = vmatprep.mubr.msk.f32.mxu1 %vm5896_vm6, %v5895_v35  ;;  %v5832_v35 = vld [vmem:[%s10016_s4 + $0x1d0] sm:$0xff] }
 0x59e   : > { %6961 = vmatprep.subr.bf16.mxu1 %v10116_v31 }
 0x5a1   : > { %6963 = vmatpush1.bf16.msra.mxu1 %v6962_v8  ;;  %v5665_v49 = vpop.f32.mrb[198].mxu1 }
 0x5a2   : > { %v5870_v56 = vmul.f32 %v5811_v14, %v5665_v49  ;;  %v6824_v51 = vpop.f32.mrb[199].mxu1  ;;  %6964 = vmatprep.subr.bf16.mxu1 %v10116_v31  ;;  %v5824_v49 = vld [vmem:[%s10016_s4 + $0x190] sm:$0xff] }
 0x5a4   : > { %v6965_v10 = vpack.c.bf16 %v5870_v56, %v5869_v44  ;;  %v5825_v44 = vld [vmem:[%s10016_s4 + $0x198] sm:$0xff] }
 0x5a6   : > { %6966 = vmatpush1.bf16.msra.mxu1 %v6965_v10 }
 0x5a7   : > { %6967 = vmatprep.subr.bf16.mxu1 %v10116_v31 }
 0x5ab   : > { %v5670_v1 = vpop.f32.mrb[200].mxu1 }
 0x5ac   : > { %v6827_v52 = vpop.f32.mrb[201].mxu1  ;;  %v5871_v47 = vmul.f32 %v5812_v7, %v5670_v1 }
 0x5b5   : > { %v5675_v23 = vpop.f32.mrb[202].mxu1 }
 0x5b6   : > { %v5872_v20 = vmul.f32 %v5813_v53, %v5675_v23  ;;  %v6830_v27 = vpop.f32.mrb[203].mxu1  ;;  %v5826_v23 = vld [vmem:[%s10016_s4 + $0x1a0] sm:$0xff] }
 0x5b8   : > { %v6968_v30 = vpack.c.bf16 %v5872_v20, %v5871_v47  ;;  %v5827_v47 = vld [vmem:[%s10016_s4 + $0x1a8] sm:$0xff] }
 0x5ba   : > { %6969 = vmatpush1.bf16.msra.mxu1 %v6968_v30 }
 0x5bb   : > { %6970 = vmatprep.subr.bf16.mxu1 %v10116_v31 }
 0x5bf   : > { %v5680_v40 = vpop.f32.mrb[204].mxu1 }
 0x5c0   : > { %v6833_v17 = vpop.f32.mrb[205].mxu1  ;;  %v5873_v19 = vmul.f32 %v5814_v43, %v5680_v40 }
 0x5c9   : > { %v5685_v33 = vpop.f32.mrb[206].mxu1 }
 0x5ca   : > { %v5874_v48 = vmul.f32 %v5815_v5, %v5685_v33  ;;  %v6836_v25 = vpop.f32.mrb[207].mxu1  ;;  %v5828_v33 = vld [vmem:[%s10016_s4 + $0x1b0] sm:$0xff] }
 0x5cc   : > { %v6971_v58 = vpack.c.bf16 %v5874_v48, %v5873_v19  ;;  %v5829_v19 = vld [vmem:[%s10016_s4 + $0x1b8] sm:$0xff] }
 0x5ce   : > { %6972 = vmatpush1.bf16.msra.mxu1 %v6971_v58 }
 0x5cf   : > { %6973 = vmatprep.subr.bf16.mxu1 %v10116_v31 }
 0x5d3   : > { %v5690_v24 = vpop.f32.mrb[208].mxu1 }
 0x5d4   : > { %v6839_v4 = vpop.f32.mrb[209].mxu1  ;;  %v5875_v21 = vmul.f32 %v5816_v54, %v5690_v24 }
 0x5dd   : > { %v5695_v29 = vpop.f32.mrb[210].mxu1 }
 0x5de   : > { %v5876_v62 = vmul.f32 %v5817_v12, %v5695_v29  ;;  %v6842_v18 = vpop.f32.mrb[211].mxu1  ;;  %v5830_v29 = vld [vmem:[%s10016_s4 + $0x1c0] sm:$0xff] }
 0x5e0   : > { %v6974_v63 = vpack.c.bf16 %v5876_v62, %v5875_v21  ;;  %v5831_v21 = vld [vmem:[%s10016_s4 + $0x1c8] sm:$0xff] }
 0x5e2   : > { %6975 = vmatpush1.bf16.msra.mxu1 %v6974_v63 }
 0x5e3   : > { %6976 = vmatprep.subr.bf16.mxu1 %v10116_v31 }
 0x5e7   : > { %v5700_v32 = vpop.f32.mrb[212].mxu1 }
 0x5e8   : > { %v6845_v2 = vpop.f32.mrb[213].mxu1  ;;  %v5877_v57 = vmul.f32 %v5818_v50, %v5700_v32  ;;  %v6040_v50 = vld [vmem:[%s10018_s6] sm:$0xff] }
 0x5f1   : > { %v5705_v26 = vpop.f32.mrb[214].mxu1 }
 0x5f2   : > { %v5878_v15 = vmul.f32 %v5819_v60, %v5705_v26  ;;  %v6848_v41 = vpop.f32.mrb[215].mxu1  ;;  %v6041_v60 = vld [vmem:[%s10018_s6 + $0x8] sm:$0xff] }
 0x5f3   : > { %v5894_v41 = vld [vmem:[%s10017_s5 + $0x10] sm:$0x1f] }
 0x5f4   : > { %v6977_v13 = vpack.c.bf16 %v5878_v15, %v5877_v57 }
 0x5f6   : > { %6978 = vmatpush1.bf16.msra.mxu1 %v6977_v13  ;;  %v6998_v13 = vpack.c.bf16 %v6041_v60, %v6040_v50 }
 0x5f7   : > { %6979 = vmatprep.subr.bf16.mxu1 %v10116_v31 }
 0x5fb   : > { %v5710_v11 = vpop.f32.mrb[216].mxu1 }
 0x5fc   : > { %v6851_v28 = vpop.f32.mrb[217].mxu1  ;;  %v5879_v36 = vmul.f32 %v5820_v16, %v5710_v11  ;;  %v6042_v11 = vld [vmem:[%s10018_s6 + $0x10] sm:$0xff] }
 0x5fd   : > { %v6043_v28 = vld [vmem:[%s10018_s6 + $0x18] sm:$0xff] }
 0x605   : > { %v5715_v9 = vpop.f32.mrb[218].mxu1 }
 0x606   : > { %v5880_v42 = vmul.f32 %v5821_v46, %v5715_v9  ;;  %v6854_v22 = vpop.f32.mrb[219].mxu1  ;;  %v7001_v9 = vpack.c.bf16 %v6043_v28, %v6042_v11 }
 0x607   : > { %v6045_v22 = vld [vmem:[%s10018_s6 + $0x28] sm:$0xff] }
 0x608   : > { %v6980_v8 = vpack.c.bf16 %v5880_v42, %v5879_v36  ;;  %v6044_v42 = vld [vmem:[%s10018_s6 + $0x20] sm:$0xff] }
 0x60a   : > { %6981 = vmatpush1.bf16.msra.mxu1 %v6980_v8  ;;  %v7004_v8 = vpack.c.bf16 %v6045_v22, %v6044_v42 }
 0x60b   : > { %6982 = vmatprep.subr.bf16.mxu1 %v10116_v31 }
 0x60f   : > { %v5720_v55 = vpop.f32.mrb[220].mxu1 }
 0x610   : > { %v6857_v45 = vpop.f32.mrb[221].mxu1  ;;  %v5881_v61 = vmul.f32 %v5822_v0, %v5720_v55  ;;  %v6046_v55 = vld [vmem:[%s10018_s6 + $0x30] sm:$0xff]  ;;  %v6048_v0 = vld [vmem:[%s10018_s6 + $0x40] sm:$0xff] }
 0x619   : > { %v5725_v3 = vpop.f32.mrb[222].mxu1 }
 0x61a   : > { %v5882_v38 = vmul.f32 %v5823_v59, %v5725_v3  ;;  %v6860_v34 = vpop.f32.mrb[223].mxu1  ;;  %v6049_v59 = vld [vmem:[%s10018_s6 + $0x48] sm:$0xff] }
 0x61b   : > { %v7010_v3 = vpack.c.bf16 %v6049_v59, %v6048_v0 }
 0x61c   : > { %v6983_v6 = vpack.c.bf16 %v5882_v38, %v5881_v61  ;;  %v6050_v61 = vld [vmem:[%s10018_s6 + $0x50] sm:$0xff]  ;;  %v6051_v38 = vld [vmem:[%s10018_s6 + $0x58] sm:$0xff] }
 0x61d   : > { %v7013_v34 = vpack.c.bf16 %v6051_v38, %v6050_v61 }
 0x61e   : > { %6984 = vmatpush1.bf16.msra.mxu1 %v6983_v6  ;;  %v6052_v6 = vld [vmem:[%s10018_s6 + $0x60] sm:$0xff] }
 0x61f   : > { %6985 = vmatprep.subr.bf16.mxu1 %v10116_v31 }
 0x623   : > { %v5730_v39 = vpop.f32.mrb[224].mxu1 }
 0x624   : > { %v6863_v14 = vpop.f32.mrb[225].mxu1  ;;  %v5883_v51 = vmul.f32 %v5824_v49, %v5730_v39  ;;  %v6053_v39 = vld [vmem:[%s10018_s6 + $0x68] sm:$0xff]  ;;  %v6054_v49 = vld [vmem:[%s10018_s6 + $0x70] sm:$0xff] }
 0x625   : > { %v7016_v14 = vpack.c.bf16 %v6053_v39, %v6052_v6 }
 0x62d   : > { %v5735_v56 = vpop.f32.mrb[226].mxu1 }
 0x62e   : > { %v5884_v10 = vmul.f32 %v5825_v44, %v5735_v56  ;;  %v6866_v1 = vpop.f32.mrb[227].mxu1  ;;  %v6055_v44 = vld [vmem:[%s10018_s6 + $0x78] sm:$0xff] }
 0x62f   : > { %v7019_v56 = vpack.c.bf16 %v6055_v44, %v6054_v49 }
 0x630   : > { %v6986_v52 = vpack.c.bf16 %v5884_v10, %v5883_v51 }
 0x632   : > { %6987 = vmatpush1.bf16.msra.mxu1 %v6986_v52 }
 0x633   : > { %6988 = vmatprep.subr.bf16.mxu1 %v10116_v31 }
 0x637   : > { %v5740_v7 = vpop.f32.mrb[228].mxu1 }
 0x638   : > { %v6869_v53 = vpop.f32.mrb[229].mxu1  ;;  %v5885_v27 = vmul.f32 %v5826_v23, %v5740_v7 }
 0x641   : > { %v5745_v20 = vpop.f32.mrb[230].mxu1 }
 0x642   : > { %v5886_v30 = vmul.f32 %v5827_v47, %v5745_v20  ;;  %v6872_v40 = vpop.f32.mrb[231].mxu1 }
 0x644   : > { %v6989_v17 = vpack.c.bf16 %v5886_v30, %v5885_v27 }
 0x646   : > { %6990 = vmatpush1.bf16.msra.mxu1 %v6989_v17 }
 0x647   : > { %6991 = vmatprep.subr.bf16.mxu1 %v10116_v31 }
 0x64b   : > { %v5750_v43 = vpop.f32.mrb[232].mxu1 }
 0x64c   : > { %v6875_v5 = vpop.f32.mrb[233].mxu1  ;;  %v5887_v25 = vmul.f32 %v5828_v33, %v5750_v43 }
 0x655   : > { %v5755_v48 = vpop.f32.mrb[234].mxu1 }
 0x656   : > { %v5888_v58 = vmul.f32 %v5829_v19, %v5755_v48  ;;  %v6878_v24 = vpop.f32.mrb[235].mxu1  ;;  %v6126_v19 = vld [vmem:[#allocation2] sm:$0x1]  ;;  %v6138_v48 = vld [vmem:[#allocation3] sm:$0x1] }
 0x658   : > { %v6992_v4 = vpack.c.bf16 %v5888_v58, %v5887_v25 }
 0x65a   : > { %v5760_v54 = vpop.f32.mrb[236].mxu1  ;;  %6993 = vmatpush1.bf16.msra.mxu1 %v6992_v4 }
 0x65b   : > { %v6881_v12 = vpop.f32.mrb[237].mxu1  ;;  %6994 = vmatprep.subr.bf16.mxu1 %v10116_v31  ;;  %v5889_v18 = vmul.f32 %v5830_v29, %v5760_v54  ;;  %v6152_v54 = vld [vmem:[%s10020_s8] sm:$0x1] (!%p6589_p5) }
 0x65c   : > { %v6155_v29 = vld [vmem:[%s10019_s7] sm:$0x1] (!%p6589_p5) }
 0x662   : > { %v5765_v62 = vpop.f32.mrb[238].mxu1 }
 0x663   : > { %v5890_v63 = vmul.f32 %v5831_v21, %v5765_v62  ;;  %v6884_v32 = vpop.f32.mrb[239].mxu1 }
 0x665   : > { %v6995_v2 = vpack.c.bf16 %v5890_v63, %v5889_v18  ;;  %v6160_v18 = vsub.f32 (!%p6589_p5), 1.0, %v6152_v54 }
 0x667   : > { %6996 = vmatpush1.bf16.msra.mxu1 %v6995_v2 }
 0x668   : > { %6022 = vmatprep.subr.mxu1 %v10071_v37 }
 0x66b   : > { %v5770_v26 = vpop.f32.mrb[240].mxu1 }
 0x66c   : > { %v5891_v57 = vmul.f32 %v5832_v35, %v5770_v26  ;;  %v6887_v15 = vpop.f32.mrb[241].mxu1 }
 0x66e   : > { %6023 = vmatpush1.msra.mxu1 %v5891_v57 }
 0x66f   : > { %6035 = vmatmul.mubr.f32.vlgmr.msra.gmra.mrb[244].mxu1 %v5894_v41  ;;  %v6687_v16 = vpop.f32.mrb[242].mxu1  ;;  %6997 = vmatprep.subr.bf16.mxu1 %v10116_v31 }
 0x670   : > { %v6688_v46 = vpop.f32.mrb[243].mxu1  ;;  %6999 = vmatpush3.bf16.msra.mxu1 %v6998_v13  ;;  %6920 = vmatprep.mubr.msk.f32.mxu1 %vm7501_vm4, %v10071_v37  ;;  %v6047_v37 = vld [vmem:[%s10018_s6 + $0x38] sm:$0xff] }
 0x671   : > { %v6689_v36 = vadd.f32 %v6688_v46, %v6687_v16  ;;  %7000 = vmatprep.subr.bf16.mxu1 %v10116_v31  ;;  %v7007_v45 = vpack.c.bf16 %v6047_v37, %v6046_v55 }
 0x674   : > { %7002 = vmatpush3.bf16.msra.mxu1 %v7001_v9 }
 0x675   : > { %7003 = vmatprep.subr.bf16.mxu1 %v10116_v31 }
 0x678   : > { %7005 = vmatpush3.bf16.msra.mxu1 %v7004_v8 }
 0x679   : > { %7006 = vmatprep.subr.bf16.mxu1 %v10116_v31 }
 0x67c   : > { %7008 = vmatpush3.bf16.msra.mxu1 %v7007_v45 }
 0x67d   : > { %7009 = vmatprep.subr.bf16.mxu1 %v10116_v31 }
 0x680   : > { %7011 = vmatpush3.bf16.msra.mxu1 %v7010_v3 }
 0x681   : > { %7012 = vmatprep.subr.bf16.mxu1 %v10116_v31 }
 0x684   : > { %7014 = vmatpush3.bf16.msra.mxu1 %v7013_v34 }
 0x685   : > { %7015 = vmatprep.subr.bf16.mxu1 %v10116_v31 }
 0x688   : > { %7017 = vmatpush3.bf16.msra.mxu1 %v7016_v14 }
 0x689   : > { %7018 = vmatprep.subr.bf16.mxu1 %v10116_v31 }
 0x68c   : > { %7020 = vmatpush3.bf16.msra.mxu1 %v7019_v56 }
 0x742   : > { %v6036_v51 = vpop.f32.mrb[244].mxu1 }
 0x743   : > { %v6037_v10 = vadd.f32 %v6689_v36, %v6036_v51  ;;  %v6038_v1 = vpop.f32.mrb[245].mxu1 }
 0x745   : > { %6921 = vmatmul.mubr.f32.vlgmr.msra.gmra.mrb[246].mxu1 %v6037_v10 }
 0x818   : > { %v6122_v52 = vpop.f32.mrb[246].mxu1 }
 0x819   : > { %v6128_v7 = vsel %vm6127_vm7, %v6122_v52, 0.0  ;;  %v6139_v53 = vsel %vm6127_vm7, %v6122_v52, -inf  ;;  %v6922_v23 = vpop.f32.mrb[247].mxu1 }
 0x81a   : > { %v6129_v31 = vrot.slane %v6128_v7, 4  ;;  %v6140_v47 = vrot.slane %v6139_v53, 4 }
 0x81c   : > { %v6130_v20 = vadd.f32 %v6129_v31, %v6128_v7  ;;  %v6141_v27 = vmax.f32 %v6139_v53, %v6140_v47 }
 0x81e   : > { %v6131_v30 = vrot.slane %v6130_v20, 2  ;;  %v6142_v40 = vrot.slane %v6141_v27, 2 }
 0x820   : > { %v6132_v17 = vadd.f32 %v6131_v30, %v6130_v20  ;;  %v6143_v43 = vmax.f32 %v6141_v27, %v6142_v40 }
 0x822   : > { %v6133_v5 = vrot.slane %v6132_v17, 1  ;;  %v6144_v33 = vrot.slane %v6143_v43, 1  ;;  %6151 = sbr.rel (%p6589_p5) target bundleno = 2105 (0x839), region = 64 }
 0x824   : > { %v6134_v25 = vadd.f32 %v6133_v5, %v6132_v17  ;;  %v6145_v58 = vmax.f32 %v6143_v43, %v6144_v33 }
 0x826   : > { %v6135_v24 = vadd.f32 %v6134_v25, %v6126_v19  ;;  %v6146_v4 = vmax.f32 %v6138_v48, %v6145_v58 }
 0x828   : > { %6137 = vst.msk [vmem:[#allocation2] sm:$0x1] %vm6136_vm8, %v6135_v24  ;;  %6147 = vst.msk [vmem:[#allocation3] sm:$0x1] %vm6136_vm8, %v6146_v4 }
 0x82f   : > { %v6153_v12 = vld [vmem:[#allocation2] sm:$0x1]  ;;  %v6157_v62 = vld [vmem:[#allocation3] sm:$0x1] }
 0x830   : > { %v6154_v21 = vmul.f32 0.06666667, %v6153_v12  ;;  %v6158_v63 = vadd.f32 %v6157_v62, %v6155_v29 }
 0x832   : > { %v6156_v32 = vadd.f32 %v6155_v29, %v6154_v21  ;;  %v6161_v2 = vmul.f32 %v6160_v18, %v6158_v63 }
 0x834   : > { %v6159_v35 = vmul.f32 %v6156_v32, %v6152_v54 }
 0x836   : > { %v6162_v50 = vadd.f32 %v6161_v2, %v6159_v35 }
 0x838   : > { %6163 = vst.msk [vmem:[#allocation4] sm:$0x1] %vm6136_vm8, %v6162_v50 }
 0x839 PF: > { %p7367_p6 = scmp.eq.s32.totalorder %s7562_s10, 2  ;;  %s7505_s20 = smov [#allocation4]  }
 0x83a   : > { %s6171_s15 = sshll.u32 %s7505_s20, 4  ;;  %s6172_s15 = int_to_ptr.vmem [resolvable:$true] %s6171_s15 }
 0x83b   : > { %s7456_s25 = scalar_lea.vmem %s6172_s15, 16  ;;  %s7462_s23 = scalar_lea.vmem %s6172_s15, 32 }
 0x83c   : > { %p7457_p7 = scmp.ne.s32.totalorder %s6172_s15, %s7456_s25  ;;  %p7463_p10 = scmp.lt.s32.totalorder %s6172_s15, %s6172_s15 }
 0x83d   : > { %p7464_p11 = scmp.lt.s32.totalorder %s7462_s23, %s7456_s25 }
 0x83e   : > { %p7458_p8 = pnand %p7457_p7, %p7367_p6 }
 0x83f   : > { %p7465_p12 = por %p7464_p11, %p7463_p10 }
 0x840   : > { %p7459_p9 = pneg %p7458_p8 }
 0x842   : > { %p7466_p13 = pnand %p7465_p12, %p7459_p9 }
 0x844   : > { %7469 = shalt.err (!%p7466_p13)
}
 0x845   : > { %s7470_s27 = scalar_lea.hbm %s10021_s9, 16 }
 0x846   : > { %p7471_p0 = scmp.ne.s32.totalorder %s10021_s9, %s7470_s27  ;;  %p7476_p3 = scmp.lt.u32.totalorder %s7470_s27, %s10021_s9 }
 0x848   : > { %p7472_p1 = pnand %p7471_p0, %p7367_p6 }
 0x84a   : > { %p7473_p2 = pneg %p7472_p1 }
 0x84c   : > { %p7478_p4 = pnand %p7476_p3, %p7473_p2 }
 0x84e   : > { %7481 = shalt.err (!%p7478_p4)
}
 0x84f   : > { %7364 = dma.vmem_to_hbm [thread:$0]  (%p7367_p6), %s6172_s15, 16, %s10021_s9, [#allocation5]  }
 0x850   : > { %7487 = dma.done.wait (%p7367_p6), [#allocation5], 16  }
 0x851   : > { %7489 = vsyncadd (%p7367_p6), [#allocation5], 4294967280 }
 0x852 PF: > { %s20_s30 = sadd.s32 1, %s7492_s30  }
 0x853   : > { %p17_p5 = scmp.ge.s32.totalorder %s20_s30, 5  }
 0x855   :  { %19 = sbr.rel (!%p17_p5) target bundleno = 1 (0x1), region = 91 }
 0x85c   :  { %6184 = vsyncpa [#allocation5], 1 }
 0x85d   :  { %6186 = vsyncpa [#allocation5 + $0x1], 1 }

</bundles_post_ra>
